<compile_context>
chip_gen: v6e
topology: v6e:2x2x1
jax: 0.10.0
libtpu: 0.0.40
codegen_flags: <defaults>
</compile_context>

<pallas_src>
import numpy as np
import jax
import jax.numpy as jnp
from jax.experimental import pallas as pl
from jax.experimental.pallas import tpu as pltpu

STATE_SIZE = 67
ACTION_SIZE = 21
HIDDEN = [512, 512, 512]


def _default_tile_b():
    """B tile matching the MXU M dimension: 128 on v5e, 256 on v6e/v7x."""
    try:
        kind = jax.devices()[0].device_kind.lower()
    except Exception:
        kind = ""
    if ("v5e" in kind) or ("v5 lite" in kind) or ("v5lite" in kind):
        return 128
    return 256


def _critic_kernel(x_ref, w1_ref, b1_ref, w2_ref, b2_ref, w3_ref, b3_ref,
                   w4_ref, b4_ref, o_ref):
    # x_ref : (TB, 88) f32                 (one B tile of concat([state, action]))
    # w1_ref: (2, 88, 512) bf16            w2/w3_ref: (2, 512, 512) bf16
    # w4_ref: (2, 1, 512) bf16 lane-dense  b1/b2/b3_ref: (2, 1, 512) f32
    # b4_ref: (2, 1) f32                   o_ref: (2, TB) f32 (lane-dense)
    x = x_ref[...].astype(jnp.bfloat16)
    w4f = w4_ref[...].astype(jnp.float32)        # hoisted out of the q loop
    for q in range(2):                           # static unroll: 2 independent MXU chains
        h = jnp.dot(x, w1_ref[q], preferred_element_type=jnp.float32) + b1_ref[q]
        h = jnp.maximum(h, 0.0)
        h = jnp.dot(h.astype(jnp.bfloat16), w2_ref[q],
                    preferred_element_type=jnp.float32) + b2_ref[q]
        h = jnp.maximum(h, 0.0)
        h = jnp.dot(h.astype(jnp.bfloat16), w3_ref[q],
                    preferred_element_type=jnp.float32) + b3_ref[q]
        h = jnp.maximum(h, 0.0)
        # Final (512 -> 1) layer: lane-dense VPU multiply + row-reduce (no MXU).
        qv = jnp.sum(h * w4f[q], axis=-1) + b4_ref[q]
        o_ref[q, :] = qv.astype(o_ref.dtype)


def _make_critic_call(tb, b_pad, single_buffer_weights):
    S, A = STATE_SIZE, ACTION_SIZE
    D = S + A
    h0, h1, h2 = HIDDEN
    nbt = b_pad // tb

    def const_spec(shape):
        # Constant index_map: weights/biases are fetched once and stay
        # VMEM-resident across all B tiles.
        idx = lambda i, _n=len(shape): (0,) * _n
        if single_buffer_weights:
            return pl.BlockSpec(shape, idx, pipeline_mode=pl.Buffered(1))
        return pl.BlockSpec(shape, idx)

    in_specs = [
        pl.BlockSpec((tb, D), lambda i: (i, 0)),     # x, tiled along B
        const_spec((2, D, h0)),  const_spec((2, 1, h0)),
        const_spec((2, h0, h1)), const_spec((2, 1, h1)),
        const_spec((2, h1, h2)), const_spec((2, 1, h2)),
        const_spec((2, 1, h2)),  const_spec((2, 1)),
    ]
    out_spec = pl.BlockSpec((2, tb), lambda i: (0, i))

    return pl.pallas_call(
        _critic_kernel,
        out_shape=jax.ShapeDtypeStruct((2, b_pad), jnp.float32),
        grid_spec=pltpu.PrefetchScalarGridSpec(
            num_scalar_prefetch=0,
            grid=(nbt,),
            in_specs=in_specs,
            out_specs=out_spec,
        ),
        compiler_params=pltpu.CompilerParams(
            dimension_semantics=("parallel",)),   # B tiles; megacore shards here
    )


def sac_critic_forward(state, action, params, *, tile_b=None):
    """Returns (q1, q2), each (B, 1) float32, matching SACCritic.forward.

    To amortize the ~2.2 MiB weight DMA at small batch, callers can stack
    several evaluations that share these weights (e.g. current- and
    target-critic inputs) along the batch axis before calling.
    """
    B = state.shape[0]
    x = jnp.concatenate([state, action], axis=1).astype(jnp.float32)

    if tile_b is None:
        tile_b = _default_tile_b()
    if B <= tile_b:
        tb, b_pad = B, B                     # single tile = full extent
    else:
        tb = tile_b
        b_pad = ((B + tb - 1) // tb) * tb
        if b_pad != B:
            x = jnp.pad(x, ((0, b_pad - B), (0, 0)))

    args = (x, params["w1"], params["b1"], params["w2"], params["b2"],
            params["w3"], params["b3"], params["w4"], params["b4"])

    try:
        # Preferred: single-buffered (Buffered(1)) weight specs.
        out = jax.block_until_ready(_make_critic_call(tb, b_pad, True)(*args))
    except Exception:
        # Fallback if this JAX build rejects buffer_count=1: default buffering.
        out = _make_critic_call(tb, b_pad, False)(*args)

    return out[0, :B].reshape(B, 1), out[1, :B].reshape(B, 1)


def init_params(key):
    """PyTorch-Linear-style init (uniform +/- 1/sqrt(fan_in)), stacked along a
    leading axis of 2 for the two Q-nets.  Weights are cast to bf16 once here
    (halves HBM traffic); biases stay f32."""
    d_in = STATE_SIZE + ACTION_SIZE
    dims = [d_in] + HIDDEN + [1]
    keys = jax.random.split(key, 2 * (len(dims) - 1))
    ws, bs = [], []
    ki = 0
    for li in range(len(dims) - 1):
        fan_in, fan_out = dims[li], dims[li + 1]
        bound = 1.0 / np.sqrt(fan_in)
        w = jax.random.uniform(keys[ki], (2, fan_in, fan_out),
                               minval=-bound, maxval=bound, dtype=jnp.float32)
        ki += 1
        b = jax.random.uniform(keys[ki], (2, fan_out),
                               minval=-bound, maxval=bound, dtype=jnp.float32)
        ki += 1
        ws.append(w)
        bs.append(b)

    h0, h1, h2 = HIDDEN
    params = {
        # (in, out) layout -> kernel computes x @ W + b.  Single K=88 layer-1.
        "w1": ws[0].astype(jnp.bfloat16),                          # (2, 88, 512)
        "w2": ws[1].astype(jnp.bfloat16),                          # (2, 512, 512)
        "w3": ws[2].astype(jnp.bfloat16),                          # (2, 512, 512)
        # Final layer lane-dense (2, 1, 512): VPU multiply + row-reduce.
        "w4": jnp.transpose(ws[3], (0, 2, 1)).astype(jnp.bfloat16),
        # Biases as (2, 1, H): a (1, H) row per net, broadcasts over sublanes.
        "b1": bs[0].reshape(2, 1, h0),
        "b2": bs[1].reshape(2, 1, h1),
        "b3": bs[2].reshape(2, 1, h2),
        "b4": bs[3],                                               # (2, 1)
    }
    return params


def _reference_forward(state, action, params):
    """Pure-JAX f32 reference with the same parameter values."""
    x = jnp.concatenate([state, action], axis=1).astype(jnp.float32)
    outs = []
    for q in range(2):
        h = jnp.maximum(x @ params["w1"][q].astype(jnp.float32)
                        + params["b1"][q, 0], 0.0)
        h = jnp.maximum(h @ params["w2"][q].astype(jnp.float32)
                        + params["b2"][q, 0], 0.0)
        h = jnp.maximum(h @ params["w3"][q].astype(jnp.float32)
                        + params["b3"][q, 0], 0.0)
        qv = jnp.sum(h * params["w4"][q].astype(jnp.float32),
                     axis=-1, keepdims=True) + params["b4"][q]
        outs.append(qv)
    return outs[0], outs[1]


if __name__ == "__main__":
    key = jax.random.PRNGKey(0)
    k_p, k_s, k_a = jax.random.split(key, 3)
    params = init_params(k_p)

    # --- small inference-style batch (B=2) -> single grid step -------------
    B = 2
    state = jax.random.normal(k_s, (B, STATE_SIZE), dtype=jnp.float32)
    action = jax.random.normal(k_a, (B, ACTION_SIZE), dtype=jnp.float32)

    q1, q2 = sac_critic_forward(state, action, params)
    q1 = jax.block_until_ready(q1)
    q2 = jax.block_until_ready(q2)

    r1, r2 = _reference_forward(state, action, params)
    assert q1.shape == (B, 1) and q2.shape == (B, 1)
    # bf16 weights/activations inside the kernel vs f32 compute -> relaxed tol.
    np.testing.assert_allclose(np.asarray(q1), np.asarray(r1), rtol=2e-2, atol=2e-2)
    np.testing.assert_allclose(np.asarray(q2), np.asarray(r2), rtol=2e-2, atol=2e-2)

    # --- training-style batch exercising the B-tiled grid (+padding) -------
    B2 = 300
    k_s2, k_a2 = jax.random.split(jax.random.PRNGKey(1), 2)
    state2 = jax.random.normal(k_s2, (B2, STATE_SIZE), dtype=jnp.float32)
    action2 = jax.random.normal(k_a2, (B2, ACTION_SIZE), dtype=jnp.float32)

    t1, t2 = sac_critic_forward(state2, action2, params, tile_b=128)
    t1 = jax.block_until_ready(t1)
    t2 = jax.block_until_ready(t2)
    s1, s2 = _reference_forward(state2, action2, params)
    assert t1.shape == (B2, 1) and t2.shape == (B2, 1)
    np.testing.assert_allclose(np.asarray(t1), np.asarray(s1), rtol=2e-2, atol=2e-2)
    np.testing.assert_allclose(np.asarray(t2), np.asarray(s2), rtol=2e-2, atol=2e-2)

    print("KERNEL_OK")
</pallas_src>

<mosaic_0001>
module attributes {stable_mosaic.version = 11 : i64} {
  func.func @_critic_kernel(%arg0: i32, %arg1: memref<2x88xf32, #tpu.memory_space<vmem>>, %arg2: memref<2x88x512xbf16, #tpu.memory_space<vmem>>, %arg3: memref<2x1x512xf32, #tpu.memory_space<vmem>>, %arg4: memref<2x512x512xbf16, #tpu.memory_space<vmem>>, %arg5: memref<2x1x512xf32, #tpu.memory_space<vmem>>, %arg6: memref<2x512x512xbf16, #tpu.memory_space<vmem>>, %arg7: memref<2x1x512xf32, #tpu.memory_space<vmem>>, %arg8: memref<2x1x512xbf16, #tpu.memory_space<vmem>>, %arg9: memref<2x1xf32, #tpu.memory_space<vmem>>, %arg10: memref<2x2xf32, #tpu.memory_space<vmem>>) attributes {dimension_semantics = [#tpu.dimension_semantics<parallel>], iteration_bounds = array<i64: 1>, scalar_prefetch = 0 : i64, scratch_operands = 0 : i64, tpu.core_type = #tpu.core_type<tc>, window_params = [{transform_indices = @transform_0, window_bounds = array<i64: 2, 88>}, {pipeline_mode = #tpu.pipeline_mode<synchronous>, transform_indices = @transform_1, window_bounds = array<i64: 2, 88, 512>}, {pipeline_mode = #tpu.pipeline_mode<synchronous>, transform_indices = @transform_2, window_bounds = array<i64: 2, 1, 512>}, {pipeline_mode = #tpu.pipeline_mode<synchronous>, transform_indices = @transform_3, window_bounds = array<i64: 2, 512, 512>}, {pipeline_mode = #tpu.pipeline_mode<synchronous>, transform_indices = @transform_4, window_bounds = array<i64: 2, 1, 512>}, {pipeline_mode = #tpu.pipeline_mode<synchronous>, transform_indices = @transform_5, window_bounds = array<i64: 2, 512, 512>}, {pipeline_mode = #tpu.pipeline_mode<synchronous>, transform_indices = @transform_6, window_bounds = array<i64: 2, 1, 512>}, {pipeline_mode = #tpu.pipeline_mode<synchronous>, transform_indices = @transform_7, window_bounds = array<i64: 2, 1, 512>}, {pipeline_mode = #tpu.pipeline_mode<synchronous>, transform_indices = @transform_8, window_bounds = array<i64: 2, 1>}, {transform_indices = @transform_9, window_bounds = array<i64: 2, 2>}]} {
    %c0 = arith.constant 0 : index
    %c0_0 = arith.constant 0 : index
    %0 = vector.load %arg1[%c0, %c0_0] : memref<2x88xf32, #tpu.memory_space<vmem>>, vector<2x88xf32>
    %1 = arith.truncf %0 : vector<2x88xf32> to vector<2x88xbf16>
    %c0_1 = arith.constant 0 : index
    %c0_2 = arith.constant 0 : index
    %c0_3 = arith.constant 0 : index
    %2 = vector.load %arg8[%c0_1, %c0_2, %c0_3] : memref<2x1x512xbf16, #tpu.memory_space<vmem>>, vector<2x1x512xbf16>
    %3 = arith.extf %2 : vector<2x1x512xbf16> to vector<2x1x512xf32>
    %c0_4 = arith.constant 0 : index
    %c0_5 = arith.constant 0 : index
    %c0_6 = arith.constant 0 : index
    %4 = vector.load %arg2[%c0_4, %c0_5, %c0_6] : memref<2x88x512xbf16, #tpu.memory_space<vmem>>, vector<1x88x512xbf16>
    %5 = vector.shape_cast %4 : vector<1x88x512xbf16> to vector<88x512xbf16>
    %cst = arith.constant dense<0.000000e+00> : vector<2x512xf32>
    %6 = tpu.matmul %1, %5, %cst {dimension_numbers = #tpu.dot_dimension_numbers<[1], [0], [0], [1], [0, 0, 1, 1], [], []>} : vector<2x88xbf16>, vector<88x512xbf16>, vector<2x512xf32> -> vector<2x512xf32>
    %c0_7 = arith.constant 0 : index
    %c0_8 = arith.constant 0 : index
    %c0_9 = arith.constant 0 : index
    %7 = vector.load %arg3[%c0_7, %c0_8, %c0_9] : memref<2x1x512xf32, #tpu.memory_space<vmem>>, vector<1x1x512xf32>
    %8 = vector.shape_cast %7 : vector<1x1x512xf32> to vector<1x512xf32>
    %9 = vector.broadcast %8 : vector<1x512xf32> to vector<2x512xf32>
    %10 = arith.addf %6, %9 : vector<2x512xf32>
    %cst_10 = arith.constant 0.000000e+00 : f32
    %11 = vector.broadcast %cst_10 : f32 to vector<2x512xf32>
    %12 = arith.maximumf %10, %11 : vector<2x512xf32>
    %13 = arith.truncf %12 : vector<2x512xf32> to vector<2x512xbf16>
    %c0_11 = arith.constant 0 : index
    %c0_12 = arith.constant 0 : index
    %c0_13 = arith.constant 0 : index
    %14 = vector.load %arg4[%c0_11, %c0_12, %c0_13] : memref<2x512x512xbf16, #tpu.memory_space<vmem>>, vector<1x512x512xbf16>
    %15 = vector.shape_cast %14 : vector<1x512x512xbf16> to vector<512x512xbf16>
    %cst_14 = arith.constant dense<0.000000e+00> : vector<2x512xf32>
    %16 = tpu.matmul %13, %15, %cst_14 {dimension_numbers = #tpu.dot_dimension_numbers<[1], [0], [0], [1], [0, 0, 1, 1], [], []>} : vector<2x512xbf16>, vector<512x512xbf16>, vector<2x512xf32> -> vector<2x512xf32>
    %c0_15 = arith.constant 0 : index
    %c0_16 = arith.constant 0 : index
    %c0_17 = arith.constant 0 : index
    %17 = vector.load %arg5[%c0_15, %c0_16, %c0_17] : memref<2x1x512xf32, #tpu.memory_space<vmem>>, vector<1x1x512xf32>
    %18 = vector.shape_cast %17 : vector<1x1x512xf32> to vector<1x512xf32>
    %19 = vector.broadcast %18 : vector<1x512xf32> to vector<2x512xf32>
    %20 = arith.addf %16, %19 : vector<2x512xf32>
    %cst_18 = arith.constant 0.000000e+00 : f32
    %21 = vector.broadcast %cst_18 : f32 to vector<2x512xf32>
    %22 = arith.maximumf %20, %21 : vector<2x512xf32>
    %23 = arith.truncf %22 : vector<2x512xf32> to vector<2x512xbf16>
    %c0_19 = arith.constant 0 : index
    %c0_20 = arith.constant 0 : index
    %c0_21 = arith.constant 0 : index
    %24 = vector.load %arg6[%c0_19, %c0_20, %c0_21] : memref<2x512x512xbf16, #tpu.memory_space<vmem>>, vector<1x512x512xbf16>
    %25 = vector.shape_cast %24 : vector<1x512x512xbf16> to vector<512x512xbf16>
    %cst_22 = arith.constant dense<0.000000e+00> : vector<2x512xf32>
    %26 = tpu.matmul %23, %25, %cst_22 {dimension_numbers = #tpu.dot_dimension_numbers<[1], [0], [0], [1], [0, 0, 1, 1], [], []>} : vector<2x512xbf16>, vector<512x512xbf16>, vector<2x512xf32> -> vector<2x512xf32>
    %c0_23 = arith.constant 0 : index
    %c0_24 = arith.constant 0 : index
    %c0_25 = arith.constant 0 : index
    %27 = vector.load %arg7[%c0_23, %c0_24, %c0_25] : memref<2x1x512xf32, #tpu.memory_space<vmem>>, vector<1x1x512xf32>
    %28 = vector.shape_cast %27 : vector<1x1x512xf32> to vector<1x512xf32>
    %29 = vector.broadcast %28 : vector<1x512xf32> to vector<2x512xf32>
    %30 = arith.addf %26, %29 : vector<2x512xf32>
    %cst_26 = arith.constant 0.000000e+00 : f32
    %31 = vector.broadcast %cst_26 : f32 to vector<2x512xf32>
    %32 = arith.maximumf %30, %31 : vector<2x512xf32>
    %33 = vector.extract_strided_slice %3 {offsets = [0, 0, 0], sizes = [1, 1, 512], strides = [1, 1, 1]} : vector<2x1x512xf32> to vector<1x1x512xf32>
    %34 = vector.shape_cast %33 : vector<1x1x512xf32> to vector<1x512xf32>
    %35 = vector.broadcast %34 : vector<1x512xf32> to vector<2x512xf32>
    %36 = arith.mulf %32, %35 : vector<2x512xf32>
    %cst_27 = arith.constant dense<0.000000e+00> : vector<2xf32>
    %37 = vector.multi_reduction <add>, %36, %cst_27 [1] : vector<2x512xf32> to vector<2xf32>
    %c0_28 = arith.constant 0 : index
    %c0_29 = arith.constant 0 : index
    %38 = vector.load %arg9[%c0_28, %c0_29] : memref<2x1xf32, #tpu.memory_space<vmem>>, vector<1x1xf32>
    %39 = vector.shape_cast %38 : vector<1x1xf32> to vector<1xf32>
    %40 = vector.broadcast %39 : vector<1xf32> to vector<2xf32>
    %41 = arith.addf %37, %40 : vector<2xf32>
    %c0_30 = arith.constant 0 : index
    %c0_31 = arith.constant 0 : index
    %42 = vector.load %arg10[%c0_30, %c0_31] : memref<2x2xf32, #tpu.memory_space<vmem>>, vector<1x2xf32>
    %43 = vector.shape_cast %42 : vector<1x2xf32> to vector<2xf32>
    %44 = vector.shape_cast %41 : vector<2xf32> to vector<1x2xf32>
    tpu.vector_store %arg10[%c0_30, %c0_31], %44 {strides = array<i32>} : memref<2x2xf32, #tpu.memory_space<vmem>>, vector<1x2xf32>,
    %c1 = arith.constant 1 : index
    %c0_32 = arith.constant 0 : index
    %c0_33 = arith.constant 0 : index
    %45 = vector.load %arg2[%c1, %c0_32, %c0_33] : memref<2x88x512xbf16, #tpu.memory_space<vmem>>, vector<1x88x512xbf16>
    %46 = vector.shape_cast %45 : vector<1x88x512xbf16> to vector<88x512xbf16>
    %cst_34 = arith.constant dense<0.000000e+00> : vector<2x512xf32>
    %47 = tpu.matmul %1, %46, %cst_34 {dimension_numbers = #tpu.dot_dimension_numbers<[1], [0], [0], [1], [0, 0, 1, 1], [], []>} : vector<2x88xbf16>, vector<88x512xbf16>, vector<2x512xf32> -> vector<2x512xf32>
    %c1_35 = arith.constant 1 : index
    %c0_36 = arith.constant 0 : index
    %c0_37 = arith.constant 0 : index
    %48 = vector.load %arg3[%c1_35, %c0_36, %c0_37] : memref<2x1x512xf32, #tpu.memory_space<vmem>>, vector<1x1x512xf32>
    %49 = vector.shape_cast %48 : vector<1x1x512xf32> to vector<1x512xf32>
    %50 = vector.broadcast %49 : vector<1x512xf32> to vector<2x512xf32>
    %51 = arith.addf %47, %50 : vector<2x512xf32>
    %cst_38 = arith.constant 0.000000e+00 : f32
    %52 = vector.broadcast %cst_38 : f32 to vector<2x512xf32>
    %53 = arith.maximumf %51, %52 : vector<2x512xf32>
    %54 = arith.truncf %53 : vector<2x512xf32> to vector<2x512xbf16>
    %c1_39 = arith.constant 1 : index
    %c0_40 = arith.constant 0 : index
    %c0_41 = arith.constant 0 : index
    %55 = vector.load %arg4[%c1_39, %c0_40, %c0_41] : memref<2x512x512xbf16, #tpu.memory_space<vmem>>, vector<1x512x512xbf16>
    %56 = vector.shape_cast %55 : vector<1x512x512xbf16> to vector<512x512xbf16>
    %cst_42 = arith.constant dense<0.000000e+00> : vector<2x512xf32>
    %57 = tpu.matmul %54, %56, %cst_42 {dimension_numbers = #tpu.dot_dimension_numbers<[1], [0], [0], [1], [0, 0, 1, 1], [], []>} : vector<2x512xbf16>, vector<512x512xbf16>, vector<2x512xf32> -> vector<2x512xf32>
    %c1_43 = arith.constant 1 : index
    %c0_44 = arith.constant 0 : index
    %c0_45 = arith.constant 0 : index
    %58 = vector.load %arg5[%c1_43, %c0_44, %c0_45] : memref<2x1x512xf32, #tpu.memory_space<vmem>>, vector<1x1x512xf32>
    %59 = vector.shape_cast %58 : vector<1x1x512xf32> to vector<1x512xf32>
    %60 = vector.broadcast %59 : vector<1x512xf32> to vector<2x512xf32>
    %61 = arith.addf %57, %60 : vector<2x512xf32>
    %cst_46 = arith.constant 0.000000e+00 : f32
    %62 = vector.broadcast %cst_46 : f32 to vector<2x512xf32>
    %63 = arith.maximumf %61, %62 : vector<2x512xf32>
    %64 = arith.truncf %63 : vector<2x512xf32> to vector<2x512xbf16>
    %c1_47 = arith.constant 1 : index
    %c0_48 = arith.constant 0 : index
    %c0_49 = arith.constant 0 : index
    %65 = vector.load %arg6[%c1_47, %c0_48, %c0_49] : memref<2x512x512xbf16, #tpu.memory_space<vmem>>, vector<1x512x512xbf16>
    %66 = vector.shape_cast %65 : vector<1x512x512xbf16> to vector<512x512xbf16>
    %cst_50 = arith.constant dense<0.000000e+00> : vector<2x512xf32>
    %67 = tpu.matmul %64, %66, %cst_50 {dimension_numbers = #tpu.dot_dimension_numbers<[1], [0], [0], [1], [0, 0, 1, 1], [], []>} : vector<2x512xbf16>, vector<512x512xbf16>, vector<2x512xf32> -> vector<2x512xf32>
    %c1_51 = arith.constant 1 : index
    %c0_52 = arith.constant 0 : index
    %c0_53 = arith.constant 0 : index
    %68 = vector.load %arg7[%c1_51, %c0_52, %c0_53] : memref<2x1x512xf32, #tpu.memory_space<vmem>>, vector<1x1x512xf32>
    %69 = vector.shape_cast %68 : vector<1x1x512xf32> to vector<1x512xf32>
    %70 = vector.broadcast %69 : vector<1x512xf32> to vector<2x512xf32>
    %71 = arith.addf %67, %70 : vector<2x512xf32>
    %cst_54 = arith.constant 0.000000e+00 : f32
    %72 = vector.broadcast %cst_54 : f32 to vector<2x512xf32>
    %73 = arith.maximumf %71, %72 : vector<2x512xf32>
    %74 = vector.extract_strided_slice %3 {offsets = [1, 0, 0], sizes = [1, 1, 512], strides = [1, 1, 1]} : vector<2x1x512xf32> to vector<1x1x512xf32>
    %75 = vector.shape_cast %74 : vector<1x1x512xf32> to vector<1x512xf32>
    %76 = vector.broadcast %75 : vector<1x512xf32> to vector<2x512xf32>
    %77 = arith.mulf %73, %76 : vector<2x512xf32>
    %cst_55 = arith.constant dense<0.000000e+00> : vector<2xf32>
    %78 = vector.multi_reduction <add>, %77, %cst_55 [1] : vector<2x512xf32> to vector<2xf32>
    %c1_56 = arith.constant 1 : index
    %c0_57 = arith.constant 0 : index
    %79 = vector.load %arg9[%c1_56, %c0_57] : memref<2x1xf32, #tpu.memory_space<vmem>>, vector<1x1xf32>
    %80 = vector.shape_cast %79 : vector<1x1xf32> to vector<1xf32>
    %81 = vector.broadcast %80 : vector<1xf32> to vector<2xf32>
    %82 = arith.addf %78, %81 : vector<2xf32>
    %c1_58 = arith.constant 1 : index
    %c0_59 = arith.constant 0 : index
    %83 = vector.load %arg10[%c1_58, %c0_59] : memref<2x2xf32, #tpu.memory_space<vmem>>, vector<1x2xf32>
    %84 = vector.shape_cast %83 : vector<1x2xf32> to vector<2xf32>
    %85 = vector.shape_cast %82 : vector<2xf32> to vector<1x2xf32>
    tpu.vector_store %arg10[%c1_58, %c0_59], %85 {strides = array<i32>} : memref<2x2xf32, #tpu.memory_space<vmem>>, vector<1x2xf32>,
    return
  }
  func.func @transform_0(%arg0: i32) -> (i32, i32) {
    %c0_i32 = arith.constant 0 : i32
    %c0_i32_0 = arith.constant 0 : i32
    return %arg0, %c0_i32 : i32, i32
  }
  func.func @transform_1(%arg0: i32) -> (i32, i32, i32) {
    %c0_i32 = arith.constant 0 : i32
    %c0_i32_0 = arith.constant 0 : i32
    %c0_i32_1 = arith.constant 0 : i32
    %c0_i32_2 = arith.constant 0 : i32
    return %c0_i32, %c0_i32_0, %c0_i32_1 : i32, i32, i32
  }
  func.func @transform_2(%arg0: i32) -> (i32, i32, i32) {
    %c0_i32 = arith.constant 0 : i32
    %c0_i32_0 = arith.constant 0 : i32
    %c0_i32_1 = arith.constant 0 : i32
    %c0_i32_2 = arith.constant 0 : i32
    return %c0_i32, %c0_i32_0, %c0_i32_1 : i32, i32, i32
  }
  func.func @transform_3(%arg0: i32) -> (i32, i32, i32) {
    %c0_i32 = arith.constant 0 : i32
    %c0_i32_0 = arith.constant 0 : i32
    %c0_i32_1 = arith.constant 0 : i32
    %c0_i32_2 = arith.constant 0 : i32
    return %c0_i32, %c0_i32_0, %c0_i32_1 : i32, i32, i32
  }
  func.func @transform_4(%arg0: i32) -> (i32, i32, i32) {
    %c0_i32 = arith.constant 0 : i32
    %c0_i32_0 = arith.constant 0 : i32
    %c0_i32_1 = arith.constant 0 : i32
    %c0_i32_2 = arith.constant 0 : i32
    return %c0_i32, %c0_i32_0, %c0_i32_1 : i32, i32, i32
  }
  func.func @transform_5(%arg0: i32) -> (i32, i32, i32) {
    %c0_i32 = arith.constant 0 : i32
    %c0_i32_0 = arith.constant 0 : i32
    %c0_i32_1 = arith.constant 0 : i32
    %c0_i32_2 = arith.constant 0 : i32
    return %c0_i32, %c0_i32_0, %c0_i32_1 : i32, i32, i32
  }
  func.func @transform_6(%arg0: i32) -> (i32, i32, i32) {
    %c0_i32 = arith.constant 0 : i32
    %c0_i32_0 = arith.constant 0 : i32
    %c0_i32_1 = arith.constant 0 : i32
    %c0_i32_2 = arith.constant 0 : i32
    return %c0_i32, %c0_i32_0, %c0_i32_1 : i32, i32, i32
  }
  func.func @transform_7(%arg0: i32) -> (i32, i32, i32) {
    %c0_i32 = arith.constant 0 : i32
    %c0_i32_0 = arith.constant 0 : i32
    %c0_i32_1 = arith.constant 0 : i32
    %c0_i32_2 = arith.constant 0 : i32
    return %c0_i32, %c0_i32_0, %c0_i32_1 : i32, i32, i32
  }
  func.func @transform_8(%arg0: i32) -> (i32, i32) {
    %c0_i32 = arith.constant 0 : i32
    %c0_i32_0 = arith.constant 0 : i32
    %c0_i32_1 = arith.constant 0 : i32
    return %c0_i32, %c0_i32_0 : i32, i32
  }
  func.func @transform_9(%arg0: i32) -> (i32, i32) {
    %c0_i32 = arith.constant 0 : i32
    %c0_i32_0 = arith.constant 0 : i32
    return %c0_i32, %arg0 : i32, i32
  }
}

module attributes {stable_mosaic.version = 11 : i64} {
  func.func @_critic_kernel(%arg0: i32, %arg1: memref<2x88xf32, #tpu.memory_space<vmem>>, %arg2: memref<2x88x512xbf16, #tpu.memory_space<vmem>>, %arg3: memref<2x1x512xf32, #tpu.memory_space<vmem>>, %arg4: memref<2x512x512xbf16, #tpu.memory_space<vmem>>, %arg5: memref<2x1x512xf32, #tpu.memory_space<vmem>>, %arg6: memref<2x512x512xbf16, #tpu.memory_space<vmem>>, %arg7: memref<2x1x512xf32, #tpu.memory_space<vmem>>, %arg8: memref<2x1x512xbf16, #tpu.memory_space<vmem>>, %arg9: memref<2x1xf32, #tpu.memory_space<vmem>>, %arg10: memref<2x2xf32, #tpu.memory_space<vmem>>) attributes {dimension_semantics = [#tpu.dimension_semantics<parallel>], iteration_bounds = array<i64: 1>, scalar_prefetch = 0 : i64, scratch_operands = 0 : i64, tpu.core_type = #tpu.core_type<tc>, window_params = [{transform_indices = @transform_0, window_bounds = array<i64: 2, 88>}, {pipeline_mode = #tpu.pipeline_mode<synchronous>, transform_indices = @transform_1, window_bounds = array<i64: 2, 88, 512>}, {pipeline_mode = #tpu.pipeline_mode<synchronous>, transform_indices = @transform_2, window_bounds = array<i64: 2, 1, 512>}, {pipeline_mode = #tpu.pipeline_mode<synchronous>, transform_indices = @transform_3, window_bounds = array<i64: 2, 512, 512>}, {pipeline_mode = #tpu.pipeline_mode<synchronous>, transform_indices = @transform_4, window_bounds = array<i64: 2, 1, 512>}, {pipeline_mode = #tpu.pipeline_mode<synchronous>, transform_indices = @transform_5, window_bounds = array<i64: 2, 512, 512>}, {pipeline_mode = #tpu.pipeline_mode<synchronous>, transform_indices = @transform_6, window_bounds = array<i64: 2, 1, 512>}, {pipeline_mode = #tpu.pipeline_mode<synchronous>, transform_indices = @transform_7, window_bounds = array<i64: 2, 1, 512>}, {pipeline_mode = #tpu.pipeline_mode<synchronous>, transform_indices = @transform_8, window_bounds = array<i64: 2, 1>}, {transform_indices = @transform_9, window_bounds = array<i64: 2, 2>}]} {
    %c0 = arith.constant 0 : index
    %c0_0 = arith.constant 0 : index
    %0 = vector.load %arg1[%c0, %c0_0] : memref<2x88xf32, #tpu.memory_space<vmem>>, vector<2x88xf32>
    %1 = arith.truncf %0 : vector<2x88xf32> to vector<2x88xbf16>
    %c0_1 = arith.constant 0 : index
    %c0_2 = arith.constant 0 : index
    %c0_3 = arith.constant 0 : index
    %2 = vector.load %arg8[%c0_1, %c0_2, %c0_3] : memref<2x1x512xbf16, #tpu.memory_space<vmem>>, vector<2x1x512xbf16>
    %3 = arith.extf %2 : vector<2x1x512xbf16> to vector<2x1x512xf32>
    %c0_4 = arith.constant 0 : index
    %c0_5 = arith.constant 0 : index
    %c0_6 = arith.constant 0 : index
    %4 = vector.load %arg2[%c0_4, %c0_5, %c0_6] : memref<2x88x512xbf16, #tpu.memory_space<vmem>>, vector<1x88x512xbf16>
    %5 = vector.shape_cast %4 : vector<1x88x512xbf16> to vector<88x512xbf16>
    %cst = arith.constant dense<0.000000e+00> : vector<2x512xf32>
    %6 = tpu.matmul %1, %5, %cst {dimension_numbers = #tpu.dot_dimension_numbers<[1], [0], [0], [1], [0, 0, 1, 1], [], []>} : vector<2x88xbf16>, vector<88x512xbf16>, vector<2x512xf32> -> vector<2x512xf32>
    %c0_7 = arith.constant 0 : index
    %c0_8 = arith.constant 0 : index
    %c0_9 = arith.constant 0 : index
    %7 = vector.load %arg3[%c0_7, %c0_8, %c0_9] : memref<2x1x512xf32, #tpu.memory_space<vmem>>, vector<1x1x512xf32>
    %8 = vector.shape_cast %7 : vector<1x1x512xf32> to vector<1x512xf32>
    %9 = vector.broadcast %8 : vector<1x512xf32> to vector<2x512xf32>
    %10 = arith.addf %6, %9 : vector<2x512xf32>
    %cst_10 = arith.constant 0.000000e+00 : f32
    %11 = vector.broadcast %cst_10 : f32 to vector<2x512xf32>
    %12 = arith.maximumf %10, %11 : vector<2x512xf32>
    %13 = arith.truncf %12 : vector<2x512xf32> to vector<2x512xbf16>
    %c0_11 = arith.constant 0 : index
    %c0_12 = arith.constant 0 : index
    %c0_13 = arith.constant 0 : index
    %14 = vector.load %arg4[%c0_11, %c0_12, %c0_13] : memref<2x512x512xbf16, #tpu.memory_space<vmem>>, vector<1x512x512xbf16>
    %15 = vector.shape_cast %14 : vector<1x512x512xbf16> to vector<512x512xbf16>
    %cst_14 = arith.constant dense<0.000000e+00> : vector<2x512xf32>
    %16 = tpu.matmul %13, %15, %cst_14 {dimension_numbers = #tpu.dot_dimension_numbers<[1], [0], [0], [1], [0, 0, 1, 1], [], []>} : vector<2x512xbf16>, vector<512x512xbf16>, vector<2x512xf32> -> vector<2x512xf32>
    %c0_15 = arith.constant 0 : index
    %c0_16 = arith.constant 0 : index
    %c0_17 = arith.constant 0 : index
    %17 = vector.load %arg5[%c0_15, %c0_16, %c0_17] : memref<2x1x512xf32, #tpu.memory_space<vmem>>, vector<1x1x512xf32>
    %18 = vector.shape_cast %17 : vector<1x1x512xf32> to vector<1x512xf32>
    %19 = vector.broadcast %18 : vector<1x512xf32> to vector<2x512xf32>
    %20 = arith.addf %16, %19 : vector<2x512xf32>
    %cst_18 = arith.constant 0.000000e+00 : f32
    %21 = vector.broadcast %cst_18 : f32 to vector<2x512xf32>
    %22 = arith.maximumf %20, %21 : vector<2x512xf32>
    %23 = arith.truncf %22 : vector<2x512xf32> to vector<2x512xbf16>
    %c0_19 = arith.constant 0 : index
    %c0_20 = arith.constant 0 : index
    %c0_21 = arith.constant 0 : index
    %24 = vector.load %arg6[%c0_19, %c0_20, %c0_21] : memref<2x512x512xbf16, #tpu.memory_space<vmem>>, vector<1x512x512xbf16>
    %25 = vector.shape_cast %24 : vector<1x512x512xbf16> to vector<512x512xbf16>
    %cst_22 = arith.constant dense<0.000000e+00> : vector<2x512xf32>
    %26 = tpu.matmul %23, %25, %cst_22 {dimension_numbers = #tpu.dot_dimension_numbers<[1], [0], [0], [1], [0, 0, 1, 1], [], []>} : vector<2x512xbf16>, vector<512x512xbf16>, vector<2x512xf32> -> vector<2x512xf32>
    %c0_23 = arith.constant 0 : index
    %c0_24 = arith.constant 0 : index
    %c0_25 = arith.constant 0 : index
    %27 = vector.load %arg7[%c0_23, %c0_24, %c0_25] : memref<2x1x512xf32, #tpu.memory_space<vmem>>, vector<1x1x512xf32>
    %28 = vector.shape_cast %27 : vector<1x1x512xf32> to vector<1x512xf32>
    %29 = vector.broadcast %28 : vector<1x512xf32> to vector<2x512xf32>
    %30 = arith.addf %26, %29 : vector<2x512xf32>
    %cst_26 = arith.constant 0.000000e+00 : f32
    %31 = vector.broadcast %cst_26 : f32 to vector<2x512xf32>
    %32 = arith.maximumf %30, %31 : vector<2x512xf32>
    %33 = vector.extract_strided_slice %3 {offsets = [0, 0, 0], sizes = [1, 1, 512], strides = [1, 1, 1]} : vector<2x1x512xf32> to vector<1x1x512xf32>
    %34 = vector.shape_cast %33 : vector<1x1x512xf32> to vector<1x512xf32>
    %35 = vector.broadcast %34 : vector<1x512xf32> to vector<2x512xf32>
    %36 = arith.mulf %32, %35 : vector<2x512xf32>
    %cst_27 = arith.constant dense<0.000000e+00> : vector<2xf32>
    %37 = vector.multi_reduction <add>, %36, %cst_27 [1] : vector<2x512xf32> to vector<2xf32>
    %c0_28 = arith.constant 0 : index
    %c0_29 = arith.constant 0 : index
    %38 = vector.load %arg9[%c0_28, %c0_29] : memref<2x1xf32, #tpu.memory_space<vmem>>, vector<1x1xf32>
    %39 = vector.shape_cast %38 : vector<1x1xf32> to vector<1xf32>
    %40 = vector.broadcast %39 : vector<1xf32> to vector<2xf32>
    %41 = arith.addf %37, %40 : vector<2xf32>
    %c0_30 = arith.constant 0 : index
    %c0_31 = arith.constant 0 : index
    %42 = vector.load %arg10[%c0_30, %c0_31] : memref<2x2xf32, #tpu.memory_space<vmem>>, vector<1x2xf32>
    %43 = vector.shape_cast %42 : vector<1x2xf32> to vector<2xf32>
    %44 = vector.shape_cast %41 : vector<2xf32> to vector<1x2xf32>
    tpu.vector_store %arg10[%c0_30, %c0_31], %44 {strides = array<i32>} : memref<2x2xf32, #tpu.memory_space<vmem>>, vector<1x2xf32>,
    %c1 = arith.constant 1 : index
    %c0_32 = arith.constant 0 : index
    %c0_33 = arith.constant 0 : index
    %45 = vector.load %arg2[%c1, %c0_32, %c0_33] : memref<2x88x512xbf16, #tpu.memory_space<vmem>>, vector<1x88x512xbf16>
    %46 = vector.shape_cast %45 : vector<1x88x512xbf16> to vector<88x512xbf16>
    %cst_34 = arith.constant dense<0.000000e+00> : vector<2x512xf32>
    %47 = tpu.matmul %1, %46, %cst_34 {dimension_numbers = #tpu.dot_dimension_numbers<[1], [0], [0], [1], [0, 0, 1, 1], [], []>} : vector<2x88xbf16>, vector<88x512xbf16>, vector<2x512xf32> -> vector<2x512xf32>
    %c1_35 = arith.constant 1 : index
    %c0_36 = arith.constant 0 : index
    %c0_37 = arith.constant 0 : index
    %48 = vector.load %arg3[%c1_35, %c0_36, %c0_37] : memref<2x1x512xf32, #tpu.memory_space<vmem>>, vector<1x1x512xf32>
    %49 = vector.shape_cast %48 : vector<1x1x512xf32> to vector<1x512xf32>
    %50 = vector.broadcast %49 : vector<1x512xf32> to vector<2x512xf32>
    %51 = arith.addf %47, %50 : vector<2x512xf32>
    %cst_38 = arith.constant 0.000000e+00 : f32
    %52 = vector.broadcast %cst_38 : f32 to vector<2x512xf32>
    %53 = arith.maximumf %51, %52 : vector<2x512xf32>
    %54 = arith.truncf %53 : vector<2x512xf32> to vector<2x512xbf16>
    %c1_39 = arith.constant 1 : index
    %c0_40 = arith.constant 0 : index
    %c0_41 = arith.constant 0 : index
    %55 = vector.load %arg4[%c1_39, %c0_40, %c0_41] : memref<2x512x512xbf16, #tpu.memory_space<vmem>>, vector<1x512x512xbf16>
    %56 = vector.shape_cast %55 : vector<1x512x512xbf16> to vector<512x512xbf16>
    %cst_42 = arith.constant dense<0.000000e+00> : vector<2x512xf32>
    %57 = tpu.matmul %54, %56, %cst_42 {dimension_numbers = #tpu.dot_dimension_numbers<[1], [0], [0], [1], [0, 0, 1, 1], [], []>} : vector<2x512xbf16>, vector<512x512xbf16>, vector<2x512xf32> -> vector<2x512xf32>
    %c1_43 = arith.constant 1 : index
    %c0_44 = arith.constant 0 : index
    %c0_45 = arith.constant 0 : index
    %58 = vector.load %arg5[%c1_43, %c0_44, %c0_45] : memref<2x1x512xf32, #tpu.memory_space<vmem>>, vector<1x1x512xf32>
    %59 = vector.shape_cast %58 : vector<1x1x512xf32> to vector<1x512xf32>
    %60 = vector.broadcast %59 : vector<1x512xf32> to vector<2x512xf32>
    %61 = arith.addf %57, %60 : vector<2x512xf32>
    %cst_46 = arith.constant 0.000000e+00 : f32
    %62 = vector.broadcast %cst_46 : f32 to vector<2x512xf32>
    %63 = arith.maximumf %61, %62 : vector<2x512xf32>
    %64 = arith.truncf %63 : vector<2x512xf32> to vector<2x512xbf16>
    %c1_47 = arith.constant 1 : index
    %c0_48 = arith.constant 0 : index
    %c0_49 = arith.constant 0 : index
    %65 = vector.load %arg6[%c1_47, %c0_48, %c0_49] : memref<2x512x512xbf16, #tpu.memory_space<vmem>>, vector<1x512x512xbf16>
    %66 = vector.shape_cast %65 : vector<1x512x512xbf16> to vector<512x512xbf16>
    %cst_50 = arith.constant dense<0.000000e+00> : vector<2x512xf32>
    %67 = tpu.matmul %64, %66, %cst_50 {dimension_numbers = #tpu.dot_dimension_numbers<[1], [0], [0], [1], [0, 0, 1, 1], [], []>} : vector<2x512xbf16>, vector<512x512xbf16>, vector<2x512xf32> -> vector<2x512xf32>
    %c1_51 = arith.constant 1 : index
    %c0_52 = arith.constant 0 : index
    %c0_53 = arith.constant 0 : index
    %68 = vector.load %arg7[%c1_51, %c0_52, %c0_53] : memref<2x1x512xf32, #tpu.memory_space<vmem>>, vector<1x1x512xf32>
    %69 = vector.shape_cast %68 : vector<1x1x512xf32> to vector<1x512xf32>
    %70 = vector.broadcast %69 : vector<1x512xf32> to vector<2x512xf32>
    %71 = arith.addf %67, %70 : vector<2x512xf32>
    %cst_54 = arith.constant 0.000000e+00 : f32
    %72 = vector.broadcast %cst_54 : f32 to vector<2x512xf32>
    %73 = arith.maximumf %71, %72 : vector<2x512xf32>
    %74 = vector.extract_strided_slice %3 {offsets = [1, 0, 0], sizes = [1, 1, 512], strides = [1, 1, 1]} : vector<2x1x512xf32> to vector<1x1x512xf32>
    %75 = vector.shape_cast %74 : vector<1x1x512xf32> to vector<1x512xf32>
    %76 = vector.broadcast %75 : vector<1x512xf32> to vector<2x512xf32>
    %77 = arith.mulf %73, %76 : vector<2x512xf32>
    %cst_55 = arith.constant dense<0.000000e+00> : vector<2xf32>
    %78 = vector.multi_reduction <add>, %77, %cst_55 [1] : vector<2x512xf32> to vector<2xf32>
    %c1_56 = arith.constant 1 : index
    %c0_57 = arith.constant 0 : index
    %79 = vector.load %arg9[%c1_56, %c0_57] : memref<2x1xf32, #tpu.memory_space<vmem>>, vector<1x1xf32>
    %80 = vector.shape_cast %79 : vector<1x1xf32> to vector<1xf32>
    %81 = vector.broadcast %80 : vector<1xf32> to vector<2xf32>
    %82 = arith.addf %78, %81 : vector<2xf32>
    %c1_58 = arith.constant 1 : index
    %c0_59 = arith.constant 0 : index
    %83 = vector.load %arg10[%c1_58, %c0_59] : memref<2x2xf32, #tpu.memory_space<vmem>>, vector<1x2xf32>
    %84 = vector.shape_cast %83 : vector<1x2xf32> to vector<2xf32>
    %85 = vector.shape_cast %82 : vector<2xf32> to vector<1x2xf32>
    tpu.vector_store %arg10[%c1_58, %c0_59], %85 {strides = array<i32>} : memref<2x2xf32, #tpu.memory_space<vmem>>, vector<1x2xf32>,
    return
  }
  func.func @transform_0(%arg0: i32) -> (i32, i32) {
    %c0_i32 = arith.constant 0 : i32
    %c0_i32_0 = arith.constant 0 : i32
    return %arg0, %c0_i32 : i32, i32
  }
  func.func @transform_1(%arg0: i32) -> (i32, i32, i32) {
    %c0_i32 = arith.constant 0 : i32
    %c0_i32_0 = arith.constant 0 : i32
    %c0_i32_1 = arith.constant 0 : i32
    %c0_i32_2 = arith.constant 0 : i32
    return %c0_i32, %c0_i32_0, %c0_i32_1 : i32, i32, i32
  }
  func.func @transform_2(%arg0: i32) -> (i32, i32, i32) {
    %c0_i32 = arith.constant 0 : i32
    %c0_i32_0 = arith.constant 0 : i32
    %c0_i32_1 = arith.constant 0 : i32
    %c0_i32_2 = arith.constant 0 : i32
    return %c0_i32, %c0_i32_0, %c0_i32_1 : i32, i32, i32
  }
  func.func @transform_3(%arg0: i32) -> (i32, i32, i32) {
    %c0_i32 = arith.constant 0 : i32
    %c0_i32_0 = arith.constant 0 : i32
    %c0_i32_1 = arith.constant 0 : i32
    %c0_i32_2 = arith.constant 0 : i32
    return %c0_i32, %c0_i32_0, %c0_i32_1 : i32, i32, i32
  }
  func.func @transform_4(%arg0: i32) -> (i32, i32, i32) {
    %c0_i32 = arith.constant 0 : i32
    %c0_i32_0 = arith.constant 0 : i32
    %c0_i32_1 = arith.constant 0 : i32
    %c0_i32_2 = arith.constant 0 : i32
    return %c0_i32, %c0_i32_0, %c0_i32_1 : i32, i32, i32
  }
  func.func @transform_5(%arg0: i32) -> (i32, i32, i32) {
    %c0_i32 = arith.constant 0 : i32
    %c0_i32_0 = arith.constant 0 : i32
    %c0_i32_1 = arith.constant 0 : i32
    %c0_i32_2 = arith.constant 0 : i32
    return %c0_i32, %c0_i32_0, %c0_i32_1 : i32, i32, i32
  }
  func.func @transform_6(%arg0: i32) -> (i32, i32, i32) {
    %c0_i32 = arith.constant 0 : i32
    %c0_i32_0 = arith.constant 0 : i32
    %c0_i32_1 = arith.constant 0 : i32
    %c0_i32_2 = arith.constant 0 : i32
    return %c0_i32, %c0_i32_0, %c0_i32_1 : i32, i32, i32
  }
  func.func @transform_7(%arg0: i32) -> (i32, i32, i32) {
    %c0_i32 = arith.constant 0 : i32
    %c0_i32_0 = arith.constant 0 : i32
    %c0_i32_1 = arith.constant 0 : i32
    %c0_i32_2 = arith.constant 0 : i32
    return %c0_i32, %c0_i32_0, %c0_i32_1 : i32, i32, i32
  }
  func.func @transform_8(%arg0: i32) -> (i32, i32) {
    %c0_i32 = arith.constant 0 : i32
    %c0_i32_0 = arith.constant 0 : i32
    %c0_i32_1 = arith.constant 0 : i32
    return %c0_i32, %c0_i32_0 : i32, i32
  }
  func.func @transform_9(%arg0: i32) -> (i32, i32) {
    %c0_i32 = arith.constant 0 : i32
    %c0_i32_0 = arith.constant 0 : i32
    return %c0_i32, %arg0 : i32, i32
  }
}

</mosaic_0001>

<bundles_post_ra>
// kernel: tpu_custom_call.1
= control target key start
LH: loop header
LB: loop body
LE: loop exit
PB: predicated region body
PF: predicated region fallthrough
CT: control target
= control target key end

     0   :  { %14 = vsyncpa [#allocation3], 0  ;;  %s6435_s0 = inlined_call_operand.hbm [shape: f32[2,88], index: 0, kind: input, shape index: {}]   ;;  %s6436_s1 = inlined_call_operand.hbm [shape: bf16[2,88,512], index: 1, kind: input, shape index: {}]   ;;  %s6437_s2 = inlined_call_operand.vmem [shape: f32[2,1,512], index: 2, kind: input, shape index: {}]   ;;  %s6438_s3 = inlined_call_operand.hbm [shape: bf16[2,512,512], index: 3, kind: input, shape index: {}]   ;;  %s6439_s4 = inlined_call_operand.vmem [shape: f32[2,1,512], index: 4, kind: input, shape index: {}]   ;;  %s6440_s5 = inlined_call_operand.hbm [shape: bf16[2,512,512], index: 5, kind: input, shape index: {}]   ;;  %s6441_s6 = inlined_call_operand.vmem [shape: f32[2,1,512], index: 6, kind: input, shape index: {}]   ;;  %s6442_s7 = inlined_call_operand.vmem [shape: bf16[2,1,512], index: 7, kind: input, shape index: {}]   ;;  %s6443_s8 = inlined_call_operand.vmem [shape: f32[2,1], index: 8, kind: input, shape index: {}]   ;;  %s6444_s9 = inlined_call_operand.hbm [shape: f32[2,2], index: 9, kind: output, shape index: {}]  }
   0x1   :  { %15 = vsyncpa [#allocation6], 0 }
   0x2   :  { %16 = vsyncpa [#allocation9], 0 }
   0x3   :  { %17 = vsyncpa [#allocation4], 0  ;;  %s6149_s30 = smov [#allocation5]  }
   0x4   :  { %s33_s10 = sshll.u32 %s6149_s30, 4  ;;  %s34_s10 = int_to_ptr.vmem [resolvable:$true] %s33_s10 }
   0x5   :  { %s6049_s11 = scalar_lea.vmem %s34_s10, 5632  ;;  %p6054_p1 = scmp.lt.s32.totalorder %s34_s10, %s34_s10 }
   0x6   :  { %p6050_p0 = scmp.ne.s32.totalorder %s34_s10, %s6049_s11  ;;  %p6055_p2 = scmp.lt.s32.totalorder %s6049_s11, %s6049_s11 }
   0x8   :  { %p6056_p3 = por %p6055_p2, %p6054_p1 }
   0xa   :  { %p6057_p4 = pnand %p6056_p3, %p6050_p0 }
   0xc   :  { %6060 = shalt.err (!%p6057_p4)
}
   0xd   :  { %s6150_s12 = smov 256   ;;  %s6151_s13 = smov 16  }
   0xe   :  { %39 = dma.hbm_to_vmem [thread:$0]  %s6436_s1, 5632, %s34_s10, [#allocation6], %s6150_s12, %s6150_s12, %s6151_s13  }
   0xf   :  { %s6152_s16 = smov [#allocation2]   ;;  %s6153_s18 = smov [#allocation7]  }
  0x10   :  { %s24_s17 = sshll.u32 %s6152_s16, 4  ;;  %s47_s19 = sshll.u32 %s6153_s18, 4  ;;  %s25_s17 = int_to_ptr.vmem [resolvable:$true] %s24_s17  ;;  %s48_s19 = int_to_ptr.vmem [resolvable:$true] %s47_s19 }
  0x11   :  { %s6069_s20 = scalar_lea.vmem %s25_s17, 32  ;;  %p6074_p6 = scmp.lt.s32.totalorder %s25_s17, %s25_s17 }
  0x12   :  { %p6070_p5 = scmp.ne.s32.totalorder %s25_s17, %s6069_s20  ;;  %p6075_p7 = scmp.lt.s32.totalorder %s6069_s20, %s6069_s20 }
  0x14   :  { %p6076_p8 = por %p6075_p7, %p6074_p6 }
  0x16   :  { %p6077_p9 = pnand %p6076_p8, %p6070_p5 }
  0x18   :  { %6080 = shalt.err (!%p6077_p9)
}
  0x19   :  { %27 = dma.hbm_to_vmem [thread:$0]  %s6435_s0, 32, %s25_s17, [#allocation3]  }
  0x1a   :  { %s6089_s23 = scalar_lea.vmem %s48_s19, 32768  ;;  %p6094_p11 = scmp.lt.s32.totalorder %s48_s19, %s48_s19 }
  0x1b   :  { %p6090_p10 = scmp.ne.s32.totalorder %s48_s19, %s6089_s23  ;;  %p6095_p12 = scmp.lt.s32.totalorder %s6089_s23, %s6089_s23 }
  0x1d   :  { %p6096_p13 = por %p6095_p12, %p6094_p11 }
  0x1f   :  { %p6097_p0 = pnand %p6096_p13, %p6090_p10 }
  0x21   :  { %6100 = shalt.err (!%p6097_p0)
}
  0x22   :  { %53 = dma.hbm_to_vmem [thread:$0]  %s6438_s3, 32768, %s48_s19, [#allocation6], %s6150_s12, %s6150_s12, %s6151_s13  }
  0x23   :  { %s6154_s25 = smov [#allocation8]  }
  0x24   :  { %s61_s26 = sshll.u32 %s6154_s25, 4  ;;  %s62_s26 = int_to_ptr.vmem [resolvable:$true] %s61_s26 }
  0x25   :  { %s6109_s27 = scalar_lea.vmem %s62_s26, 32768  ;;  %p6114_p2 = scmp.lt.s32.totalorder %s62_s26, %s62_s26 }
  0x26   :  { %p6110_p1 = scmp.ne.s32.totalorder %s62_s26, %s6109_s27  ;;  %p6115_p3 = scmp.lt.s32.totalorder %s6109_s27, %s6109_s27 }
  0x28   :  { %p6116_p4 = por %p6115_p3, %p6114_p2 }
  0x2a   :  { %p6117_p5 = pnand %p6116_p4, %p6110_p1 }
  0x2c   :  { %6120 = shalt.err (!%p6117_p5)
}
  0x2d   :  { %67 = dma.hbm_to_vmem [thread:$0]  %s6440_s5, 32768, %s62_s26, [#allocation9], %s6150_s12, %s6150_s12, %s6151_s13  }
  0x2e   :  { %6141 = dma.done.wait [#allocation3], 32  }
  0x2f   :  { %6142 = vsyncadd [#allocation3], 4294967264 }
  0x30   :  { %6143 = dma.done.wait [#allocation6], 38400  }
  0x31   :  { %6144 = vsyncadd [#allocation6], 4294928896 }
  0x32   :  { %6145 = dma.done.wait [#allocation9], 32768  }
  0x33   :  { %6146 = vsyncadd [#allocation9], 4294934528  ;;  %v6155_v0 = vmov 0   ;;  %v113_v1 = vld [vmem:[#allocation5 + $0xa0] sm:$0xff]  ;;  %vm251_vm0 = vcmask 1043456   ;;  %v114_v2 = vld [vmem:[#allocation5 + $0xa8] sm:$0xff] }
  0x34   :  { %296 = vmatprep.mubr.bf16.mxu0 %v6155_v0  ;;  %337 = vmatprep.mubr.bf16.mxu1 %v6155_v0  ;;  %v4640_v3 = vcombine.high %v113_v1, %v113_v1  ;;  %v4642_v4 = vcombine.high %v114_v2, %v114_v2  ;;  %v4639_v5 = vcombine.low %v113_v1, %v113_v1  ;;  %v5208_v7 = vld [vmem:[#allocation5 + $0x84] ss:$16 sps:$4 sm:$0xff]   ;;  %v5210_v8 = vld [vmem:[#allocation5 + $0x8c] ss:$16 sps:$4 sm:$0xff]   ;;  %v5212_v11 = vld [vmem:[#allocation5 + $0x80] ss:$16 sps:$4 sm:$0xff]  }
  0x35   :  { %5202 = vset.pattern.permute.xlu1 %v6155_v0  ;;  %5203 = vset.pattern.permute.xlu0 %v6155_v0  ;;  %v4641_v6 = vcombine.low %v114_v2, %v114_v2  ;;  %v5213_v12 = vld [vmem:[#allocation5 + $0x88] ss:$16 sps:$4 sm:$0xff]   ;;  %v5214_v13 = vld [vmem:[#allocation5 + $0x64] ss:$16 sps:$4 sm:$0xff]   ;;  %v5216_v14 = vld [vmem:[#allocation5 + $0x6c] ss:$16 sps:$4 sm:$0xff]  }
  0x36   :  { %4643 = vmatprep.subr.msk.bf16.mxu0 %vm251_vm0, %v4640_v3  ;;  %4645 = vmatprep.subr.msk.bf16.mxu1 %vm251_vm0, %v4642_v4  ;;  %v253_v9 = vsel %vm251_vm0, %v4639_v5, 0  ;;  %v5218_v15 = vld [vmem:[#allocation5 + $0x60] ss:$16 sps:$4 sm:$0xff]   ;;  %v5219_v16 = vld [vmem:[#allocation5 + $0x68] ss:$16 sps:$4 sm:$0xff]   ;;  %vm247_vm1 = vcmask 719872  }
  0x37   :  { %v259_v10 = vsel %vm251_vm0, %v4641_v6, 0  ;;  %269 = vmatpush1.bf16.msra.mxu0 %v253_v9  ;;  %v5220_v17 = vld [vmem:[#allocation5 + $0x44] ss:$16 sps:$4 sm:$0xff]   ;;  %v5222_v18 = vld [vmem:[#allocation5 + $0x4c] ss:$16 sps:$4 sm:$0xff]   ;;  %vm2315_vm2 = vcmask 1041408  }
  0x38   :  { %310 = vmatpush1.bf16.msra.mxu1 %v259_v10  ;;  %270 = vmatprep.subr.bf16.mxu0 %v5208_v7  ;;  %v5224_v19 = vld [vmem:[#allocation5 + $0x40] ss:$16 sps:$4 sm:$0xff]   ;;  %v5225_v20 = vld [vmem:[#allocation5 + $0x48] ss:$16 sps:$4 sm:$0xff]   ;;  %v5226_v21 = vld [vmem:[#allocation5 + $0x24] ss:$16 sps:$4 sm:$0xff]  }
  0x39   :  { %311 = vmatprep.subr.bf16.mxu1 %v5210_v8  ;;  %v5228_v22 = vld [vmem:[#allocation5 + $0x2c] ss:$16 sps:$4 sm:$0xff]   ;;  %v5230_v23 = vld [vmem:[#allocation5 + $0x20] ss:$16 sps:$4 sm:$0xff]   ;;  %v5231_v24 = vld [vmem:[#allocation5 + $0x28] ss:$16 sps:$4 sm:$0xff]  }
  0x3a   :  { %v5232_v25 = vld [vmem:[#allocation5 + $0x4] ss:$16 sps:$4 sm:$0xff]   ;;  %v5234_v26 = vld [vmem:[#allocation5 + $0xc] ss:$16 sps:$4 sm:$0xff]   ;;  %v5236_v27 = vld [vmem:[#allocation5] ss:$16 sps:$4 sm:$0xff]  }
  0x3b   :  { %271 = vmatpush1.bf16.msra.mxu0 %v5212_v11  ;;  %v5237_v28 = vld [vmem:[#allocation5 + $0x8] ss:$16 sps:$4 sm:$0xff]   ;;  %v87_v29 = vld [vmem:[#allocation2] sm:$0x3]  ;;  %v5240_v30 = vld [vmem:[#allocation7 + $0xe4] ss:$16 sps:$4 sm:$0xff]  }
  0x3c   :  { %312 = vmatpush1.bf16.msra.mxu1 %v5213_v12  ;;  %272 = vmatprep.subr.bf16.mxu0 %v5214_v13  ;;  %v5243_v31 = vld [vmem:[#allocation7 + $0x2e4] ss:$16 sps:$4 sm:$0xff]   ;;  %v6236_v32 = vpack.c.bf16 %v87_v29, %v87_v29  ;;  %v5238_v33 = vld [vmem:[#allocation7 + $0xe0] ss:$16 sps:$4 sm:$0xff]   ;;  %vm2347_vm3 = vcmask 8192  }
  0x3d   :  { %313 = vmatprep.subr.bf16.mxu1 %v5216_v14  ;;  %v5241_v34 = vld [vmem:[#allocation7 + $0x2e0] ss:$16 sps:$4 sm:$0xff]   ;;  %v5246_v35 = vld [vmem:[#allocation7 + $0xc4] ss:$16 sps:$4 sm:$0xff]  }
  0x3e   :  { %v5249_v36 = vld [vmem:[#allocation7 + $0x2c4] ss:$16 sps:$4 sm:$0xff]   ;;  %v5244_v37 = vld [vmem:[#allocation7 + $0xc0] ss:$16 sps:$4 sm:$0xff]  }
  0x3f   :  { %273 = vmatpush1.bf16.msra.mxu0 %v5218_v15  ;;  %v5247_v38 = vld [vmem:[#allocation7 + $0x2c0] ss:$16 sps:$4 sm:$0xff]   ;;  %v5252_v39 = vld [vmem:[#allocation7 + $0xa4] ss:$16 sps:$4 sm:$0xff]  }
  0x40   :  { %314 = vmatpush1.bf16.msra.mxu1 %v5219_v16  ;;  %274 = vmatprep.subr.bf16.mxu0 %v5220_v17  ;;  %v5255_v40 = vld [vmem:[#allocation7 + $0x2a4] ss:$16 sps:$4 sm:$0xff]   ;;  %v5250_v41 = vld [vmem:[#allocation7 + $0xa0] ss:$16 sps:$4 sm:$0xff]  }
  0x41   :  { %315 = vmatprep.subr.bf16.mxu1 %v5222_v18  ;;  %v5253_v42 = vld [vmem:[#allocation7 + $0x2a0] ss:$16 sps:$4 sm:$0xff]   ;;  %v5258_v43 = vld [vmem:[#allocation7 + $0x84] ss:$16 sps:$4 sm:$0xff]  }
  0x42   :  { %v5261_v44 = vld [vmem:[#allocation7 + $0x284] ss:$16 sps:$4 sm:$0xff]   ;;  %v5256_v45 = vld [vmem:[#allocation7 + $0x80] ss:$16 sps:$4 sm:$0xff]  }
  0x43   :  { %275 = vmatpush1.bf16.msra.mxu0 %v5224_v19  ;;  %v5259_v46 = vld [vmem:[#allocation7 + $0x280] ss:$16 sps:$4 sm:$0xff]   ;;  %v5264_v47 = vld [vmem:[#allocation7 + $0x64] ss:$16 sps:$4 sm:$0xff]  }
  0x44   :  { %316 = vmatpush1.bf16.msra.mxu1 %v5225_v20  ;;  %276 = vmatprep.subr.bf16.mxu0 %v5226_v21  ;;  %v5267_v48 = vld [vmem:[#allocation7 + $0x264] ss:$16 sps:$4 sm:$0xff]   ;;  %v5262_v49 = vld [vmem:[#allocation7 + $0x60] ss:$16 sps:$4 sm:$0xff]  }
  0x45   :  { %317 = vmatprep.subr.bf16.mxu1 %v5228_v22  ;;  %v5265_v50 = vld [vmem:[#allocation7 + $0x260] ss:$16 sps:$4 sm:$0xff]   ;;  %v5270_v51 = vld [vmem:[#allocation7 + $0x44] ss:$16 sps:$4 sm:$0xff]  }
  0x46   :  { %v5273_v52 = vld [vmem:[#allocation7 + $0x244] ss:$16 sps:$4 sm:$0xff]   ;;  %v5268_v53 = vld [vmem:[#allocation7 + $0x40] ss:$16 sps:$4 sm:$0xff]  }
  0x47   :  { %277 = vmatpush1.bf16.msra.mxu0 %v5230_v23  ;;  %v5271_v54 = vld [vmem:[#allocation7 + $0x240] ss:$16 sps:$4 sm:$0xff]   ;;  %v5276_v55 = vld [vmem:[#allocation7 + $0x24] ss:$16 sps:$4 sm:$0xff]  }
  0x48   :  { %318 = vmatpush1.bf16.msra.mxu1 %v5231_v24  ;;  %278 = vmatprep.subr.bf16.mxu0 %v5232_v25  ;;  %v5279_v56 = vld [vmem:[#allocation7 + $0x224] ss:$16 sps:$4 sm:$0xff]   ;;  %v5274_v57 = vld [vmem:[#allocation7 + $0x20] ss:$16 sps:$4 sm:$0xff]  }
  0x49   :  { %319 = vmatprep.subr.bf16.mxu1 %v5234_v26  ;;  %v5277_v58 = vld [vmem:[#allocation7 + $0x220] ss:$16 sps:$4 sm:$0xff]   ;;  %v5282_v59 = vld [vmem:[#allocation7 + $0x4] ss:$16 sps:$4 sm:$0xff]  }
  0x4a   :  { %v5285_v60 = vld [vmem:[#allocation7 + $0x204] ss:$16 sps:$4 sm:$0xff]   ;;  %v5280_v61 = vld [vmem:[#allocation7] ss:$16 sps:$4 sm:$0xff]  }
  0x4b   :  { %279 = vmatpush1.bf16.msra.mxu0 %v5236_v27  ;;  %v5283_v62 = vld [vmem:[#allocation7 + $0x200] ss:$16 sps:$4 sm:$0xff]   ;;  %v5288_v63 = vld [vmem:[#allocation7 + $0x1e4] ss:$16 sps:$4 sm:$0xff]  }
  0x4c   :  { %320 = vmatpush1.bf16.msra.mxu1 %v5237_v28  ;;  %1144 = vmatprep.subr.bf16.mxu0 %v5240_v30  ;;  %v5291_v1 = vld [vmem:[#allocation7 + $0x3e4] ss:$16 sps:$4 sm:$0xff]   ;;  %v5286_v2 = vld [vmem:[#allocation7 + $0x1e0] ss:$16 sps:$4 sm:$0xff]  }
  0x4d   :  { %1185 = vmatprep.subr.bf16.mxu1 %v5243_v31  ;;  %v5289_v3 = vld [vmem:[#allocation7 + $0x3e0] ss:$16 sps:$4 sm:$0xff]   ;;  %v5294_v4 = vld [vmem:[#allocation7 + $0x1c4] ss:$16 sps:$4 sm:$0xff]  }
  0x4e   :  { %4644 = vmatmul.mubr.msk.bf16.vlgmr.msra.gmra.mxu0 %vm247_vm1, %v6236_v32  ;;  %v5297_v5 = vld [vmem:[#allocation7 + $0x3c4] ss:$16 sps:$4 sm:$0xff]   ;;  %v5292_v6 = vld [vmem:[#allocation7 + $0x1c0] ss:$16 sps:$4 sm:$0xff]  }
  0x4f   :  { %4646 = vmatmul.mubr.msk.bf16.vlgmr.msra.gmra.mxu1 %vm247_vm1, %v6236_v32  ;;  %1145 = vmatpush1.bf16.msra.mxu0 %v5238_v33  ;;  %v5295_v7 = vld [vmem:[#allocation7 + $0x3c0] ss:$16 sps:$4 sm:$0xff]   ;;  %v5300_v8 = vld [vmem:[#allocation7 + $0x1a4] ss:$16 sps:$4 sm:$0xff]   ;;  %v5336_v33 = vld [vmem:[#allocation7 + $0xec] ss:$16 sps:$4 sm:$0xff]  }
  0x50   :  { %1186 = vmatpush1.bf16.msra.mxu1 %v5241_v34  ;;  %1146 = vmatprep.subr.bf16.mxu0 %v5246_v35  ;;  %v5303_v9 = vld [vmem:[#allocation7 + $0x3a4] ss:$16 sps:$4 sm:$0xff]   ;;  %v5298_v10 = vld [vmem:[#allocation7 + $0x1a0] ss:$16 sps:$4 sm:$0xff]   ;;  %v5339_v34 = vld [vmem:[#allocation7 + $0x2ec] ss:$16 sps:$4 sm:$0xff]   ;;  %v117_v35 = vlaneseq }
  0x51   :  { %1187 = vmatprep.subr.bf16.mxu1 %v5249_v36  ;;  %v5301_v11 = vld [vmem:[#allocation7 + $0x3a0] ss:$16 sps:$4 sm:$0xff]   ;;  %v5306_v12 = vld [vmem:[#allocation7 + $0x184] ss:$16 sps:$4 sm:$0xff]  }
  0x52   :  { %v5309_v13 = vld [vmem:[#allocation7 + $0x384] ss:$16 sps:$4 sm:$0xff]   ;;  %v5304_v14 = vld [vmem:[#allocation7 + $0x180] ss:$16 sps:$4 sm:$0xff]   ;;  %v6243_v36 = vshrl.u32 %v117_v35, 7 }
  0x53   :  { %1147 = vmatpush1.bf16.msra.mxu0 %v5244_v37  ;;  %v5307_v15 = vld [vmem:[#allocation7 + $0x380] ss:$16 sps:$4 sm:$0xff]   ;;  %v5312_v16 = vld [vmem:[#allocation7 + $0x164] ss:$16 sps:$4 sm:$0xff]  }
  0x54   :  { %1188 = vmatpush1.bf16.msra.mxu1 %v5247_v38  ;;  %1148 = vmatprep.subr.bf16.mxu0 %v5252_v39  ;;  %v5315_v17 = vld [vmem:[#allocation7 + $0x364] ss:$16 sps:$4 sm:$0xff]   ;;  %v5310_v18 = vld [vmem:[#allocation7 + $0x160] ss:$16 sps:$4 sm:$0xff]   ;;  %v6249_v38 = vsub.s32 0, %v6243_v36  ;;  %v6252_v39 = vsub.s32 2, %v6243_v36 }
  0x55   :  { %1189 = vmatprep.subr.bf16.mxu1 %v5255_v40  ;;  %v5313_v19 = vld [vmem:[#allocation7 + $0x360] ss:$16 sps:$4 sm:$0xff]   ;;  %v5318_v20 = vld [vmem:[#allocation7 + $0x144] ss:$16 sps:$4 sm:$0xff]   ;;  %v6255_v40 = vsub.s32 1, %v6243_v36 }
  0x56   :  { %v5321_v21 = vld [vmem:[#allocation7 + $0x344] ss:$16 sps:$4 sm:$0xff]   ;;  %v5316_v22 = vld [vmem:[#allocation7 + $0x140] ss:$16 sps:$4 sm:$0xff]  }
  0x57   :  { %1149 = vmatpush1.bf16.msra.mxu0 %v5250_v41  ;;  %v5319_v23 = vld [vmem:[#allocation7 + $0x340] ss:$16 sps:$4 sm:$0xff]   ;;  %v5324_v24 = vld [vmem:[#allocation7 + $0x124] ss:$16 sps:$4 sm:$0xff]   ;;  %v6258_v41 = vsub.s32 3, %v6243_v36 }
  0x58   :  { %1190 = vmatpush1.bf16.msra.mxu1 %v5253_v42  ;;  %1150 = vmatprep.subr.bf16.mxu0 %v5258_v43  ;;  %v5327_v25 = vld [vmem:[#allocation7 + $0x324] ss:$16 sps:$4 sm:$0xff]   ;;  %v5322_v26 = vld [vmem:[#allocation7 + $0x120] ss:$16 sps:$4 sm:$0xff]  }
  0x59   :  { %1191 = vmatprep.subr.bf16.mxu1 %v5261_v44  ;;  %v5325_v27 = vld [vmem:[#allocation7 + $0x320] ss:$16 sps:$4 sm:$0xff]   ;;  %v5330_v28 = vld [vmem:[#allocation7 + $0x104] ss:$16 sps:$4 sm:$0xff]  }
  0x5a   :  { %v5333_v29 = vld [vmem:[#allocation7 + $0x304] ss:$16 sps:$4 sm:$0xff]   ;;  %v5328_v30 = vld [vmem:[#allocation7 + $0x100] ss:$16 sps:$4 sm:$0xff]  }
  0x5b   :  { %1151 = vmatpush1.bf16.msra.mxu0 %v5256_v45  ;;  %v5331_v31 = vld [vmem:[#allocation7 + $0x300] ss:$16 sps:$4 sm:$0xff]  }
  0x5c   :  { %1192 = vmatpush1.bf16.msra.mxu1 %v5259_v46  ;;  %1152 = vmatprep.subr.bf16.mxu0 %v5264_v47  ;;  %v115_v37 = vld [vmem:[%s6437_s2] sm:$0xf] }
  0x5d   :  { %1193 = vmatprep.subr.bf16.mxu1 %v5267_v48  ;;  %v120_v42 = vrot.slane %v115_v37, %v6249_v38  ;;  %v128_v43 = vrot.slane %v115_v37, %v6252_v39  ;;  %v124_v44 = vrot.slane %v115_v37, %v6255_v40  ;;  %v132_v45 = vrot.slane %v115_v37, %v6258_v41  ;;  %v5387_v37 = vld [vmem:[#allocation7 + $0x3ec] ss:$16 sps:$4 sm:$0xff]  }
  0x5f   :  { %1153 = vmatpush1.bf16.msra.mxu0 %v5262_v49 }
  0x60   :  { %1194 = vmatpush1.bf16.msra.mxu1 %v5265_v50  ;;  %1154 = vmatprep.subr.bf16.mxu0 %v5270_v51 }
  0x61   :  { %1195 = vmatprep.subr.bf16.mxu1 %v5273_v52 }
  0x63   :  { %1155 = vmatpush1.bf16.msra.mxu0 %v5268_v53 }
  0x64   :  { %1196 = vmatpush1.bf16.msra.mxu1 %v5271_v54  ;;  %1156 = vmatprep.subr.bf16.mxu0 %v5276_v55 }
  0x65   :  { %1197 = vmatprep.subr.bf16.mxu1 %v5279_v56 }
  0x67   :  { %1157 = vmatpush1.bf16.msra.mxu0 %v5274_v57 }
  0x68   :  { %1198 = vmatpush1.bf16.msra.mxu1 %v5277_v58  ;;  %1158 = vmatprep.subr.bf16.mxu0 %v5282_v59 }
  0x69   :  { %1199 = vmatprep.subr.bf16.mxu1 %v5285_v60  ;;  %v5334_v60 = vld [vmem:[#allocation7 + $0xe8] ss:$16 sps:$4 sm:$0xff]  }
  0x6b   :  { %1159 = vmatpush1.bf16.msra.mxu0 %v5280_v61  ;;  %v5337_v61 = vld [vmem:[#allocation7 + $0x2e8] ss:$16 sps:$4 sm:$0xff]  }
  0x6c   :  { %1200 = vmatpush1.bf16.msra.mxu1 %v5283_v62  ;;  %1160 = vmatprep.subr.bf16.mxu0 %v5288_v63 }
  0x6d   :  { %1201 = vmatprep.subr.bf16.mxu1 %v5291_v1 }
  0x6f   :  { %1161 = vmatpush2.bf16.msra.mxu0 %v5286_v2 }
  0x70   :  { %1202 = vmatpush2.bf16.msra.mxu1 %v5289_v3  ;;  %1162 = vmatprep.subr.bf16.mxu0 %v5294_v4  ;;  %v5342_v4 = vld [vmem:[#allocation7 + $0xcc] ss:$16 sps:$4 sm:$0xff]  }
  0x71   :  { %1203 = vmatprep.subr.bf16.mxu1 %v5297_v5  ;;  %v5345_v5 = vld [vmem:[#allocation7 + $0x2cc] ss:$16 sps:$4 sm:$0xff]  }
  0x73   :  { %1163 = vmatpush2.bf16.msra.mxu0 %v5292_v6 }
  0x74   :  { %1204 = vmatpush2.bf16.msra.mxu1 %v5295_v7  ;;  %1164 = vmatprep.subr.bf16.mxu0 %v5300_v8  ;;  %v5340_v7 = vld [vmem:[#allocation7 + $0xc8] ss:$16 sps:$4 sm:$0xff]  }
  0x75   :  { %1205 = vmatprep.subr.bf16.mxu1 %v5303_v9  ;;  %v5343_v8 = vld [vmem:[#allocation7 + $0x2c8] ss:$16 sps:$4 sm:$0xff]   ;;  %v5348_v9 = vld [vmem:[#allocation7 + $0xac] ss:$16 sps:$4 sm:$0xff]  }
  0x77   :  { %1165 = vmatpush2.bf16.msra.mxu0 %v5298_v10  ;;  %v5351_v10 = vld [vmem:[#allocation7 + $0x2ac] ss:$16 sps:$4 sm:$0xff]  }
  0x78   :  { %1206 = vmatpush2.bf16.msra.mxu1 %v5301_v11  ;;  %1166 = vmatprep.subr.bf16.mxu0 %v5306_v12  ;;  %v5346_v11 = vld [vmem:[#allocation7 + $0xa8] ss:$16 sps:$4 sm:$0xff]  }
  0x79   :  { %1207 = vmatprep.subr.bf16.mxu1 %v5309_v13  ;;  %v5349_v12 = vld [vmem:[#allocation7 + $0x2a8] ss:$16 sps:$4 sm:$0xff]   ;;  %v5354_v13 = vld [vmem:[#allocation7 + $0x8c] ss:$16 sps:$4 sm:$0xff]  }
  0x7b   :  { %1167 = vmatpush2.bf16.msra.mxu0 %v5304_v14  ;;  %v5357_v14 = vld [vmem:[#allocation7 + $0x28c] ss:$16 sps:$4 sm:$0xff]  }
  0x7c   :  { %1208 = vmatpush2.bf16.msra.mxu1 %v5307_v15  ;;  %1168 = vmatprep.subr.bf16.mxu0 %v5312_v16  ;;  %v5352_v15 = vld [vmem:[#allocation7 + $0x88] ss:$16 sps:$4 sm:$0xff]  }
  0x7d   :  { %1209 = vmatprep.subr.bf16.mxu1 %v5315_v17  ;;  %v5355_v16 = vld [vmem:[#allocation7 + $0x288] ss:$16 sps:$4 sm:$0xff]   ;;  %v5360_v17 = vld [vmem:[#allocation7 + $0x6c] ss:$16 sps:$4 sm:$0xff]  }
  0x7f   :  { %1169 = vmatpush2.bf16.msra.mxu0 %v5310_v18  ;;  %v5363_v18 = vld [vmem:[#allocation7 + $0x26c] ss:$16 sps:$4 sm:$0xff]  }
  0x80   :  { %1210 = vmatpush2.bf16.msra.mxu1 %v5313_v19  ;;  %1170 = vmatprep.subr.bf16.mxu0 %v5318_v20  ;;  %v5358_v19 = vld [vmem:[#allocation7 + $0x68] ss:$16 sps:$4 sm:$0xff]  }
  0x81   :  { %1211 = vmatprep.subr.bf16.mxu1 %v5321_v21  ;;  %v5361_v20 = vld [vmem:[#allocation7 + $0x268] ss:$16 sps:$4 sm:$0xff]   ;;  %v5366_v21 = vld [vmem:[#allocation7 + $0x4c] ss:$16 sps:$4 sm:$0xff]  }
  0x83   :  { %1171 = vmatpush2.bf16.msra.mxu0 %v5316_v22  ;;  %v5369_v22 = vld [vmem:[#allocation7 + $0x24c] ss:$16 sps:$4 sm:$0xff]  }
  0x84   :  { %1212 = vmatpush2.bf16.msra.mxu1 %v5319_v23  ;;  %1172 = vmatprep.subr.bf16.mxu0 %v5324_v24  ;;  %v5364_v23 = vld [vmem:[#allocation7 + $0x48] ss:$16 sps:$4 sm:$0xff]  }
  0x85   :  { %1213 = vmatprep.subr.bf16.mxu1 %v5327_v25  ;;  %v5367_v24 = vld [vmem:[#allocation7 + $0x248] ss:$16 sps:$4 sm:$0xff]   ;;  %v5372_v25 = vld [vmem:[#allocation7 + $0x2c] ss:$16 sps:$4 sm:$0xff]  }
  0x87   :  { %1173 = vmatpush2.bf16.msra.mxu0 %v5322_v26  ;;  %v5375_v26 = vld [vmem:[#allocation7 + $0x22c] ss:$16 sps:$4 sm:$0xff]  }
  0x88   :  { %1214 = vmatpush2.bf16.msra.mxu1 %v5325_v27  ;;  %1174 = vmatprep.subr.bf16.mxu0 %v5330_v28  ;;  %v5370_v27 = vld [vmem:[#allocation7 + $0x28] ss:$16 sps:$4 sm:$0xff]  }
  0x89   :  { %1215 = vmatprep.subr.bf16.mxu1 %v5333_v29  ;;  %v5373_v28 = vld [vmem:[#allocation7 + $0x228] ss:$16 sps:$4 sm:$0xff]   ;;  %v5378_v29 = vld [vmem:[#allocation7 + $0xc] ss:$16 sps:$4 sm:$0xff]  }
  0x8b   :  { %1175 = vmatpush2.bf16.msra.mxu0 %v5328_v30  ;;  %v5381_v30 = vld [vmem:[#allocation7 + $0x20c] ss:$16 sps:$4 sm:$0xff]  }
  0x8c   :  { %1216 = vmatpush2.bf16.msra.mxu1 %v5331_v31  ;;  %1226 = vmatprep.subr.bf16.mxu0 %v5336_v33  ;;  %v5376_v31 = vld [vmem:[#allocation7 + $0x8] ss:$16 sps:$4 sm:$0xff]  }
  0x8d   :  { %1267 = vmatprep.subr.bf16.mxu1 %v5339_v34  ;;  %v5379_v33 = vld [vmem:[#allocation7 + $0x208] ss:$16 sps:$4 sm:$0xff]   ;;  %v5384_v34 = vld [vmem:[#allocation7 + $0x1ec] ss:$16 sps:$4 sm:$0xff]  }
 0x10e   :  { %v298_v46 = vpop.f32.mrf.mxu0 }
 0x10f   :  { %v339_v47 = vpop.f32.mrf.mxu1  ;;  %v299_v48 = vadd.f32 %v298_v46, %v120_v42  ;;  %v5382_v42 = vld [vmem:[#allocation7 + $0x1e8] ss:$16 sps:$4 sm:$0xff]  }
 0x110   :  { %v340_v49 = vadd.f32 %v339_v47, %v128_v43  ;;  %v300_v50 = vpop.f32.mrf.mxu0  ;;  %v5385_v43 = vld [vmem:[#allocation7 + $0x3e8] ss:$16 sps:$4 sm:$0xff]  }
 0x111   :  { %v341_v51 = vpop.f32.mrf.mxu1  ;;  %v301_v53 = vadd.f32 %v300_v50, %v124_v44  ;;  %v346_v55 = vmax.f32 %v299_v48, 0.0  ;;  %v5390_v44 = vld [vmem:[#allocation7 + $0x1cc] ss:$16 sps:$4 sm:$0xff]   ;;  %v5388_v46 = vld [vmem:[#allocation7 + $0x1c8] ss:$16 sps:$4 sm:$0xff]  }
 0x112   :  { %v348_v52 = vmax.f32 %v340_v49, 0.0  ;;  %v342_v54 = vadd.f32 %v341_v51, %v132_v45  ;;  %v302_v56 = vpop.f32.mrf.mxu0  ;;  %v5393_v45 = vld [vmem:[#allocation7 + $0x3cc] ss:$16 sps:$4 sm:$0xff]   ;;  %v5391_v47 = vld [vmem:[#allocation7 + $0x3c8] ss:$16 sps:$4 sm:$0xff]  }
 0x113   :  { %v343_v57 = vpop.f32.mrf.mxu1  ;;  %v347_v58 = vmax.f32 %v301_v53, 0.0  ;;  %v6266_v6 = vpack.c.bf16 %v346_v55, %v346_v55  ;;  %v5396_v48 = vld [vmem:[#allocation7 + $0x1ac] ss:$16 sps:$4 sm:$0xff]   ;;  %v5394_v50 = vld [vmem:[#allocation7 + $0x1a8] ss:$16 sps:$4 sm:$0xff]  }
 0x114   :  { %v349_v59 = vmax.f32 %v342_v54, 0.0  ;;  %v6264_v62 = vpack.c.bf16 %v348_v52, %v348_v52  ;;  %v303_v63 = vpop.f32.mrf.mxu0  ;;  %v5399_v49 = vld [vmem:[#allocation7 + $0x3ac] ss:$16 sps:$4 sm:$0xff]   ;;  %v5397_v51 = vld [vmem:[#allocation7 + $0x3a8] ss:$16 sps:$4 sm:$0xff]  }
 0x115   :  { %v344_v1 = vpop.f32.mrf.mxu1  ;;  %v351_v2 = vpack.c.bf16 %v347_v58, %v347_v58  ;;  %v5402_v52 = vld [vmem:[#allocation7 + $0x18c] ss:$16 sps:$4 sm:$0xff]   ;;  %v5400_v54 = vld [vmem:[#allocation7 + $0x188] ss:$16 sps:$4 sm:$0xff]  }
 0x116   :  { %v353_v3 = vpack.c.bf16 %v349_v59, %v349_v59  ;;  %v5405_v53 = vld [vmem:[#allocation7 + $0x38c] ss:$16 sps:$4 sm:$0xff]   ;;  %v5403_v55 = vld [vmem:[#allocation7 + $0x388] ss:$16 sps:$4 sm:$0xff]  }
 0x117   :  { %1176 = vmatprep.mubr.bf16.mxu0 %v351_v2  ;;  %v5408_v56 = vld [vmem:[#allocation7 + $0x16c] ss:$16 sps:$4 sm:$0xff]   ;;  %v5406_v58 = vld [vmem:[#allocation7 + $0x168] ss:$16 sps:$4 sm:$0xff]  }
 0x118   :  { %1217 = vmatprep.mubr.bf16.mxu1 %v353_v3  ;;  %1177 = vmatmul.mubr.bf16.vlgmr.msra.gmra.mxu0 %v6266_v6  ;;  %v5411_v57 = vld [vmem:[#allocation7 + $0x36c] ss:$16 sps:$4 sm:$0xff]   ;;  %v5409_v59 = vld [vmem:[#allocation7 + $0x368] ss:$16 sps:$4 sm:$0xff]  }
 0x119   :  { %1218 = vmatmul.mubr.bf16.vlgmr.msra.gmra.mxu1 %v6264_v62  ;;  %1227 = vmatpush1.bf16.msra.mxu0 %v5334_v60  ;;  %v5414_v60 = vld [vmem:[#allocation7 + $0x14c] ss:$16 sps:$4 sm:$0xff]   ;;  %v5412_v63 = vld [vmem:[#allocation7 + $0x148] ss:$16 sps:$4 sm:$0xff]  }
 0x11a   :  { %1268 = vmatpush1.bf16.msra.mxu1 %v5337_v61  ;;  %1258 = vmatprep.mubr.bf16.mxu0 %v351_v2  ;;  %v5417_v61 = vld [vmem:[#allocation7 + $0x34c] ss:$16 sps:$4 sm:$0xff]   ;;  %v5415_v1 = vld [vmem:[#allocation7 + $0x348] ss:$16 sps:$4 sm:$0xff]  }
 0x11b   :  { %1299 = vmatprep.mubr.bf16.mxu1 %v353_v3  ;;  %1228 = vmatprep.subr.bf16.mxu0 %v5342_v4  ;;  %v5420_v2 = vld [vmem:[#allocation7 + $0x12c] ss:$16 sps:$4 sm:$0xff]   ;;  %v5418_v4 = vld [vmem:[#allocation7 + $0x128] ss:$16 sps:$4 sm:$0xff]  }
 0x11c   :  { %1269 = vmatprep.subr.bf16.mxu1 %v5345_v5  ;;  %v5423_v3 = vld [vmem:[#allocation7 + $0x32c] ss:$16 sps:$4 sm:$0xff]   ;;  %v5421_v5 = vld [vmem:[#allocation7 + $0x328] ss:$16 sps:$4 sm:$0xff]  }
 0x11d   :  { %1229 = vmatpush1.bf16.msra.mxu0 %v5340_v7  ;;  %v5426_v7 = vld [vmem:[#allocation7 + $0x10c] ss:$16 sps:$4 sm:$0xff]  }
 0x11e   :  { %1270 = vmatpush1.bf16.msra.mxu1 %v5343_v8  ;;  %1230 = vmatprep.subr.bf16.mxu0 %v5348_v9  ;;  %v5429_v8 = vld [vmem:[#allocation7 + $0x30c] ss:$16 sps:$4 sm:$0xff]   ;;  %v5424_v9 = vld [vmem:[#allocation7 + $0x108] ss:$16 sps:$4 sm:$0xff]  }
 0x11f   :  { %1271 = vmatprep.subr.bf16.mxu1 %v5351_v10  ;;  %v5427_v10 = vld [vmem:[#allocation7 + $0x308] ss:$16 sps:$4 sm:$0xff]  }
 0x121   :  { %1231 = vmatpush1.bf16.msra.mxu0 %v5346_v11  ;;  %v5432_v11 = vld [vmem:[#allocation8 + $0xe4] ss:$16 sps:$4 sm:$0xff]  }
 0x122   :  { %1272 = vmatpush1.bf16.msra.mxu1 %v5349_v12  ;;  %1232 = vmatprep.subr.bf16.mxu0 %v5354_v13  ;;  %v5430_v12 = vld [vmem:[#allocation8 + $0xe0] ss:$16 sps:$4 sm:$0xff]   ;;  %v5435_v13 = vld [vmem:[#allocation8 + $0xc4] ss:$16 sps:$4 sm:$0xff]  }
 0x123   :  { %1273 = vmatprep.subr.bf16.mxu1 %v5357_v14  ;;  %v5433_v14 = vld [vmem:[#allocation8 + $0xc0] ss:$16 sps:$4 sm:$0xff]  }
 0x125   :  { %1233 = vmatpush1.bf16.msra.mxu0 %v5352_v15  ;;  %v5438_v15 = vld [vmem:[#allocation8 + $0xa4] ss:$16 sps:$4 sm:$0xff]  }
 0x126   :  { %1274 = vmatpush1.bf16.msra.mxu1 %v5355_v16  ;;  %1234 = vmatprep.subr.bf16.mxu0 %v5360_v17  ;;  %v5436_v16 = vld [vmem:[#allocation8 + $0xa0] ss:$16 sps:$4 sm:$0xff]   ;;  %v5441_v17 = vld [vmem:[#allocation8 + $0x84] ss:$16 sps:$4 sm:$0xff]  }
 0x127   :  { %1275 = vmatprep.subr.bf16.mxu1 %v5363_v18  ;;  %v5439_v18 = vld [vmem:[#allocation8 + $0x80] ss:$16 sps:$4 sm:$0xff]  }
 0x129   :  { %1235 = vmatpush1.bf16.msra.mxu0 %v5358_v19  ;;  %v5478_v19 = vld [vmem:[#allocation8 + $0x2e0] ss:$16 sps:$4 sm:$0xff]  }
 0x12a   :  { %1276 = vmatpush1.bf16.msra.mxu1 %v5361_v20  ;;  %1236 = vmatprep.subr.bf16.mxu0 %v5366_v21  ;;  %v5480_v20 = vld [vmem:[#allocation8 + $0x2e4] ss:$16 sps:$4 sm:$0xff]  }
 0x12b   :  { %1277 = vmatprep.subr.bf16.mxu1 %v5369_v22  ;;  %v5444_v21 = vld [vmem:[#allocation8 + $0x64] ss:$16 sps:$4 sm:$0xff]   ;;  %v5484_v22 = vld [vmem:[#allocation8 + $0x2c0] ss:$16 sps:$4 sm:$0xff]  }
 0x12d   :  { %1237 = vmatpush1.bf16.msra.mxu0 %v5364_v23  ;;  %v5447_v23 = vld [vmem:[#allocation8 + $0x44] ss:$16 sps:$4 sm:$0xff]  }
 0x12e   :  { %1278 = vmatpush1.bf16.msra.mxu1 %v5367_v24  ;;  %1238 = vmatprep.subr.bf16.mxu0 %v5372_v25  ;;  %v5445_v24 = vld [vmem:[#allocation8 + $0x40] ss:$16 sps:$4 sm:$0xff]  }
 0x12f   :  { %1279 = vmatprep.subr.bf16.mxu1 %v5375_v26  ;;  %v5490_v25 = vld [vmem:[#allocation8 + $0x2a0] ss:$16 sps:$4 sm:$0xff]   ;;  %v5492_v26 = vld [vmem:[#allocation8 + $0x2a4] ss:$16 sps:$4 sm:$0xff]  }
 0x131   :  { %1239 = vmatpush1.bf16.msra.mxu0 %v5370_v27  ;;  %v5450_v27 = vld [vmem:[#allocation8 + $0x24] ss:$16 sps:$4 sm:$0xff]  }
 0x132   :  { %1280 = vmatpush1.bf16.msra.mxu1 %v5373_v28  ;;  %1240 = vmatprep.subr.bf16.mxu0 %v5378_v29  ;;  %v5448_v28 = vld [vmem:[#allocation8 + $0x20] ss:$16 sps:$4 sm:$0xff]  }
 0x133   :  { %1281 = vmatprep.subr.bf16.mxu1 %v5381_v30  ;;  %v5496_v29 = vld [vmem:[#allocation8 + $0x280] ss:$16 sps:$4 sm:$0xff]   ;;  %v5498_v30 = vld [vmem:[#allocation8 + $0x284] ss:$16 sps:$4 sm:$0xff]  }
 0x135   :  { %1241 = vmatpush1.bf16.msra.mxu0 %v5376_v31  ;;  %v5453_v31 = vld [vmem:[#allocation8 + $0x4] ss:$16 sps:$4 sm:$0xff]  }
 0x136   :  { %1282 = vmatpush1.bf16.msra.mxu1 %v5379_v33  ;;  %1242 = vmatprep.subr.bf16.mxu0 %v5384_v34  ;;  %v5451_v33 = vld [vmem:[#allocation8] ss:$16 sps:$4 sm:$0xff]  }
 0x137   :  { %1283 = vmatprep.subr.bf16.mxu1 %v5387_v37  ;;  %v5502_v34 = vld [vmem:[#allocation8 + $0x260] ss:$16 sps:$4 sm:$0xff]   ;;  %v5504_v37 = vld [vmem:[#allocation8 + $0x264] ss:$16 sps:$4 sm:$0xff]  }
 0x139   :  { %1243 = vmatpush2.bf16.msra.mxu0 %v5382_v42  ;;  %v5456_v42 = vld [vmem:[#allocation8 + $0x1e4] ss:$16 sps:$4 sm:$0xff]  }
 0x13a   :  { %1284 = vmatpush2.bf16.msra.mxu1 %v5385_v43  ;;  %1244 = vmatprep.subr.bf16.mxu0 %v5390_v44  ;;  %v5454_v43 = vld [vmem:[#allocation8 + $0x1e0] ss:$16 sps:$4 sm:$0xff]  }
 0x13b   :  { %1285 = vmatprep.subr.bf16.mxu1 %v5393_v45  ;;  %v5508_v44 = vld [vmem:[#allocation8 + $0x240] ss:$16 sps:$4 sm:$0xff]   ;;  %v5510_v45 = vld [vmem:[#allocation8 + $0x244] ss:$16 sps:$4 sm:$0xff]  }
 0x13d   :  { %1245 = vmatpush2.bf16.msra.mxu0 %v5388_v46  ;;  %v5459_v46 = vld [vmem:[#allocation8 + $0x1c4] ss:$16 sps:$4 sm:$0xff]  }
 0x13e   :  { %1286 = vmatpush2.bf16.msra.mxu1 %v5391_v47  ;;  %1246 = vmatprep.subr.bf16.mxu0 %v5396_v48  ;;  %v5457_v47 = vld [vmem:[#allocation8 + $0x1c0] ss:$16 sps:$4 sm:$0xff]  }
 0x13f   :  { %1287 = vmatprep.subr.bf16.mxu1 %v5399_v49  ;;  %v5514_v48 = vld [vmem:[#allocation8 + $0x220] ss:$16 sps:$4 sm:$0xff]   ;;  %v5516_v49 = vld [vmem:[#allocation8 + $0x224] ss:$16 sps:$4 sm:$0xff]  }
 0x141   :  { %1247 = vmatpush2.bf16.msra.mxu0 %v5394_v50  ;;  %v5462_v50 = vld [vmem:[#allocation8 + $0x1a4] ss:$16 sps:$4 sm:$0xff]  }
 0x142   :  { %1288 = vmatpush2.bf16.msra.mxu1 %v5397_v51  ;;  %1248 = vmatprep.subr.bf16.mxu0 %v5402_v52  ;;  %v5460_v51 = vld [vmem:[#allocation8 + $0x1a0] ss:$16 sps:$4 sm:$0xff]  }
 0x143   :  { %1289 = vmatprep.subr.bf16.mxu1 %v5405_v53  ;;  %v5520_v52 = vld [vmem:[#allocation8 + $0x200] ss:$16 sps:$4 sm:$0xff]   ;;  %v5522_v53 = vld [vmem:[#allocation8 + $0x204] ss:$16 sps:$4 sm:$0xff]  }
 0x145   :  { %1249 = vmatpush2.bf16.msra.mxu0 %v5400_v54  ;;  %v5465_v54 = vld [vmem:[#allocation8 + $0x184] ss:$16 sps:$4 sm:$0xff]  }
 0x146   :  { %1290 = vmatpush2.bf16.msra.mxu1 %v5403_v55  ;;  %1250 = vmatprep.subr.bf16.mxu0 %v5408_v56  ;;  %v5463_v55 = vld [vmem:[#allocation8 + $0x180] ss:$16 sps:$4 sm:$0xff]  }
 0x147   :  { %1291 = vmatprep.subr.bf16.mxu1 %v5411_v57  ;;  %v5526_v56 = vld [vmem:[#allocation8 + $0x3e0] ss:$16 sps:$4 sm:$0xff]   ;;  %v5528_v57 = vld [vmem:[#allocation8 + $0x3e4] ss:$16 sps:$4 sm:$0xff]  }
 0x149   :  { %1251 = vmatpush2.bf16.msra.mxu0 %v5406_v58  ;;  %v5468_v58 = vld [vmem:[#allocation8 + $0x164] ss:$16 sps:$4 sm:$0xff]  }
 0x14a   :  { %1292 = vmatpush2.bf16.msra.mxu1 %v5409_v59  ;;  %1252 = vmatprep.subr.bf16.mxu0 %v5414_v60  ;;  %v5466_v59 = vld [vmem:[#allocation8 + $0x160] ss:$16 sps:$4 sm:$0xff]  }
 0x14b   :  { %1293 = vmatprep.subr.bf16.mxu1 %v5417_v61  ;;  %v5532_v60 = vld [vmem:[#allocation8 + $0x3c0] ss:$16 sps:$4 sm:$0xff]   ;;  %v5534_v61 = vld [vmem:[#allocation8 + $0x3c4] ss:$16 sps:$4 sm:$0xff]  }
 0x14d   :  { %1253 = vmatpush2.bf16.msra.mxu0 %v5412_v63  ;;  %v5471_v63 = vld [vmem:[#allocation8 + $0x144] ss:$16 sps:$4 sm:$0xff]  }
 0x14e   :  { %1294 = vmatpush2.bf16.msra.mxu1 %v5415_v1  ;;  %1254 = vmatprep.subr.bf16.mxu0 %v5420_v2  ;;  %v5469_v1 = vld [vmem:[#allocation8 + $0x140] ss:$16 sps:$4 sm:$0xff]  }
 0x14f   :  { %1295 = vmatprep.subr.bf16.mxu1 %v5423_v3  ;;  %v5538_v2 = vld [vmem:[#allocation8 + $0x3a0] ss:$16 sps:$4 sm:$0xff]   ;;  %v5540_v3 = vld [vmem:[#allocation8 + $0x3a4] ss:$16 sps:$4 sm:$0xff]  }
 0x151   :  { %1255 = vmatpush2.bf16.msra.mxu0 %v5418_v4  ;;  %v5474_v4 = vld [vmem:[#allocation8 + $0x124] ss:$16 sps:$4 sm:$0xff]  }
 0x152   :  { %1296 = vmatpush2.bf16.msra.mxu1 %v5421_v5  ;;  %1256 = vmatprep.subr.bf16.mxu0 %v5426_v7  ;;  %v5472_v5 = vld [vmem:[#allocation8 + $0x120] ss:$16 sps:$4 sm:$0xff]  }
 0x153   :  { %1297 = vmatprep.subr.bf16.mxu1 %v5429_v8  ;;  %v5544_v7 = vld [vmem:[#allocation8 + $0x380] ss:$16 sps:$4 sm:$0xff]   ;;  %v5546_v8 = vld [vmem:[#allocation8 + $0x384] ss:$16 sps:$4 sm:$0xff]  }
 0x155   :  { %1257 = vmatpush2.bf16.msra.mxu0 %v5424_v9  ;;  %v5477_v9 = vld [vmem:[#allocation8 + $0x104] ss:$16 sps:$4 sm:$0xff]  }
 0x156   :  { %1298 = vmatpush2.bf16.msra.mxu1 %v5427_v10  ;;  %2106 = vmatprep.subr.bf16.mxu0 %v5432_v11  ;;  %v5475_v10 = vld [vmem:[#allocation8 + $0x100] ss:$16 sps:$4 sm:$0xff]  }
 0x157   :  { %2147 = vmatprep.subr.bf16.mxu1 %v5480_v20  ;;  %v5550_v11 = vld [vmem:[#allocation8 + $0x360] ss:$16 sps:$4 sm:$0xff]   ;;  %v5576_v20 = vld [vmem:[#allocation8 + $0x2ec] ss:$16 sps:$4 sm:$0xff]  }
 0x158   :  { %1259 = vmatmul.mubr.bf16.vlgmr.msra.gmra.mxu0 %v6266_v6  ;;  %v5442_v6 = vld [vmem:[#allocation8 + $0x60] ss:$16 sps:$4 sm:$0xff]  }
 0x159   :  { %1300 = vmatmul.mubr.bf16.vlgmr.msra.gmra.mxu1 %v6264_v62  ;;  %2107 = vmatpush1.bf16.msra.mxu0 %v5430_v12  ;;  %v5486_v62 = vld [vmem:[#allocation8 + $0x2c4] ss:$16 sps:$4 sm:$0xff]  }
 0x15a   :  { %2108 = vmatprep.subr.bf16.mxu0 %v5435_v13  ;;  %2148 = vmatpush1.bf16.msra.mxu1 %v5478_v19  ;;  %v5552_v12 = vld [vmem:[#allocation8 + $0x364] ss:$16 sps:$4 sm:$0xff]   ;;  %v5483_v13 = vld [vmem:[#allocation8 + $0xec] ss:$16 sps:$4 sm:$0xff]   ;;  %v5568_v19 = vld [vmem:[#allocation8 + $0x300] ss:$16 sps:$4 sm:$0xff]  }
 0x15b   :  { %2149 = vmatprep.subr.bf16.mxu1 %v5486_v62 }
 0x15d   :  { %2109 = vmatpush1.bf16.msra.mxu0 %v5433_v14  ;;  %v5556_v14 = vld [vmem:[#allocation8 + $0x340] ss:$16 sps:$4 sm:$0xff]  }
 0x15e   :  { %2110 = vmatprep.subr.bf16.mxu0 %v5438_v15  ;;  %2150 = vmatpush1.bf16.msra.mxu1 %v5484_v22  ;;  %v5558_v15 = vld [vmem:[#allocation8 + $0x344] ss:$16 sps:$4 sm:$0xff]  }
 0x15f   :  { %2151 = vmatprep.subr.bf16.mxu1 %v5492_v26 }
 0x161   :  { %2111 = vmatpush1.bf16.msra.mxu0 %v5436_v16  ;;  %v5564_v16 = vld [vmem:[#allocation8 + $0x324] ss:$16 sps:$4 sm:$0xff]  }
 0x162   :  { %2112 = vmatprep.subr.bf16.mxu0 %v5441_v17  ;;  %2152 = vmatpush1.bf16.msra.mxu1 %v5490_v25  ;;  %v5562_v17 = vld [vmem:[#allocation8 + $0x320] ss:$16 sps:$4 sm:$0xff]  }
 0x163   :  { %2153 = vmatprep.subr.bf16.mxu1 %v5498_v30 }
 0x165   :  { %2113 = vmatpush1.bf16.msra.mxu0 %v5439_v18  ;;  %v5570_v18 = vld [vmem:[#allocation8 + $0x304] ss:$16 sps:$4 sm:$0xff]  }
 0x166   :  { %2114 = vmatprep.subr.bf16.mxu0 %v5444_v21  ;;  %2154 = vmatpush1.bf16.msra.mxu1 %v5496_v29  ;;  %v6275_v21 = vld [vmem:[%s6439_s4] sm:$0xf] }
 0x167   :  { %2155 = vmatprep.subr.bf16.mxu1 %v5504_v37  ;;  %v491_v22 = vrot.slane %v6275_v21, %v6255_v40 }
 0x169   :  { %2115 = vmatpush1.bf16.msra.mxu0 %v5442_v6  ;;  %v487_v6 = vrot.slane %v6275_v21, %v6249_v38 }
 0x16a   :  { %2116 = vmatprep.subr.bf16.mxu0 %v5447_v23  ;;  %2156 = vmatpush1.bf16.msra.mxu1 %v5502_v34 }
 0x16b   :  { %2157 = vmatprep.subr.bf16.mxu1 %v5510_v45 }
 0x16d   :  { %2117 = vmatpush1.bf16.msra.mxu0 %v5445_v24 }
 0x16e   :  { %2118 = vmatprep.subr.bf16.mxu0 %v5450_v27  ;;  %2158 = vmatpush1.bf16.msra.mxu1 %v5508_v44  ;;  %v5481_v44 = vld [vmem:[#allocation8 + $0xe8] ss:$16 sps:$4 sm:$0xff]  }
 0x16f   :  { %2159 = vmatprep.subr.bf16.mxu1 %v5516_v49  ;;  %v5493_v49 = vld [vmem:[#allocation8 + $0xa8] ss:$16 sps:$4 sm:$0xff]  }
 0x171   :  { %2119 = vmatpush1.bf16.msra.mxu0 %v5448_v28 }
 0x172   :  { %2120 = vmatprep.subr.bf16.mxu0 %v5453_v31  ;;  %2160 = vmatpush1.bf16.msra.mxu1 %v5514_v48  ;;  %v5495_v48 = vld [vmem:[#allocation8 + $0xac] ss:$16 sps:$4 sm:$0xff]  }
 0x173   :  { %2161 = vmatprep.subr.bf16.mxu1 %v5522_v53  ;;  %v5505_v53 = vld [vmem:[#allocation8 + $0x68] ss:$16 sps:$4 sm:$0xff]  }
 0x175   :  { %2121 = vmatpush1.bf16.msra.mxu0 %v5451_v33 }
 0x176   :  { %2122 = vmatprep.subr.bf16.mxu0 %v5456_v42  ;;  %2162 = vmatpush1.bf16.msra.mxu1 %v5520_v52  ;;  %v5507_v52 = vld [vmem:[#allocation8 + $0x6c] ss:$16 sps:$4 sm:$0xff]  }
 0x177   :  { %2163 = vmatprep.subr.bf16.mxu1 %v5528_v57  ;;  %v5517_v57 = vld [vmem:[#allocation8 + $0x28] ss:$16 sps:$4 sm:$0xff]  }
 0x179   :  { %2123 = vmatpush2.bf16.msra.mxu0 %v5454_v43 }
 0x17a   :  { %2124 = vmatprep.subr.bf16.mxu0 %v5459_v46  ;;  %2164 = vmatpush2.bf16.msra.mxu1 %v5526_v56  ;;  %v5489_v46 = vld [vmem:[#allocation8 + $0xcc] ss:$16 sps:$4 sm:$0xff]  }
 0x17b   :  { %2165 = vmatprep.subr.bf16.mxu1 %v5534_v61  ;;  %v5519_v56 = vld [vmem:[#allocation8 + $0x2c] ss:$16 sps:$4 sm:$0xff]   ;;  %v5529_v61 = vld [vmem:[#allocation8 + $0x1e8] ss:$16 sps:$4 sm:$0xff]  }
 0x17d   :  { %2125 = vmatpush2.bf16.msra.mxu0 %v5457_v47  ;;  %v5487_v47 = vld [vmem:[#allocation8 + $0xc8] ss:$16 sps:$4 sm:$0xff]  }
 0x17e   :  { %2126 = vmatprep.subr.bf16.mxu0 %v5462_v50  ;;  %2166 = vmatpush2.bf16.msra.mxu1 %v5532_v60  ;;  %v5501_v50 = vld [vmem:[#allocation8 + $0x8c] ss:$16 sps:$4 sm:$0xff]  }
 0x17f   :  { %2167 = vmatprep.subr.bf16.mxu1 %v5540_v3  ;;  %v5531_v60 = vld [vmem:[#allocation8 + $0x1ec] ss:$16 sps:$4 sm:$0xff]   ;;  %v5541_v3 = vld [vmem:[#allocation8 + $0x1a8] ss:$16 sps:$4 sm:$0xff]  }
 0x181   :  { %2127 = vmatpush2.bf16.msra.mxu0 %v5460_v51  ;;  %v5499_v51 = vld [vmem:[#allocation8 + $0x88] ss:$16 sps:$4 sm:$0xff]  }
 0x182   :  { %2128 = vmatprep.subr.bf16.mxu0 %v5465_v54  ;;  %2168 = vmatpush2.bf16.msra.mxu1 %v5538_v2  ;;  %v5513_v54 = vld [vmem:[#allocation8 + $0x4c] ss:$16 sps:$4 sm:$0xff]  }
 0x183   :  { %2169 = vmatprep.subr.bf16.mxu1 %v5546_v8  ;;  %v5543_v2 = vld [vmem:[#allocation8 + $0x1ac] ss:$16 sps:$4 sm:$0xff]   ;;  %v5553_v8 = vld [vmem:[#allocation8 + $0x168] ss:$16 sps:$4 sm:$0xff]  }
 0x185   :  { %2129 = vmatpush2.bf16.msra.mxu0 %v5463_v55  ;;  %v5511_v55 = vld [vmem:[#allocation8 + $0x48] ss:$16 sps:$4 sm:$0xff]  }
 0x186   :  { %2130 = vmatprep.subr.bf16.mxu0 %v5468_v58  ;;  %2170 = vmatpush2.bf16.msra.mxu1 %v5544_v7  ;;  %v5525_v58 = vld [vmem:[#allocation8 + $0xc] ss:$16 sps:$4 sm:$0xff]  }
 0x187   :  { %2171 = vmatprep.subr.bf16.mxu1 %v5552_v12  ;;  %v5555_v7 = vld [vmem:[#allocation8 + $0x16c] ss:$16 sps:$4 sm:$0xff]  }
 0x188   :  { %v5567_v12 = vld [vmem:[#allocation8 + $0x12c] ss:$16 sps:$4 sm:$0xff]  }
 0x189   :  { %2131 = vmatpush2.bf16.msra.mxu0 %v5466_v59  ;;  %v5523_v59 = vld [vmem:[#allocation8 + $0x8] ss:$16 sps:$4 sm:$0xff]  }
 0x18a   :  { %2132 = vmatprep.subr.bf16.mxu0 %v5471_v63  ;;  %2172 = vmatpush2.bf16.msra.mxu1 %v5550_v11  ;;  %v5537_v63 = vld [vmem:[#allocation8 + $0x1cc] ss:$16 sps:$4 sm:$0xff]   ;;  %v5559_v11 = vld [vmem:[#allocation8 + $0x148] ss:$16 sps:$4 sm:$0xff]  }
 0x18b   :  { %2173 = vmatprep.subr.bf16.mxu1 %v5558_v15 }
 0x18d   :  { %2133 = vmatpush2.bf16.msra.mxu0 %v5469_v1  ;;  %v5535_v1 = vld [vmem:[#allocation8 + $0x1c8] ss:$16 sps:$4 sm:$0xff]  }
 0x18e   :  { %2134 = vmatprep.subr.bf16.mxu0 %v5474_v4  ;;  %2174 = vmatpush2.bf16.msra.mxu1 %v5556_v14  ;;  %v5549_v4 = vld [vmem:[#allocation8 + $0x18c] ss:$16 sps:$4 sm:$0xff]  }
 0x18f   :  { %2175 = vmatprep.subr.bf16.mxu1 %v5564_v16 }
 0x191   :  { %2135 = vmatpush2.bf16.msra.mxu0 %v5472_v5  ;;  %v5547_v5 = vld [vmem:[#allocation8 + $0x188] ss:$16 sps:$4 sm:$0xff]  }
 0x192   :  { %2136 = vmatprep.subr.bf16.mxu0 %v5477_v9  ;;  %2176 = vmatpush2.bf16.msra.mxu1 %v5562_v17  ;;  %v5561_v9 = vld [vmem:[#allocation8 + $0x14c] ss:$16 sps:$4 sm:$0xff]   ;;  %v5565_v17 = vld [vmem:[#allocation8 + $0x128] ss:$16 sps:$4 sm:$0xff]  }
 0x193   :  { %2177 = vmatprep.subr.bf16.mxu1 %v5570_v18 }
 0x195   :  { %2137 = vmatpush2.bf16.msra.mxu0 %v5475_v10  ;;  %v495_v10 = vrot.slane %v6275_v21, %v6252_v39 }
 0x196   :  { %2188 = vmatprep.subr.bf16.mxu0 %v5483_v13  ;;  %2178 = vmatpush2.bf16.msra.mxu1 %v5568_v19  ;;  %v499_v13 = vrot.slane %v6275_v21, %v6258_v41 }
 0x197   :  { %2229 = vmatprep.subr.bf16.mxu1 %v5576_v20  ;;  %v5573_v20 = vld [vmem:[#allocation8 + $0x10c] ss:$16 sps:$4 sm:$0xff]  }
 0x1d8   :  { %v1178_v62 = vpop.f32.mrf.mxu0 }
 0x1d9   :  { %v1219_v23 = vpop.f32.mrf.mxu1  ;;  %v1179_v24 = vadd.f32 %v1178_v62, %v487_v6  ;;  %v2370_v62 = vld [vmem:[#allocation5 + $0x150] sm:$0xff] }
 0x1da   :  { %v1180_v25 = vpop.f32.mrf.mxu0 }
 0x1db   :  { %v1221_v26 = vpop.f32.mrf.mxu1  ;;  %v1220_v27 = vadd.f32 %v1219_v23, %v1179_v24  ;;  %v1181_v28 = vadd.f32 %v1180_v25, %v491_v22 }
 0x1dc   :  { %v1182_v29 = vpop.f32.mrf.mxu0 }
 0x1dd   :  { %v1223_v30 = vpop.f32.mrf.mxu1  ;;  %v1222_v31 = vadd.f32 %v1221_v26, %v1181_v28  ;;  %v1308_v33 = vmax.f32 %v1220_v27, 0.0  ;;  %v5571_v26 = vld [vmem:[#allocation8 + $0x108] ss:$16 sps:$4 sm:$0xff]   ;;  %v4925_v29 = vcombine.high %v2370_v62, %v2370_v62 }
 0x1de   :  { %v1183_v34 = vpop.f32.mrf.mxu0 }
 0x1df   :  { %v1224_v37 = vpop.f32.mrf.mxu1  ;;  %v1309_v42 = vmax.f32 %v1222_v31, 0.0  ;;  %v6281_v45 = vpack.c.bf16 %v1308_v33, %v1308_v33  ;;  %v4924_v31 = vcombine.low %v2370_v62, %v2370_v62  ;;  %v5574_v34 = vld [vmem:[#allocation8 + $0x2e8] ss:$16 sps:$4 sm:$0xff]   ;;  %v5673_v62 = vld [vmem:[#allocation7 + $0x444] ss:$16 sps:$4 sm:$0xff]  }
 0x1e1   :  { %v1313_v43 = vpack.c.bf16 %v1309_v42, %v1309_v42  ;;  %v5581_v42 = vld [vmem:[#allocation8 + $0x2cc] ss:$16 sps:$4 sm:$0xff]  }
 0x1e3   :  { %2138 = vmatprep.mubr.bf16.mxu0 %v1313_v43 }
 0x1e4   :  { %2139 = vmatmul.mubr.bf16.vlgmr.msra.gmra.mxu0 %v6281_v45 }
 0x1e5   :  { %2189 = vmatpush1.bf16.msra.mxu0 %v5481_v44  ;;  %2220 = vmatprep.mubr.bf16.mxu0 %v1313_v43  ;;  %v2506_v43 = vsel %vm251_vm0, %v4924_v31, 0  ;;  %v5584_v44 = vld [vmem:[#allocation5 + $0x134] ss:$16 sps:$4 sm:$0xff]   ;;  %v5635_v31 = vld [vmem:[#allocation8 + $0x32c] ss:$16 sps:$4 sm:$0xff]  }
 0x1e6   :  { %2190 = vmatprep.subr.bf16.mxu0 %v5489_v46  ;;  %v5579_v46 = vld [vmem:[#allocation8 + $0x2c8] ss:$16 sps:$4 sm:$0xff]  }
 0x1e9   :  { %2191 = vmatpush1.bf16.msra.mxu0 %v5487_v47  ;;  %v5582_v47 = vld [vmem:[#allocation5 + $0x130] ss:$16 sps:$4 sm:$0xff]  }
 0x1ea   :  { %2192 = vmatprep.subr.bf16.mxu0 %v5495_v48  ;;  %v5587_v48 = vld [vmem:[#allocation8 + $0x2ac] ss:$16 sps:$4 sm:$0xff]  }
 0x1ed   :  { %2193 = vmatpush1.bf16.msra.mxu0 %v5493_v49  ;;  %v5590_v49 = vld [vmem:[#allocation5 + $0x114] ss:$16 sps:$4 sm:$0xff]  }
 0x1ee   :  { %2194 = vmatprep.subr.bf16.mxu0 %v5501_v50  ;;  %v5585_v50 = vld [vmem:[#allocation8 + $0x2a8] ss:$16 sps:$4 sm:$0xff]  }
 0x1f1   :  { %2195 = vmatpush1.bf16.msra.mxu0 %v5499_v51  ;;  %v5588_v51 = vld [vmem:[#allocation5 + $0x110] ss:$16 sps:$4 sm:$0xff]  }
 0x1f2   :  { %2196 = vmatprep.subr.bf16.mxu0 %v5507_v52  ;;  %v5593_v52 = vld [vmem:[#allocation8 + $0x28c] ss:$16 sps:$4 sm:$0xff]  }
 0x1f5   :  { %2197 = vmatpush1.bf16.msra.mxu0 %v5505_v53  ;;  %v5596_v53 = vld [vmem:[#allocation5 + $0xf4] ss:$16 sps:$4 sm:$0xff]  }
 0x1f6   :  { %2198 = vmatprep.subr.bf16.mxu0 %v5513_v54  ;;  %v5594_v54 = vld [vmem:[#allocation5 + $0xf0] ss:$16 sps:$4 sm:$0xff]  }
 0x1f9   :  { %2199 = vmatpush1.bf16.msra.mxu0 %v5511_v55  ;;  %v5599_v55 = vld [vmem:[#allocation8 + $0x26c] ss:$16 sps:$4 sm:$0xff]  }
 0x1fa   :  { %2200 = vmatprep.subr.bf16.mxu0 %v5519_v56  ;;  %v5602_v56 = vld [vmem:[#allocation5 + $0xd4] ss:$16 sps:$4 sm:$0xff]  }
 0x1fd   :  { %2201 = vmatpush1.bf16.msra.mxu0 %v5517_v57  ;;  %v5597_v57 = vld [vmem:[#allocation8 + $0x268] ss:$16 sps:$4 sm:$0xff]  }
 0x1fe   :  { %2202 = vmatprep.subr.bf16.mxu0 %v5525_v58  ;;  %v5600_v58 = vld [vmem:[#allocation5 + $0xd0] ss:$16 sps:$4 sm:$0xff]  }
 0x201   :  { %2203 = vmatpush1.bf16.msra.mxu0 %v5523_v59  ;;  %v5605_v59 = vld [vmem:[#allocation8 + $0x24c] ss:$16 sps:$4 sm:$0xff]  }
 0x202   :  { %2204 = vmatprep.subr.bf16.mxu0 %v5531_v60  ;;  %v5608_v60 = vld [vmem:[#allocation5 + $0xb4] ss:$16 sps:$4 sm:$0xff]  }
 0x205   :  { %2205 = vmatpush2.bf16.msra.mxu0 %v5529_v61  ;;  %v5603_v61 = vld [vmem:[#allocation8 + $0x248] ss:$16 sps:$4 sm:$0xff]  }
 0x206   :  { %2206 = vmatprep.subr.bf16.mxu0 %v5537_v63  ;;  %v5606_v63 = vld [vmem:[#allocation5 + $0xb0] ss:$16 sps:$4 sm:$0xff]  }
 0x209   :  { %2207 = vmatpush2.bf16.msra.mxu0 %v5535_v1  ;;  %v5611_v1 = vld [vmem:[#allocation8 + $0x22c] ss:$16 sps:$4 sm:$0xff]  }
 0x20a   :  { %2208 = vmatprep.subr.bf16.mxu0 %v5543_v2  ;;  %v5658_v2 = vld [vmem:[#allocation7 + $0x4e4] ss:$16 sps:$4 sm:$0xff]  }
 0x20d   :  { %2209 = vmatpush2.bf16.msra.mxu0 %v5541_v3  ;;  %v5609_v3 = vld [vmem:[#allocation8 + $0x228] ss:$16 sps:$4 sm:$0xff]  }
 0x20e   :  { %2210 = vmatprep.subr.bf16.mxu0 %v5549_v4  ;;  %v5614_v4 = vld [vmem:[#allocation8 + $0x20c] ss:$16 sps:$4 sm:$0xff]  }
 0x211   :  { %2211 = vmatpush2.bf16.msra.mxu0 %v5547_v5  ;;  %v5656_v5 = vld [vmem:[#allocation7 + $0x4e0] ss:$16 sps:$4 sm:$0xff]  }
 0x212   :  { %2212 = vmatprep.subr.bf16.mxu0 %v5555_v7  ;;  %v5661_v7 = vld [vmem:[#allocation7 + $0x4c4] ss:$16 sps:$4 sm:$0xff]  }
 0x215   :  { %2213 = vmatpush2.bf16.msra.mxu0 %v5553_v8  ;;  %v5612_v8 = vld [vmem:[#allocation8 + $0x208] ss:$16 sps:$4 sm:$0xff]  }
 0x216   :  { %2214 = vmatprep.subr.bf16.mxu0 %v5561_v9  ;;  %v5617_v9 = vld [vmem:[#allocation8 + $0x3ec] ss:$16 sps:$4 sm:$0xff]  }
 0x218   :  { %v1260_v14 = vpop.f32.mrf.mxu0 }
 0x219   :  { %v1301_v15 = vpop.f32.mrf.mxu1  ;;  %v1261_v16 = vadd.f32 %v1260_v14, %v495_v10  ;;  %2215 = vmatpush2.bf16.msra.mxu0 %v5559_v11  ;;  %v5659_v10 = vld [vmem:[#allocation7 + $0x4c0] ss:$16 sps:$4 sm:$0xff]   ;;  %v5664_v11 = vld [vmem:[#allocation7 + $0x4a4] ss:$16 sps:$4 sm:$0xff]  }
 0x21a   :  { %v1262_v18 = vpop.f32.mrf.mxu0  ;;  %2216 = vmatprep.subr.bf16.mxu0 %v5567_v12  ;;  %v5615_v12 = vld [vmem:[#allocation8 + $0x3e8] ss:$16 sps:$4 sm:$0xff]   ;;  %v5662_v14 = vld [vmem:[#allocation7 + $0x4a0] ss:$16 sps:$4 sm:$0xff]  }
 0x21b   :  { %v1303_v19 = vpop.f32.mrf.mxu1  ;;  %v1302_v6 = vadd.f32 %v1301_v15, %v1261_v16  ;;  %v1263_v22 = vadd.f32 %v1262_v18, %v499_v13  ;;  %v5620_v13 = vld [vmem:[#allocation8 + $0x3cc] ss:$16 sps:$4 sm:$0xff]   ;;  %v5667_v15 = vld [vmem:[#allocation7 + $0x484] ss:$16 sps:$4 sm:$0xff]   ;;  %v5618_v16 = vld [vmem:[#allocation8 + $0x3c8] ss:$16 sps:$4 sm:$0xff]  }
 0x21c   :  { %v1264_v23 = vpop.f32.mrf.mxu0  ;;  %v5665_v18 = vld [vmem:[#allocation7 + $0x480] ss:$16 sps:$4 sm:$0xff]  }
 0x21d   :  { %v1305_v24 = vpop.f32.mrf.mxu1  ;;  %v1304_v25 = vadd.f32 %v1303_v19, %v1263_v22  ;;  %2217 = vmatpush2.bf16.msra.mxu0 %v5565_v17  ;;  %v1310_v27 = vmax.f32 %v1302_v6, 0.0  ;;  %v5623_v17 = vld [vmem:[#allocation8 + $0x3ac] ss:$16 sps:$4 sm:$0xff]   ;;  %v5670_v19 = vld [vmem:[#allocation7 + $0x464] ss:$16 sps:$4 sm:$0xff]  }
 0x21e   :  { %v1265_v28 = vpop.f32.mrf.mxu0  ;;  %2218 = vmatprep.subr.bf16.mxu0 %v5573_v20  ;;  %v5621_v20 = vld [vmem:[#allocation8 + $0x3a8] ss:$16 sps:$4 sm:$0xff]   ;;  %v5626_v6 = vld [vmem:[#allocation8 + $0x38c] ss:$16 sps:$4 sm:$0xff]   ;;  %v5668_v22 = vld [vmem:[#allocation7 + $0x460] ss:$16 sps:$4 sm:$0xff]  }
 0x21f   :  { %v1306_v21 = vpop.f32.mrf.mxu1  ;;  %v1311_v30 = vmax.f32 %v1304_v25, 0.0  ;;  %v6288_v37 = vpack.c.bf16 %v1310_v27, %v1310_v27  ;;  %v5624_v23 = vld [vmem:[#allocation8 + $0x388] ss:$16 sps:$4 sm:$0xff]   ;;  %v5629_v24 = vld [vmem:[#allocation8 + $0x36c] ss:$16 sps:$4 sm:$0xff]  }
 0x220   :  { %v5671_v25 = vld [vmem:[#allocation7 + $0x440] ss:$16 sps:$4 sm:$0xff]   ;;  %v5627_v27 = vld [vmem:[#allocation8 + $0x368] ss:$16 sps:$4 sm:$0xff]   ;;  %v5632_v28 = vld [vmem:[#allocation8 + $0x34c] ss:$16 sps:$4 sm:$0xff]  }
 0x221   :  { %v1315_v33 = vpack.c.bf16 %v1311_v30, %v1311_v30  ;;  %2219 = vmatpush2.bf16.msra.mxu0 %v5571_v26  ;;  %v5676_v26 = vld [vmem:[#allocation7 + $0x424] ss:$16 sps:$4 sm:$0xff]   ;;  %v5674_v21 = vld [vmem:[#allocation7 + $0x420] ss:$16 sps:$4 sm:$0xff]   ;;  %v5630_v30 = vld [vmem:[#allocation8 + $0x348] ss:$16 sps:$4 sm:$0xff]  }
 0x222   :  { %4928 = vmatprep.subr.msk.bf16.mxu0 %vm251_vm0, %v4925_v29  ;;  %v5679_v29 = vld [vmem:[#allocation7 + $0x404] ss:$16 sps:$4 sm:$0xff]  }
 0x223   :  { %2179 = vmatprep.mubr.bf16.mxu1 %v1315_v33 }
 0x224   :  { %2180 = vmatmul.mubr.bf16.vlgmr.msra.gmra.mxu1 %v6288_v37  ;;  %2221 = vmatmul.mubr.bf16.vlgmr.msra.gmra.mxu0 %v6281_v45  ;;  %v5591_v45 = vld [vmem:[#allocation8 + $0x288] ss:$16 sps:$4 sm:$0xff]  }
 0x225   :  { %2230 = vmatpush1.bf16.msra.mxu1 %v5574_v34  ;;  %2261 = vmatprep.mubr.bf16.mxu1 %v1315_v33  ;;  %v5677_v33 = vld [vmem:[#allocation7 + $0x400] ss:$16 sps:$4 sm:$0xff]   ;;  %v5633_v34 = vld [vmem:[#allocation8 + $0x328] ss:$16 sps:$4 sm:$0xff]  }
 0x226   :  { %2522 = vmatpush1.bf16.msra.mxu0 %v2506_v43  ;;  %2231 = vmatprep.subr.bf16.mxu1 %v5581_v42  ;;  %v5638_v42 = vld [vmem:[#allocation8 + $0x30c] ss:$16 sps:$4 sm:$0xff]  }
 0x227   :  { %2523 = vmatprep.subr.bf16.mxu0 %v5584_v44  ;;  %2549 = vmatprep.mubr.bf16.mxu0 %v6155_v0  ;;  %v2371_v43 = vld [vmem:[#allocation5 + $0x158] sm:$0xff] }
 0x228   :  { %v5636_v44 = vld [vmem:[#allocation8 + $0x308] ss:$16 sps:$4 sm:$0xff]  }
 0x229   :  { %2232 = vmatpush1.bf16.msra.mxu1 %v5579_v46  ;;  %v4927_v46 = vcombine.high %v2371_v43, %v2371_v43 }
 0x22a   :  { %2524 = vmatpush1.bf16.msra.mxu0 %v5582_v47  ;;  %2233 = vmatprep.subr.bf16.mxu1 %v5587_v48  ;;  %v4926_v47 = vcombine.low %v2371_v43, %v2371_v43  ;;  %v5770_v43 = vld [vmem:[#allocation7 + $0x780] ss:$16 sps:$4 sm:$0xff]  }
 0x22b   :  { %2525 = vmatprep.subr.bf16.mxu0 %v5590_v49  ;;  %v5643_v49 = vld [vmem:[#allocation5 + $0x13c] ss:$16 sps:$4 sm:$0xff]  }
 0x22c   :  { %v2512_v48 = vsel %vm251_vm0, %v4926_v47, 0  ;;  %v5778_v47 = vld [vmem:[#allocation7 + $0x764] ss:$16 sps:$4 sm:$0xff]  }
 0x22d   :  { %2234 = vmatpush1.bf16.msra.mxu1 %v5585_v50  ;;  %v5682_v50 = vld [vmem:[#allocation7 + $0x5e4] ss:$16 sps:$4 sm:$0xff]  }
 0x22e   :  { %2526 = vmatpush1.bf16.msra.mxu0 %v5588_v51  ;;  %2235 = vmatprep.subr.bf16.mxu1 %v5593_v52  ;;  %v5641_v51 = vld [vmem:[#allocation5 + $0x138] ss:$16 sps:$4 sm:$0xff]   ;;  %v5680_v52 = vld [vmem:[#allocation7 + $0x5e0] ss:$16 sps:$4 sm:$0xff]  }
 0x22f   :  { %2527 = vmatprep.subr.bf16.mxu0 %v5596_v53  ;;  %v5646_v53 = vld [vmem:[#allocation5 + $0x11c] ss:$16 sps:$4 sm:$0xff]  }
 0x231   :  { %2236 = vmatpush1.bf16.msra.mxu1 %v5591_v45  ;;  %v5685_v45 = vld [vmem:[#allocation7 + $0x5c4] ss:$16 sps:$4 sm:$0xff]  }
 0x232   :  { %2528 = vmatpush1.bf16.msra.mxu0 %v5594_v54  ;;  %2237 = vmatprep.subr.bf16.mxu1 %v5599_v55  ;;  %v5644_v54 = vld [vmem:[#allocation5 + $0x118] ss:$16 sps:$4 sm:$0xff]   ;;  %v5683_v55 = vld [vmem:[#allocation7 + $0x5c0] ss:$16 sps:$4 sm:$0xff]  }
 0x233   :  { %2529 = vmatprep.subr.bf16.mxu0 %v5602_v56  ;;  %v5649_v56 = vld [vmem:[#allocation5 + $0xfc] ss:$16 sps:$4 sm:$0xff]  }
 0x235   :  { %2238 = vmatpush1.bf16.msra.mxu1 %v5597_v57  ;;  %v5686_v57 = vld [vmem:[#allocation7 + $0x5a0] ss:$16 sps:$4 sm:$0xff]  }
 0x236   :  { %2530 = vmatpush1.bf16.msra.mxu0 %v5600_v58  ;;  %2239 = vmatprep.subr.bf16.mxu1 %v5605_v59  ;;  %v5691_v58 = vld [vmem:[#allocation7 + $0x584] ss:$16 sps:$4 sm:$0xff]   ;;  %v5647_v59 = vld [vmem:[#allocation5 + $0xf8] ss:$16 sps:$4 sm:$0xff]  }
 0x237   :  { %2531 = vmatprep.subr.bf16.mxu0 %v5608_v60  ;;  %v5689_v60 = vld [vmem:[#allocation7 + $0x580] ss:$16 sps:$4 sm:$0xff]  }
 0x239   :  { %2240 = vmatpush1.bf16.msra.mxu1 %v5603_v61  ;;  %v5694_v61 = vld [vmem:[#allocation7 + $0x564] ss:$16 sps:$4 sm:$0xff]  }
 0x23a   :  { %2532 = vmatpush1.bf16.msra.mxu0 %v5606_v63  ;;  %2241 = vmatprep.subr.bf16.mxu1 %v5611_v1  ;;  %v5650_v63 = vld [vmem:[#allocation5 + $0xd8] ss:$16 sps:$4 sm:$0xff]   ;;  %v5655_v1 = vld [vmem:[#allocation5 + $0xbc] ss:$16 sps:$4 sm:$0xff]  }
 0x23b   :  { %3399 = vmatprep.subr.bf16.mxu0 %v5658_v2  ;;  %v5692_v2 = vld [vmem:[#allocation7 + $0x560] ss:$16 sps:$4 sm:$0xff]  }
 0x23d   :  { %2242 = vmatpush1.bf16.msra.mxu1 %v5609_v3  ;;  %4929 = vmatmul.mubr.msk.bf16.vlgmr.msra.gmra.mxu0 %vm247_vm1, %v6236_v32  ;;  %v5697_v3 = vld [vmem:[#allocation7 + $0x544] ss:$16 sps:$4 sm:$0xff]  }
 0x23e   :  { %2243 = vmatprep.subr.bf16.mxu1 %v5614_v4  ;;  %3400 = vmatpush1.bf16.msra.mxu0 %v5656_v5  ;;  %v5653_v4 = vld [vmem:[#allocation5 + $0xb8] ss:$16 sps:$4 sm:$0xff]   ;;  %v5695_v5 = vld [vmem:[#allocation7 + $0x540] ss:$16 sps:$4 sm:$0xff]  }
 0x23f   :  { %3401 = vmatprep.subr.bf16.mxu0 %v5661_v7  ;;  %v5700_v7 = vld [vmem:[#allocation7 + $0x524] ss:$16 sps:$4 sm:$0xff]  }
 0x241   :  { %2244 = vmatpush1.bf16.msra.mxu1 %v5612_v8  ;;  %v5698_v8 = vld [vmem:[#allocation7 + $0x520] ss:$16 sps:$4 sm:$0xff]  }
 0x242   :  { %2245 = vmatprep.subr.bf16.mxu1 %v5617_v9  ;;  %3402 = vmatpush1.bf16.msra.mxu0 %v5659_v10  ;;  %v5703_v9 = vld [vmem:[#allocation7 + $0x504] ss:$16 sps:$4 sm:$0xff]   ;;  %v5701_v10 = vld [vmem:[#allocation7 + $0x500] ss:$16 sps:$4 sm:$0xff]  }
 0x243   :  { %3403 = vmatprep.subr.bf16.mxu0 %v5664_v11  ;;  %v5706_v11 = vld [vmem:[#allocation7 + $0x6e4] ss:$16 sps:$4 sm:$0xff]  }
 0x245   :  { %2246 = vmatpush2.bf16.msra.mxu1 %v5615_v12  ;;  %v5704_v12 = vld [vmem:[#allocation7 + $0x6e0] ss:$16 sps:$4 sm:$0xff]  }
 0x246   :  { %2247 = vmatprep.subr.bf16.mxu1 %v5620_v13  ;;  %3404 = vmatpush1.bf16.msra.mxu0 %v5662_v14  ;;  %v5709_v13 = vld [vmem:[#allocation7 + $0x4ec] ss:$16 sps:$4 sm:$0xff]   ;;  %v5710_v14 = vld [vmem:[#allocation7 + $0x6c0] ss:$16 sps:$4 sm:$0xff]  }
 0x247   :  { %3405 = vmatprep.subr.bf16.mxu0 %v5667_v15  ;;  %v5712_v15 = vld [vmem:[#allocation7 + $0x6c4] ss:$16 sps:$4 sm:$0xff]  }
 0x249   :  { %2248 = vmatpush2.bf16.msra.mxu1 %v5618_v16  ;;  %v5716_v16 = vld [vmem:[#allocation7 + $0x6a0] ss:$16 sps:$4 sm:$0xff]  }
 0x24a   :  { %2249 = vmatprep.subr.bf16.mxu1 %v5623_v17  ;;  %3406 = vmatpush1.bf16.msra.mxu0 %v5665_v18  ;;  %v5722_v17 = vld [vmem:[#allocation7 + $0x680] ss:$16 sps:$4 sm:$0xff]   ;;  %v5724_v18 = vld [vmem:[#allocation7 + $0x684] ss:$16 sps:$4 sm:$0xff]  }
 0x24b   :  { %3407 = vmatprep.subr.bf16.mxu0 %v5670_v19  ;;  %v5728_v19 = vld [vmem:[#allocation7 + $0x660] ss:$16 sps:$4 sm:$0xff]  }
 0x24d   :  { %2250 = vmatpush2.bf16.msra.mxu1 %v5621_v20  ;;  %v5730_v20 = vld [vmem:[#allocation7 + $0x664] ss:$16 sps:$4 sm:$0xff]  }
 0x24e   :  { %2251 = vmatprep.subr.bf16.mxu1 %v5626_v6  ;;  %3408 = vmatpush1.bf16.msra.mxu0 %v5668_v22  ;;  %v5734_v6 = vld [vmem:[#allocation7 + $0x640] ss:$16 sps:$4 sm:$0xff]   ;;  %v5736_v22 = vld [vmem:[#allocation7 + $0x644] ss:$16 sps:$4 sm:$0xff]  }
 0x24f   :  { %3409 = vmatprep.subr.bf16.mxu0 %v5673_v62  ;;  %v5740_v62 = vld [vmem:[#allocation7 + $0x620] ss:$16 sps:$4 sm:$0xff]  }
 0x251   :  { %2252 = vmatpush2.bf16.msra.mxu1 %v5624_v23  ;;  %v5742_v23 = vld [vmem:[#allocation7 + $0x624] ss:$16 sps:$4 sm:$0xff]  }
 0x252   :  { %2253 = vmatprep.subr.bf16.mxu1 %v5629_v24  ;;  %3410 = vmatpush1.bf16.msra.mxu0 %v5671_v25  ;;  %v5746_v24 = vld [vmem:[#allocation7 + $0x600] ss:$16 sps:$4 sm:$0xff]   ;;  %v5748_v25 = vld [vmem:[#allocation7 + $0x604] ss:$16 sps:$4 sm:$0xff]  }
 0x253   :  { %3411 = vmatprep.subr.bf16.mxu0 %v5676_v26 }
 0x255   :  { %2254 = vmatpush2.bf16.msra.mxu1 %v5627_v27  ;;  %v5754_v27 = vld [vmem:[#allocation7 + $0x7e4] ss:$16 sps:$4 sm:$0xff]  }
 0x256   :  { %2255 = vmatprep.subr.bf16.mxu1 %v5632_v28  ;;  %3412 = vmatpush1.bf16.msra.mxu0 %v5674_v21  ;;  %v5752_v28 = vld [vmem:[#allocation7 + $0x7e0] ss:$16 sps:$4 sm:$0xff]  }
 0x257   :  { %3413 = vmatprep.subr.bf16.mxu0 %v5679_v29 }
 0x259   :  { %2256 = vmatpush2.bf16.msra.mxu1 %v5630_v30  ;;  %v5760_v30 = vld [vmem:[#allocation7 + $0x7c4] ss:$16 sps:$4 sm:$0xff]  }
 0x25a   :  { %2257 = vmatprep.subr.bf16.mxu1 %v5635_v31  ;;  %3414 = vmatpush1.bf16.msra.mxu0 %v5677_v33  ;;  %v5758_v31 = vld [vmem:[#allocation7 + $0x7c0] ss:$16 sps:$4 sm:$0xff]  }
 0x25b   :  { %3415 = vmatprep.subr.bf16.mxu0 %v5682_v50  ;;  %v2325_v50 = vld [vmem:[%s6443_s8] sm:$0x1] }
 0x25c   :  { %2328 = vperm.xlu1 %5202, %v2325_v50   ;;  %v5745_v50 = vld [vmem:[#allocation7 + $0x42c] ss:$16 sps:$4 sm:$0xff]  }
 0x25d   :  { %2258 = vmatpush2.bf16.msra.mxu1 %v5633_v34  ;;  %v5764_v34 = vld [vmem:[#allocation7 + $0x7a0] ss:$16 sps:$4 sm:$0xff]  }
 0x25e   :  { %2259 = vmatprep.subr.bf16.mxu1 %v5638_v42  ;;  %3416 = vmatpush2.bf16.msra.mxu0 %v5680_v52  ;;  %v5766_v42 = vld [vmem:[#allocation7 + $0x7a4] ss:$16 sps:$4 sm:$0xff]   ;;  %v5788_v52 = vld [vmem:[#allocation7 + $0x720] ss:$16 sps:$4 sm:$0xff]  }
 0x25f   :  { %3417 = vmatprep.subr.bf16.mxu0 %v5685_v45  ;;  %v5794_v45 = vld [vmem:[#allocation7 + $0x700] ss:$16 sps:$4 sm:$0xff]  }
 0x261   :  { %2260 = vmatpush2.bf16.msra.mxu1 %v5636_v44  ;;  %v5772_v44 = vld [vmem:[#allocation7 + $0x784] ss:$16 sps:$4 sm:$0xff]  }
 0x262   :  { %4930 = vmatprep.subr.msk.bf16.mxu1 %vm251_vm0, %v4927_v46  ;;  %3418 = vmatpush2.bf16.msra.mxu0 %v5683_v55  ;;  %v5776_v46 = vld [vmem:[#allocation7 + $0x760] ss:$16 sps:$4 sm:$0xff]  }
 0x263   :  { %v5191_v55 = vld [vmem:[%s6442_s7] sm:$0xff]  }
 0x264   :  { %2262 = vmatmul.mubr.bf16.vlgmr.msra.gmra.mxu1 %v6288_v37  ;;  %v5688_v37 = vld [vmem:[#allocation7 + $0x5a4] ss:$16 sps:$4 sm:$0xff]  }
 0x265   :  { %2563 = vmatpush1.bf16.msra.mxu1 %v2512_v48  ;;  %2590 = vmatprep.mubr.bf16.mxu1 %v6155_v0  ;;  %v5652_v0 = vld [vmem:[#allocation5 + $0xdc] ss:$16 sps:$4 sm:$0xff]   ;;  %v5782_v48 = vld [vmem:[#allocation7 + $0x740] ss:$16 sps:$4 sm:$0xff]  }
 0x266   :  { %2564 = vmatprep.subr.bf16.mxu1 %v5643_v49  ;;  %3419 = vmatprep.subr.bf16.mxu0 %v5688_v37  ;;  %v5784_v49 = vld [vmem:[#allocation7 + $0x744] ss:$16 sps:$4 sm:$0xff]  }
 0x267   :  { %3420 = vmatpush2.bf16.msra.mxu0 %v5686_v57  ;;  %v6314_v57 = vunpack.c.l.bf16 %v5191_v55  ;;  %v5749_v55 = vld [vmem:[#allocation7 + $0x408] ss:$16 sps:$4 sm:$0xff]  }
 0x268   :  { %3421 = vmatprep.subr.bf16.mxu0 %v5691_v58 }
 0x269   :  { %2565 = vmatpush1.bf16.msra.mxu1 %v5641_v51  ;;  %v5790_v51 = vld [vmem:[#allocation7 + $0x724] ss:$16 sps:$4 sm:$0xff]  }
 0x26a   :  { %2566 = vmatprep.subr.bf16.mxu1 %v5646_v53  ;;  %v5796_v53 = vld [vmem:[#allocation7 + $0x704] ss:$16 sps:$4 sm:$0xff]  }
 0x26b   :  { %3422 = vmatpush2.bf16.msra.mxu0 %v5689_v60  ;;  %v2282_v60 = vrot.slane %v6314_v57, %v6252_v39 }
 0x26c   :  { %3423 = vmatprep.subr.bf16.mxu0 %v5694_v61 }
 0x26d   :  { %2567 = vmatpush1.bf16.msra.mxu1 %v5644_v54  ;;  %v5802_v54 = vld [vmem:[#allocation7 + $0x6ec] ss:$16 sps:$4 sm:$0xff]  }
 0x26e   :  { %2568 = vmatprep.subr.bf16.mxu1 %v5649_v56  ;;  %v6312_v56 = vld [vmem:[%s6441_s6] sm:$0xf] }
 0x26f   :  { %3424 = vmatpush2.bf16.msra.mxu0 %v5692_v2  ;;  %v1449_v37 = vrot.slane %v6312_v56, %v6249_v38  ;;  %v1453_v58 = vrot.slane %v6312_v56, %v6255_v40 }
 0x270   :  { %3425 = vmatprep.subr.bf16.mxu0 %v5697_v3 }
 0x271   :  { %2569 = vmatpush1.bf16.msra.mxu1 %v5647_v59  ;;  %v2278_v59 = vrot.slane %v6314_v57, %v6249_v38 }
 0x272   :  { %2570 = vmatprep.subr.bf16.mxu1 %v5652_v0 }
 0x273   :  { %3426 = vmatpush2.bf16.msra.mxu0 %v5695_v5  ;;  %v2298_v3 = vrot.slane %v2278_v59, %v6249_v38  ;;  %v5757_v59 = vld [vmem:[#allocation7 + $0x5ec] ss:$16 sps:$4 sm:$0xff]  }
 0x274   :  { %3427 = vmatprep.subr.bf16.mxu0 %v5700_v7 }
 0x275   :  { %2571 = vmatpush1.bf16.msra.mxu1 %v5650_v63 }
 0x276   :  { %2572 = vmatprep.subr.bf16.mxu1 %v5655_v1 }
 0x277   :  { %3428 = vmatpush2.bf16.msra.mxu0 %v5698_v8 }
 0x278   :  { %3429 = vmatprep.subr.bf16.mxu0 %v5703_v9  ;;  %v2302_v9 = vrot.slane %v2282_v60, %v6249_v38 }
 0x279   :  { %2573 = vmatpush1.bf16.msra.mxu1 %v5653_v4 }
 0x27a   :  { %3440 = vmatprep.subr.bf16.mxu1 %v5706_v11 }
 0x27b   :  { %3430 = vmatpush2.bf16.msra.mxu0 %v5701_v10 }
 0x27c   :  { %4931 = vmatmul.mubr.msk.bf16.vlgmr.msra.gmra.mxu1 %vm247_vm1, %v6236_v32  ;;  %3481 = vmatprep.subr.bf16.mxu0 %v5709_v13  ;;  %v5718_v32 = vld [vmem:[#allocation7 + $0x6a4] ss:$16 sps:$4 sm:$0xff]  }
 0x27d   :  { %3441 = vmatpush1.bf16.msra.mxu1 %v5704_v12 }
 0x27e   :  { %3442 = vmatprep.subr.bf16.mxu1 %v5712_v15 }
 0x281   :  { %3443 = vmatpush1.bf16.msra.mxu1 %v5710_v14 }
 0x282   :  { %3444 = vmatprep.subr.bf16.mxu1 %v5718_v32 }
 0x285   :  { %3445 = vmatpush1.bf16.msra.mxu1 %v5716_v16 }
 0x286   :  { %3446 = vmatprep.subr.bf16.mxu1 %v5724_v18 }
 0x289   :  { %3447 = vmatpush1.bf16.msra.mxu1 %v5722_v17 }
 0x28a   :  { %3448 = vmatprep.subr.bf16.mxu1 %v5730_v20 }
 0x28d   :  { %3449 = vmatpush1.bf16.msra.mxu1 %v5728_v19  ;;  %v6337_v19 = vld [vmem:[%s6437_s2 + $0x4] sm:$0xf] }
 0x28e   :  { %3450 = vmatprep.subr.bf16.mxu1 %v5736_v22  ;;  %v2378_v20 = vrot.slane %v6337_v19, %v6249_v38 }
 0x291   :  { %3451 = vmatpush1.bf16.msra.mxu1 %v5734_v6  ;;  %v2382_v6 = vrot.slane %v6337_v19, %v6255_v40 }
 0x292   :  { %3452 = vmatprep.subr.bf16.mxu1 %v5742_v23 }
 0x295   :  { %3453 = vmatpush1.bf16.msra.mxu1 %v5740_v62 }
 0x296   :  { %3454 = vmatprep.subr.bf16.mxu1 %v5748_v25 }
 0x299   :  { %3455 = vmatpush1.bf16.msra.mxu1 %v5746_v24 }
 0x29a   :  { %3456 = vmatprep.subr.bf16.mxu1 %v5754_v27 }
 0x29d   :  { %3457 = vmatpush2.bf16.msra.mxu1 %v5752_v28 }
 0x29e   :  { %3458 = vmatprep.subr.bf16.mxu1 %v5760_v30  ;;  %v5707_v30 = vld [vmem:[#allocation7 + $0x4e8] ss:$16 sps:$4 sm:$0xff]  }
 0x2a1   :  { %3459 = vmatpush2.bf16.msra.mxu1 %v5758_v31  ;;  %v5715_v31 = vld [vmem:[#allocation7 + $0x4cc] ss:$16 sps:$4 sm:$0xff]  }
 0x2a2   :  { %3460 = vmatprep.subr.bf16.mxu1 %v5766_v42  ;;  %v5719_v42 = vld [vmem:[#allocation7 + $0x4a8] ss:$16 sps:$4 sm:$0xff]  }
 0x2a4   :  { %v2140_v26 = vpop.f32.mrf.mxu0 }
 0x2a5   :  { %3461 = vmatpush2.bf16.msra.mxu1 %v5764_v34  ;;  %v2141_v0 = vadd.f32 %v2140_v26, %v1449_v37  ;;  %v5721_v34 = vld [vmem:[#allocation7 + $0x4ac] ss:$16 sps:$4 sm:$0xff]   ;;  %v1461_v37 = vrot.slane %v6312_v56, %v6258_v41 }
 0x2a6   :  { %v2142_v21 = vpop.f32.mrf.mxu0  ;;  %3462 = vmatprep.subr.bf16.mxu1 %v5772_v44  ;;  %v5725_v44 = vld [vmem:[#allocation7 + $0x488] ss:$16 sps:$4 sm:$0xff]  }
 0x2a7   :  { %v2143_v1 = vadd.f32 %v2142_v21, %v1453_v58 }
 0x2a8   :  { %v2144_v29 = vpop.f32.mrf.mxu0 }
 0x2a9   :  { %3463 = vmatpush2.bf16.msra.mxu1 %v5770_v43  ;;  %v5727_v43 = vld [vmem:[#allocation7 + $0x48c] ss:$16 sps:$4 sm:$0xff]  }
 0x2aa   :  { %v2145_v33 = vpop.f32.mrf.mxu0  ;;  %3464 = vmatprep.subr.bf16.mxu1 %v5778_v47  ;;  %v5731_v47 = vld [vmem:[#allocation7 + $0x468] ss:$16 sps:$4 sm:$0xff]  }
 0x2ab   :  { %v5713_v33 = vld [vmem:[#allocation7 + $0x4c8] ss:$16 sps:$4 sm:$0xff]  }
 0x2ad   :  { %3465 = vmatpush2.bf16.msra.mxu1 %v5776_v46  ;;  %v5733_v46 = vld [vmem:[#allocation7 + $0x46c] ss:$16 sps:$4 sm:$0xff]  }
 0x2ae   :  { %3466 = vmatprep.subr.bf16.mxu1 %v5784_v49  ;;  %v5737_v49 = vld [vmem:[#allocation7 + $0x448] ss:$16 sps:$4 sm:$0xff]  }
 0x2b1   :  { %3467 = vmatpush2.bf16.msra.mxu1 %v5782_v48  ;;  %v5739_v48 = vld [vmem:[#allocation7 + $0x44c] ss:$16 sps:$4 sm:$0xff]  }
 0x2b2   :  { %3468 = vmatprep.subr.bf16.mxu1 %v5790_v51  ;;  %v5743_v51 = vld [vmem:[#allocation7 + $0x428] ss:$16 sps:$4 sm:$0xff]  }
 0x2b5   :  { %3469 = vmatpush2.bf16.msra.mxu1 %v5788_v52  ;;  %v5751_v52 = vld [vmem:[#allocation7 + $0x40c] ss:$16 sps:$4 sm:$0xff]  }
 0x2b6   :  { %3470 = vmatprep.subr.bf16.mxu1 %v5796_v53  ;;  %v2285_v53 = vsub.s32 4, %v6243_v36 }
 0x2b8   :  { %v2286_v58 = vrot.slane %v6314_v57, %v2285_v53 }
 0x2b9   :  { %3471 = vmatpush2.bf16.msra.mxu1 %v5794_v45  ;;  %v1457_v45 = vrot.slane %v6312_v56, %v6252_v39 }
 0x2ba   :  { %3522 = vmatprep.subr.bf16.mxu1 %v5802_v54  ;;  %v2289_v54 = vsub.s32 6, %v6243_v36  ;;  %v2306_v56 = vrot.slane %v2286_v58, %v6249_v38  ;;  %v5851_v58 = vld [vmem:[#allocation8 + $0x4c0] ss:$16 sps:$4 sm:$0xff]  }
 0x2bc   :  { %v2290_v60 = vrot.slane %v6314_v57, %v2289_v54 }
 0x2e4   :  { %v2181_v61 = vpop.f32.mrf.mxu1  ;;  %v6324_v63 = vpop.f32.mrf.mxu0 }
 0x2e5   :  { %v2182_v2 = vadd.f32 %v2181_v61, %v2141_v0  ;;  %v2223_v0 = vadd.f32 %v6324_v63, %v1457_v45  ;;  %v5853_v45 = vld [vmem:[#allocation8 + $0x4c4] ss:$16 sps:$4 sm:$0xff]  }
 0x2e6   :  { %v2183_v4 = vpop.f32.mrf.mxu1  ;;  %v6327_v5 = vpop.f32.mrf.mxu0 }
 0x2e7   :  { %v2270_v7 = vmax.f32 %v2182_v2, 0.0  ;;  %v2184_v8 = vadd.f32 %v2183_v4, %v2143_v1  ;;  %v5755_v1 = vld [vmem:[#allocation7 + $0x5e8] ss:$16 sps:$4 sm:$0xff]   ;;  %v2225_v2 = vadd.f32 %v6327_v5, %v1461_v37  ;;  %v5763_v4 = vld [vmem:[#allocation7 + $0x5cc] ss:$16 sps:$4 sm:$0xff]  }
 0x2e8   :  { %v2185_v10 = vpop.f32.mrf.mxu1  ;;  %v2226_v11 = vpop.f32.mrf.mxu0  ;;  %v5808_v37 = vld [vmem:[#allocation7 + $0x6ac] ss:$16 sps:$4 sm:$0xff]  }
 0x2e9   :  { %v2311_v12 = vmul.f32 %v2298_v3, %v2270_v7  ;;  %v2271_v13 = vmax.f32 %v2184_v8, 0.0  ;;  %v2310_v10 = vrot.slane %v2290_v60, %v6249_v38  ;;  %v5761_v11 = vld [vmem:[#allocation7 + $0x5c8] ss:$16 sps:$4 sm:$0xff]   ;;  %v5811_v60 = vld [vmem:[#allocation7 + $0x68c] ss:$16 sps:$4 sm:$0xff]  }
 0x2ea   :  { %v2186_v14 = vpop.f32.mrf.mxu1  ;;  %v2227_v15 = vpop.f32.mrf.mxu0 }
 0x2eb   :  { %v2312_v16 = vmul.f32 %v2302_v9, %v2271_v13  ;;  %v2316_v32 = vsel %vm2315_vm2, %v2311_v12, 0.0  ;;  %v5769_v13 = vld [vmem:[#allocation7 + $0x5ac] ss:$16 sps:$4 sm:$0xff]  }
 0x2ed   :  { %v2317_v17 = vsel %vm2315_vm2, %v2312_v16, 0.0  ;;  %v5767_v16 = vld [vmem:[#allocation7 + $0x5a8] ss:$16 sps:$4 sm:$0xff]  }
 0x2ee   :  { %v6332_v18 = vadd.f32 %v2317_v17, %v2316_v32 }
 0x2fd   :  { %v2551_v22 = vpop.f32.mrf.mxu0 }
 0x2fe   :  { %v2552_v62 = vadd.f32 %v2551_v22, %v2378_v20  ;;  %v5775_v20 = vld [vmem:[#allocation7 + $0x58c] ss:$16 sps:$4 sm:$0xff]   ;;  %v5773_v22 = vld [vmem:[#allocation7 + $0x588] ss:$16 sps:$4 sm:$0xff]  }
 0x2ff   :  { %v2553_v23 = vpop.f32.mrf.mxu0 }
 0x300   :  { %v2599_v24 = vmax.f32 %v2552_v62, 0.0  ;;  %v2554_v25 = vadd.f32 %v2553_v23, %v2382_v6  ;;  %v5781_v62 = vld [vmem:[#allocation7 + $0x56c] ss:$16 sps:$4 sm:$0xff]   ;;  %v5779_v23 = vld [vmem:[#allocation7 + $0x568] ss:$16 sps:$4 sm:$0xff]  }
 0x301   :  { %v2555_v26 = vpop.f32.mrf.mxu0 }
 0x302   :  { %v2600_v27 = vmax.f32 %v2554_v25, 0.0  ;;  %v6343_v28 = vpack.c.bf16 %v2599_v24, %v2599_v24  ;;  %v5787_v24 = vld [vmem:[#allocation7 + $0x54c] ss:$16 sps:$4 sm:$0xff]   ;;  %v5785_v25 = vld [vmem:[#allocation7 + $0x548] ss:$16 sps:$4 sm:$0xff]  }
 0x303   :  { %v2556_v21 = vpop.f32.mrf.mxu0  ;;  %v5793_v26 = vld [vmem:[#allocation7 + $0x52c] ss:$16 sps:$4 sm:$0xff]  }
 0x304   :  { %v2604_v29 = vpack.c.bf16 %v2600_v27, %v2600_v27  ;;  %v2390_v27 = vrot.slane %v6337_v19, %v6258_v41 }
 0x306   :  { %3431 = vmatprep.mubr.bf16.mxu0 %v2604_v29 }
 0x307   :  { %3432 = vmatmul.mubr.bf16.vlgmr.msra.gmra.mxu0 %v6343_v28 }
 0x308   :  { %3482 = vmatpush1.bf16.msra.mxu0 %v5707_v30  ;;  %3513 = vmatprep.mubr.bf16.mxu0 %v2604_v29  ;;  %v5791_v29 = vld [vmem:[#allocation7 + $0x528] ss:$16 sps:$4 sm:$0xff]  }
 0x309   :  { %3483 = vmatprep.subr.bf16.mxu0 %v5715_v31  ;;  %v5799_v31 = vld [vmem:[#allocation7 + $0x50c] ss:$16 sps:$4 sm:$0xff]  }
 0x30c   :  { %3484 = vmatpush1.bf16.msra.mxu0 %v5713_v33 }
 0x30d   :  { %3485 = vmatprep.subr.bf16.mxu0 %v5721_v34 }
 0x310   :  { %3486 = vmatpush1.bf16.msra.mxu0 %v5719_v42 }
 0x311   :  { %3487 = vmatprep.subr.bf16.mxu0 %v5727_v43 }
 0x314   :  { %3488 = vmatpush1.bf16.msra.mxu0 %v5725_v44  ;;  %v5797_v44 = vld [vmem:[#allocation7 + $0x508] ss:$16 sps:$4 sm:$0xff]  }
 0x315   :  { %3489 = vmatprep.subr.bf16.mxu0 %v5733_v46 }
 0x318   :  { %3490 = vmatpush1.bf16.msra.mxu0 %v5731_v47  ;;  %v5850_v47 = vld [vmem:[#allocation8 + $0x4e4] ss:$16 sps:$4 sm:$0xff]  }
 0x319   :  { %3491 = vmatprep.subr.bf16.mxu0 %v5739_v48 }
 0x31c   :  { %3492 = vmatpush1.bf16.msra.mxu0 %v5737_v49 }
 0x31d   :  { %3493 = vmatprep.subr.bf16.mxu0 %v5745_v50  ;;  %v5800_v50 = vld [vmem:[#allocation7 + $0x6e8] ss:$16 sps:$4 sm:$0xff]  }
 0x320   :  { %3494 = vmatpush1.bf16.msra.mxu0 %v5743_v51 }
 0x321   :  { %3495 = vmatprep.subr.bf16.mxu0 %v5751_v52  ;;  %v5848_v52 = vld [vmem:[#allocation8 + $0x4e0] ss:$16 sps:$4 sm:$0xff]  }
 0x324   :  { %3496 = vmatpush1.bf16.msra.mxu0 %v5749_v55  ;;  %v2263_v61 = vpop.f32.mrf.mxu1  ;;  %v5803_v55 = vld [vmem:[#allocation7 + $0x6c8] ss:$16 sps:$4 sm:$0xff]  }
 0x325   :  { %v2264_v3 = vadd.f32 %v2263_v61, %v2223_v0  ;;  %3497 = vmatprep.subr.bf16.mxu0 %v5757_v59  ;;  %v5856_v59 = vld [vmem:[#allocation8 + $0x4a4] ss:$16 sps:$4 sm:$0xff]   ;;  %v5806_v0 = vld [vmem:[#allocation7 + $0x6a8] ss:$16 sps:$4 sm:$0xff]   ;;  %v5854_v61 = vld [vmem:[#allocation8 + $0x4a0] ss:$16 sps:$4 sm:$0xff]  }
 0x326   :  { %v2265_v7 = vpop.f32.mrf.mxu1 }
 0x327   :  { %v2272_v8 = vmax.f32 %v2264_v3, 0.0  ;;  %v2266_v9 = vadd.f32 %v2265_v7, %v2225_v2  ;;  %v5809_v2 = vld [vmem:[#allocation7 + $0x688] ss:$16 sps:$4 sm:$0xff]   ;;  %v5857_v3 = vld [vmem:[#allocation8 + $0x480] ss:$16 sps:$4 sm:$0xff]  }
 0x328   :  { %3498 = vmatpush2.bf16.msra.mxu0 %v5755_v1  ;;  %v2267_v63 = vpop.f32.mrf.mxu1  ;;  %v5859_v1 = vld [vmem:[#allocation8 + $0x484] ss:$16 sps:$4 sm:$0xff]   ;;  %v5817_v7 = vld [vmem:[#allocation7 + $0x64c] ss:$16 sps:$4 sm:$0xff]  }
 0x329   :  { %v2313_v12 = vmul.f32 %v2306_v56, %v2272_v8  ;;  %v2273_v57 = vmax.f32 %v2266_v9, 0.0  ;;  %3499 = vmatprep.subr.bf16.mxu0 %v5763_v4  ;;  %v5862_v56 = vld [vmem:[#allocation8 + $0x464] ss:$16 sps:$4 sm:$0xff]   ;;  %v5812_v4 = vld [vmem:[#allocation7 + $0x668] ss:$16 sps:$4 sm:$0xff]  }
 0x32a   :  { %v2268_v14 = vpop.f32.mrf.mxu1  ;;  %v5860_v8 = vld [vmem:[#allocation8 + $0x460] ss:$16 sps:$4 sm:$0xff]   ;;  %v5865_v9 = vld [vmem:[#allocation8 + $0x444] ss:$16 sps:$4 sm:$0xff]   ;;  %v5820_v63 = vld [vmem:[#allocation7 + $0x62c] ss:$16 sps:$4 sm:$0xff]  }
 0x32b   :  { %v2314_v15 = vmul.f32 %v2310_v10, %v2273_v57  ;;  %v2319_v5 = vsel %vm2315_vm2, %v2313_v12, 0.0  ;;  %v5815_v10 = vld [vmem:[#allocation7 + $0x648] ss:$16 sps:$4 sm:$0xff]   ;;  %v5868_v12 = vld [vmem:[#allocation8 + $0x424] ss:$16 sps:$4 sm:$0xff]  }
 0x32c   :  { %3500 = vmatpush2.bf16.msra.mxu0 %v5761_v11  ;;  %v2320_v32 = vadd.f32 %v2319_v5, %v6332_v18  ;;  %v2386_v18 = vrot.slane %v6337_v19, %v6252_v39  ;;  %v5805_v19 = vld [vmem:[#allocation7 + $0x6cc] ss:$16 sps:$4 sm:$0xff]   ;;  %v5863_v11 = vld [vmem:[#allocation8 + $0x440] ss:$16 sps:$4 sm:$0xff]   ;;  %v5818_v57 = vld [vmem:[#allocation7 + $0x628] ss:$16 sps:$4 sm:$0xff]  }
 0x32d   :  { %3501 = vmatprep.subr.bf16.mxu0 %v5769_v13  ;;  %v2321_v17 = vsel %vm2315_vm2, %v2314_v15, 0.0  ;;  %v5823_v13 = vld [vmem:[#allocation7 + $0x60c] ss:$16 sps:$4 sm:$0xff]   ;;  %v5866_v14 = vld [vmem:[#allocation8 + $0x420] ss:$16 sps:$4 sm:$0xff]  }
 0x32e   :  { %v2322_v6 = vadd.f32 %v2321_v17, %v2320_v32  ;;  %v5871_v15 = vld [vmem:[#allocation8 + $0x404] ss:$16 sps:$4 sm:$0xff]   ;;  %v5821_v5 = vld [vmem:[#allocation7 + $0x608] ss:$16 sps:$4 sm:$0xff]   ;;  %v5869_v32 = vld [vmem:[#allocation8 + $0x400] ss:$16 sps:$4 sm:$0xff]  }
 0x32f   :  { %v5874_v17 = vld [vmem:[#allocation8 + $0x5e4] ss:$16 sps:$4 sm:$0xff]  }
 0x330   :  { %3502 = vmatpush2.bf16.msra.mxu0 %v5767_v16  ;;  %2323 = vadd.xlane.f32.xlu0 %v2322_v6  ;;  %v5826_v16 = vld [vmem:[#allocation7 + $0x7ec] ss:$16 sps:$4 sm:$0xff]  }
 0x331   :  { %3503 = vmatprep.subr.bf16.mxu0 %v5775_v20  ;;  %v5824_v20 = vld [vmem:[#allocation7 + $0x7e8] ss:$16 sps:$4 sm:$0xff]   ;;  %v5829_v6 = vld [vmem:[#allocation7 + $0x7cc] ss:$16 sps:$4 sm:$0xff]  }
 0x334   :  { %3504 = vmatpush2.bf16.msra.mxu0 %v5773_v22  ;;  %v5872_v22 = vld [vmem:[#allocation8 + $0x5e0] ss:$16 sps:$4 sm:$0xff]  }
 0x335   :  { %3505 = vmatprep.subr.bf16.mxu0 %v5781_v62  ;;  %v5877_v62 = vld [vmem:[#allocation8 + $0x5c4] ss:$16 sps:$4 sm:$0xff]  }
 0x338   :  { %3506 = vmatpush2.bf16.msra.mxu0 %v5779_v23  ;;  %v5827_v23 = vld [vmem:[#allocation7 + $0x7c8] ss:$16 sps:$4 sm:$0xff]  }
 0x339   :  { %3507 = vmatprep.subr.bf16.mxu0 %v5787_v24  ;;  %v5832_v24 = vld [vmem:[#allocation7 + $0x7ac] ss:$16 sps:$4 sm:$0xff]  }
 0x33c   :  { %3508 = vmatpush2.bf16.msra.mxu0 %v5785_v25  ;;  %v2592_v21 = vpop.f32.mrf.mxu1  ;;  %v5875_v25 = vld [vmem:[#allocation8 + $0x5c0] ss:$16 sps:$4 sm:$0xff]  }
 0x33d   :  { %v2593_v30 = vadd.f32 %v2592_v21, %v2386_v18  ;;  %3509 = vmatprep.subr.bf16.mxu0 %v5793_v26  ;;  %v5880_v18 = vld [vmem:[#allocation8 + $0x5a4] ss:$16 sps:$4 sm:$0xff]   ;;  %v5830_v26 = vld [vmem:[#allocation7 + $0x7a8] ss:$16 sps:$4 sm:$0xff]   ;;  %v5878_v21 = vld [vmem:[#allocation8 + $0x5a0] ss:$16 sps:$4 sm:$0xff]  }
 0x33e   :  { %v2594_v33 = vpop.f32.mrf.mxu1 }
 0x33f   :  { %v2595_v34 = vadd.f32 %v2594_v33, %v2390_v27  ;;  %v2601_v42 = vmax.f32 %v2593_v30, 0.0  ;;  %v5835_v27 = vld [vmem:[#allocation7 + $0x78c] ss:$16 sps:$4 sm:$0xff]   ;;  %v5833_v30 = vld [vmem:[#allocation7 + $0x788] ss:$16 sps:$4 sm:$0xff]  }
 0x340   :  { %3510 = vmatpush2.bf16.msra.mxu0 %v5791_v29  ;;  %v2596_v43 = vpop.f32.mrf.mxu1  ;;  %v5883_v29 = vld [vmem:[#allocation8 + $0x584] ss:$16 sps:$4 sm:$0xff]   ;;  %v5881_v33 = vld [vmem:[#allocation8 + $0x580] ss:$16 sps:$4 sm:$0xff]  }
 0x341   :  { %v2602_v46 = vmax.f32 %v2595_v34, 0.0  ;;  %3511 = vmatprep.subr.bf16.mxu0 %v5799_v31  ;;  %v6369_v51 = vpack.c.bf16 %v2601_v42, %v2601_v42  ;;  %v5838_v31 = vld [vmem:[#allocation7 + $0x76c] ss:$16 sps:$4 sm:$0xff]   ;;  %v5886_v34 = vld [vmem:[#allocation8 + $0x564] ss:$16 sps:$4 sm:$0xff]  }
 0x342   :  { %v2597_v48 = vpop.f32.mrf.mxu1  ;;  %v5836_v42 = vld [vmem:[#allocation7 + $0x768] ss:$16 sps:$4 sm:$0xff]   ;;  %v5841_v43 = vld [vmem:[#allocation7 + $0x74c] ss:$16 sps:$4 sm:$0xff]  }
 0x343   :  { %v2606_v49 = vpack.c.bf16 %v2602_v46, %v2602_v46  ;;  %v5889_v46 = vld [vmem:[#allocation8 + $0x544] ss:$16 sps:$4 sm:$0xff]   ;;  %v5844_v48 = vld [vmem:[#allocation7 + $0x72c] ss:$16 sps:$4 sm:$0xff]  }
 0x344   :  { %3512 = vmatpush2.bf16.msra.mxu0 %v5797_v44  ;;  %v5884_v44 = vld [vmem:[#allocation8 + $0x560] ss:$16 sps:$4 sm:$0xff]  }
 0x345   :  { %3472 = vmatprep.mubr.bf16.mxu1 %v2606_v49  ;;  %4363 = vmatprep.subr.bf16.mxu0 %v5850_v47  ;;  %v5839_v47 = vld [vmem:[#allocation7 + $0x748] ss:$16 sps:$4 sm:$0xff]  }
 0x346   :  { %3473 = vmatmul.mubr.bf16.vlgmr.msra.gmra.mxu1 %v6369_v51 }
 0x347   :  { %3514 = vmatmul.mubr.bf16.vlgmr.msra.gmra.mxu0 %v6343_v28  ;;  %3523 = vmatpush1.bf16.msra.mxu1 %v5800_v50  ;;  %v5814_v28 = vld [vmem:[#allocation7 + $0x66c] ss:$16 sps:$4 sm:$0xff]   ;;  %v5842_v50 = vld [vmem:[#allocation7 + $0x728] ss:$16 sps:$4 sm:$0xff]  }
 0x348   :  { %3554 = vmatprep.mubr.bf16.mxu1 %v2606_v49  ;;  %3524 = vmatprep.subr.bf16.mxu1 %v5805_v19  ;;  %v5887_v49 = vld [vmem:[#allocation8 + $0x540] ss:$16 sps:$4 sm:$0xff]   ;;  %v5847_v19 = vld [vmem:[#allocation7 + $0x70c] ss:$16 sps:$4 sm:$0xff]  }
 0x349   :  { %4364 = vmatpush1.bf16.msra.mxu0 %v5848_v52  ;;  %v5845_v52 = vld [vmem:[#allocation7 + $0x708] ss:$16 sps:$4 sm:$0xff]  }
 0x34a   :  { %4365 = vmatprep.subr.bf16.mxu0 %v5853_v45  ;;  %v5892_v45 = vld [vmem:[#allocation8 + $0x524] ss:$16 sps:$4 sm:$0xff]  }
 0x34b   :  { %3525 = vmatpush1.bf16.msra.mxu1 %v5803_v55  ;;  %v5890_v55 = vld [vmem:[#allocation8 + $0x520] ss:$16 sps:$4 sm:$0xff]  }
 0x34c   :  { %3526 = vmatprep.subr.bf16.mxu1 %v5808_v37  ;;  %v5895_v37 = vld [vmem:[#allocation8 + $0x504] ss:$16 sps:$4 sm:$0xff]  }
 0x34d   :  { %4366 = vmatpush1.bf16.msra.mxu0 %v5851_v58  ;;  %v5893_v58 = vld [vmem:[#allocation8 + $0x500] ss:$16 sps:$4 sm:$0xff]  }
 0x34e   :  { %4367 = vmatprep.subr.bf16.mxu0 %v5856_v59  ;;  %v5896_v59 = vld [vmem:[#allocation8 + $0x6e0] ss:$16 sps:$4 sm:$0xff]  }
 0x34f   :  { %3527 = vmatpush1.bf16.msra.mxu1 %v5806_v0  ;;  %v5898_v0 = vld [vmem:[#allocation8 + $0x6e4] ss:$16 sps:$4 sm:$0xff]  }
 0x350   :  { %3528 = vmatprep.subr.bf16.mxu1 %v5811_v60  ;;  %v5901_v60 = vld [vmem:[#allocation8 + $0x4ec] ss:$16 sps:$4 sm:$0xff]  }
 0x351   :  { %4368 = vmatpush1.bf16.msra.mxu0 %v5854_v61  ;;  %v5902_v61 = vld [vmem:[#allocation8 + $0x6c0] ss:$16 sps:$4 sm:$0xff]  }
 0x352   :  { %4369 = vmatprep.subr.bf16.mxu0 %v5859_v1  ;;  %v5904_v1 = vld [vmem:[#allocation8 + $0x6c4] ss:$16 sps:$4 sm:$0xff]  }
 0x353   :  { %3529 = vmatpush1.bf16.msra.mxu1 %v5809_v2  ;;  %v5908_v2 = vld [vmem:[#allocation8 + $0x6a0] ss:$16 sps:$4 sm:$0xff]  }
 0x354   :  { %3530 = vmatprep.subr.bf16.mxu1 %v5814_v28  ;;  %v5914_v28 = vld [vmem:[#allocation8 + $0x680] ss:$16 sps:$4 sm:$0xff]  }
 0x355   :  { %4370 = vmatpush1.bf16.msra.mxu0 %v5857_v3  ;;  %v5916_v3 = vld [vmem:[#allocation8 + $0x684] ss:$16 sps:$4 sm:$0xff]  }
 0x356   :  { %4371 = vmatprep.subr.bf16.mxu0 %v5862_v56  ;;  %v5920_v56 = vld [vmem:[#allocation8 + $0x660] ss:$16 sps:$4 sm:$0xff]  }
 0x357   :  { %3531 = vmatpush1.bf16.msra.mxu1 %v5812_v4  ;;  %v5922_v4 = vld [vmem:[#allocation8 + $0x664] ss:$16 sps:$4 sm:$0xff]  }
 0x358   :  { %3532 = vmatprep.subr.bf16.mxu1 %v5817_v7  ;;  %v5926_v7 = vld [vmem:[#allocation8 + $0x640] ss:$16 sps:$4 sm:$0xff]  }
 0x359   :  { %4372 = vmatpush1.bf16.msra.mxu0 %v5860_v8  ;;  %v5928_v8 = vld [vmem:[#allocation8 + $0x644] ss:$16 sps:$4 sm:$0xff]  }
 0x35a   :  { %4373 = vmatprep.subr.bf16.mxu0 %v5865_v9  ;;  %v5932_v9 = vld [vmem:[#allocation8 + $0x620] ss:$16 sps:$4 sm:$0xff]  }
 0x35b   :  { %3533 = vmatpush1.bf16.msra.mxu1 %v5815_v10  ;;  %v5934_v10 = vld [vmem:[#allocation8 + $0x624] ss:$16 sps:$4 sm:$0xff]  }
 0x35c   :  { %3534 = vmatprep.subr.bf16.mxu1 %v5820_v63  ;;  %v5938_v63 = vld [vmem:[#allocation8 + $0x600] ss:$16 sps:$4 sm:$0xff]  }
 0x35d   :  { %4374 = vmatpush1.bf16.msra.mxu0 %v5863_v11  ;;  %v5940_v11 = vld [vmem:[#allocation8 + $0x604] ss:$16 sps:$4 sm:$0xff]  }
 0x35e   :  { %4375 = vmatprep.subr.bf16.mxu0 %v5868_v12  ;;  %v5944_v12 = vld [vmem:[#allocation8 + $0x7e0] ss:$16 sps:$4 sm:$0xff]  }
 0x35f   :  { %3535 = vmatpush1.bf16.msra.mxu1 %v5818_v57  ;;  %v5946_v57 = vld [vmem:[#allocation8 + $0x7e4] ss:$16 sps:$4 sm:$0xff]  }
 0x360   :  { %3536 = vmatprep.subr.bf16.mxu1 %v5823_v13  ;;  %v5950_v13 = vld [vmem:[#allocation8 + $0x7c0] ss:$16 sps:$4 sm:$0xff]  }
 0x361   :  { %4376 = vmatpush1.bf16.msra.mxu0 %v5866_v14  ;;  %v5952_v14 = vld [vmem:[#allocation8 + $0x7c4] ss:$16 sps:$4 sm:$0xff]  }
 0x362   :  { %4377 = vmatprep.subr.bf16.mxu0 %v5871_v15  ;;  %v5956_v15 = vld [vmem:[#allocation8 + $0x7a0] ss:$16 sps:$4 sm:$0xff]  }
 0x363   :  { %3537 = vmatpush1.bf16.msra.mxu1 %v5821_v5  ;;  %v5958_v5 = vld [vmem:[#allocation8 + $0x7a4] ss:$16 sps:$4 sm:$0xff]  }
 0x364   :  { %3538 = vmatprep.subr.bf16.mxu1 %v5826_v16  ;;  %v5962_v16 = vld [vmem:[#allocation8 + $0x780] ss:$16 sps:$4 sm:$0xff]  }
 0x365   :  { %4378 = vmatpush1.bf16.msra.mxu0 %v5869_v32  ;;  %v5964_v32 = vld [vmem:[#allocation8 + $0x784] ss:$16 sps:$4 sm:$0xff]  }
 0x366   :  { %4379 = vmatprep.subr.bf16.mxu0 %v5874_v17  ;;  %v5968_v17 = vld [vmem:[#allocation8 + $0x760] ss:$16 sps:$4 sm:$0xff]  }
 0x367   :  { %3539 = vmatpush2.bf16.msra.mxu1 %v5824_v20  ;;  %v5970_v20 = vld [vmem:[#allocation8 + $0x764] ss:$16 sps:$4 sm:$0xff]  }
 0x368   :  { %3540 = vmatprep.subr.bf16.mxu1 %v5829_v6  ;;  %v5974_v6 = vld [vmem:[#allocation8 + $0x740] ss:$16 sps:$4 sm:$0xff]  }
 0x369   :  { %4380 = vmatpush2.bf16.msra.mxu0 %v5872_v22  ;;  %v5976_v22 = vld [vmem:[#allocation8 + $0x744] ss:$16 sps:$4 sm:$0xff]  }
 0x36a   :  { %4381 = vmatprep.subr.bf16.mxu0 %v5877_v62  ;;  %v5982_v62 = vld [vmem:[#allocation8 + $0x724] ss:$16 sps:$4 sm:$0xff]  }
 0x36b   :  { %3541 = vmatpush2.bf16.msra.mxu1 %v5827_v23  ;;  %v5980_v23 = vld [vmem:[#allocation8 + $0x720] ss:$16 sps:$4 sm:$0xff]  }
 0x36c   :  { %3542 = vmatprep.subr.bf16.mxu1 %v5832_v24 }
 0x36d   :  { %4382 = vmatpush2.bf16.msra.mxu0 %v5875_v25 }
 0x36e   :  { %4383 = vmatprep.subr.bf16.mxu0 %v5880_v18  ;;  %v5988_v18 = vld [vmem:[#allocation8 + $0x704] ss:$16 sps:$4 sm:$0xff]  }
 0x36f   :  { %3543 = vmatpush2.bf16.msra.mxu1 %v5830_v26  ;;  %v5986_v26 = vld [vmem:[#allocation8 + $0x700] ss:$16 sps:$4 sm:$0xff]  }
 0x370   :  { %3544 = vmatprep.subr.bf16.mxu1 %v5835_v27 }
 0x371   :  { %4384 = vmatpush2.bf16.msra.mxu0 %v5878_v21 }
 0x372   :  { %4385 = vmatprep.subr.bf16.mxu0 %v5883_v29  ;;  %v5994_v29 = vld [vmem:[#allocation8 + $0x6ec] ss:$16 sps:$4 sm:$0xff]  }
 0x373   :  { %3545 = vmatpush2.bf16.msra.mxu1 %v5833_v30  ;;  %v6377_v30 = vld [vmem:[%s6439_s4 + $0x4] sm:$0xf] }
 0x374   :  { %3546 = vmatprep.subr.bf16.mxu1 %v5838_v31  ;;  %v2742_v31 = vrot.slane %v6377_v30, %v6249_v38 }
 0x375   :  { %4386 = vmatpush2.bf16.msra.mxu0 %v5881_v33  ;;  %v2746_v33 = vrot.slane %v6377_v30, %v6255_v40 }
 0x376   :  { %4387 = vmatprep.subr.bf16.mxu0 %v5886_v34 }
 0x377   :  { %3547 = vmatpush2.bf16.msra.mxu1 %v5836_v42 }
 0x378   :  { %3548 = vmatprep.subr.bf16.mxu1 %v5841_v43 }
 0x379   :  { %4388 = vmatpush2.bf16.msra.mxu0 %v5884_v44 }
 0x37a   :  { %4389 = vmatprep.subr.bf16.mxu0 %v5889_v46 }
 0x37b   :  { %3549 = vmatpush2.bf16.msra.mxu1 %v5839_v47 }
 0x37c   :  { %3550 = vmatprep.subr.bf16.mxu1 %v5844_v48 }
 0x37d   :  { %4390 = vmatpush2.bf16.msra.mxu0 %v5887_v49 }
 0x37e   :  { %4391 = vmatprep.subr.bf16.mxu0 %v5892_v45 }
 0x37f   :  { %3551 = vmatpush2.bf16.msra.mxu1 %v5842_v50 }
 0x380   :  { %3552 = vmatprep.subr.bf16.mxu1 %v5847_v19 }
 0x381   :  { %4392 = vmatpush2.bf16.msra.mxu0 %v5890_v55 }
 0x382   :  { %4393 = vmatprep.subr.bf16.mxu0 %v5895_v37 }
 0x383   :  { %3553 = vmatpush2.bf16.msra.mxu1 %v5845_v52 }
 0x384   :  { %4404 = vmatprep.subr.bf16.mxu1 %v5898_v0 }
 0x385   :  { %4394 = vmatpush2.bf16.msra.mxu0 %v5893_v58 }
 0x386   :  { %3555 = vmatmul.mubr.bf16.vlgmr.msra.gmra.mxu1 %v6369_v51  ;;  %4445 = vmatprep.subr.bf16.mxu0 %v5901_v60  ;;  %v5910_v51 = vld [vmem:[#allocation8 + $0x6a4] ss:$16 sps:$4 sm:$0xff]   ;;  %v5907_v60 = vld [vmem:[#allocation8 + $0x4cc] ss:$16 sps:$4 sm:$0xff]  }
 0x387   :  { %4405 = vmatpush1.bf16.msra.mxu1 %v5896_v59  ;;  %v5899_v59 = vld [vmem:[#allocation8 + $0x4e8] ss:$16 sps:$4 sm:$0xff]  }
 0x388   :  { %4406 = vmatprep.subr.bf16.mxu1 %v5904_v1  ;;  %v5913_v1 = vld [vmem:[#allocation8 + $0x4ac] ss:$16 sps:$4 sm:$0xff]  }
 0x38b   :  { %4407 = vmatpush1.bf16.msra.mxu1 %v5902_v61  ;;  %v5905_v61 = vld [vmem:[#allocation8 + $0x4c8] ss:$16 sps:$4 sm:$0xff]  }
 0x38c   :  { %4408 = vmatprep.subr.bf16.mxu1 %v5910_v51  ;;  %v5919_v51 = vld [vmem:[#allocation8 + $0x48c] ss:$16 sps:$4 sm:$0xff]  }
 0x38f   :  { %4409 = vmatpush1.bf16.msra.mxu1 %v5908_v2  ;;  %v5911_v2 = vld [vmem:[#allocation8 + $0x4a8] ss:$16 sps:$4 sm:$0xff]  }
 0x390   :  { %4410 = vmatprep.subr.bf16.mxu1 %v5916_v3  ;;  %v5925_v3 = vld [vmem:[#allocation8 + $0x46c] ss:$16 sps:$4 sm:$0xff]  }
 0x393   :  { %4411 = vmatpush1.bf16.msra.mxu1 %v5914_v28  ;;  %v5917_v28 = vld [vmem:[#allocation8 + $0x488] ss:$16 sps:$4 sm:$0xff]  }
 0x394   :  { %4412 = vmatprep.subr.bf16.mxu1 %v5922_v4  ;;  %v5931_v4 = vld [vmem:[#allocation8 + $0x44c] ss:$16 sps:$4 sm:$0xff]  }
 0x397   :  { %4413 = vmatpush1.bf16.msra.mxu1 %v5920_v56  ;;  %v5923_v56 = vld [vmem:[#allocation8 + $0x468] ss:$16 sps:$4 sm:$0xff]  }
 0x398   :  { %4414 = vmatprep.subr.bf16.mxu1 %v5928_v8  ;;  %v5937_v8 = vld [vmem:[#allocation8 + $0x42c] ss:$16 sps:$4 sm:$0xff]  }
 0x39b   :  { %4415 = vmatpush1.bf16.msra.mxu1 %v5926_v7  ;;  %v5929_v7 = vld [vmem:[#allocation8 + $0x448] ss:$16 sps:$4 sm:$0xff]  }
 0x39c   :  { %4416 = vmatprep.subr.bf16.mxu1 %v5934_v10  ;;  %v5943_v10 = vld [vmem:[#allocation8 + $0x40c] ss:$16 sps:$4 sm:$0xff]  }
 0x39f   :  { %4417 = vmatpush1.bf16.msra.mxu1 %v5932_v9  ;;  %v5935_v9 = vld [vmem:[#allocation8 + $0x428] ss:$16 sps:$4 sm:$0xff]  }
 0x3a0   :  { %4418 = vmatprep.subr.bf16.mxu1 %v5940_v11  ;;  %v5949_v11 = vld [vmem:[#allocation8 + $0x5ec] ss:$16 sps:$4 sm:$0xff]  }
 0x3a3   :  { %4419 = vmatpush1.bf16.msra.mxu1 %v5938_v63  ;;  %v5941_v63 = vld [vmem:[#allocation8 + $0x408] ss:$16 sps:$4 sm:$0xff]  }
 0x3a4   :  { %4420 = vmatprep.subr.bf16.mxu1 %v5946_v57  ;;  %v5955_v57 = vld [vmem:[#allocation8 + $0x5cc] ss:$16 sps:$4 sm:$0xff]  }
 0x3a7   :  { %4421 = vmatpush2.bf16.msra.mxu1 %v5944_v12  ;;  %v5947_v12 = vld [vmem:[#allocation8 + $0x5e8] ss:$16 sps:$4 sm:$0xff]  }
 0x3a8   :  { %4422 = vmatprep.subr.bf16.mxu1 %v5952_v14  ;;  %v5961_v14 = vld [vmem:[#allocation8 + $0x5ac] ss:$16 sps:$4 sm:$0xff]  }
 0x3ab   :  { %4423 = vmatpush2.bf16.msra.mxu1 %v5950_v13  ;;  %v5953_v13 = vld [vmem:[#allocation8 + $0x5c8] ss:$16 sps:$4 sm:$0xff]  }
 0x3ac   :  { %4424 = vmatprep.subr.bf16.mxu1 %v5958_v5  ;;  %v5967_v5 = vld [vmem:[#allocation8 + $0x58c] ss:$16 sps:$4 sm:$0xff]  }
 0x3af   :  { %4425 = vmatpush2.bf16.msra.mxu1 %v5956_v15  ;;  %v5959_v15 = vld [vmem:[#allocation8 + $0x5a8] ss:$16 sps:$4 sm:$0xff]  }
 0x3b0   :  { %4426 = vmatprep.subr.bf16.mxu1 %v5964_v32  ;;  %v5973_v32 = vld [vmem:[#allocation8 + $0x56c] ss:$16 sps:$4 sm:$0xff]  }
 0x3b3   :  { %4427 = vmatpush2.bf16.msra.mxu1 %v5962_v16  ;;  %v5965_v16 = vld [vmem:[#allocation8 + $0x588] ss:$16 sps:$4 sm:$0xff]  }
 0x3b4   :  { %4428 = vmatprep.subr.bf16.mxu1 %v5970_v20  ;;  %v5979_v20 = vld [vmem:[#allocation8 + $0x54c] ss:$16 sps:$4 sm:$0xff]  }
 0x3b7   :  { %4429 = vmatpush2.bf16.msra.mxu1 %v5968_v17  ;;  %v5971_v17 = vld [vmem:[#allocation8 + $0x568] ss:$16 sps:$4 sm:$0xff]  }
 0x3b8   :  { %4430 = vmatprep.subr.bf16.mxu1 %v5976_v22  ;;  %v5977_v22 = vld [vmem:[#allocation8 + $0x548] ss:$16 sps:$4 sm:$0xff]  }
 0x3bb   :  { %4431 = vmatpush2.bf16.msra.mxu1 %v5974_v6  ;;  %v2750_v6 = vrot.slane %v6377_v30, %v6252_v39 }
 0x3bc   :  { %4432 = vmatprep.subr.bf16.mxu1 %v5982_v62  ;;  %v5985_v62 = vld [vmem:[#allocation8 + $0x52c] ss:$16 sps:$4 sm:$0xff]  }
 0x3bf   :  { %4433 = vmatpush2.bf16.msra.mxu1 %v5980_v23  ;;  %v2754_v23 = vrot.slane %v6377_v30, %v6258_v41 }
 0x3c0   :  { %4434 = vmatprep.subr.bf16.mxu1 %v5988_v18 }
 0x3c3   :  { %4435 = vmatpush2.bf16.msra.mxu1 %v5986_v26  ;;  %v5991_v26 = vld [vmem:[#allocation8 + $0x50c] ss:$16 sps:$4 sm:$0xff]  }
 0x3c4   :  { %4486 = vmatprep.subr.bf16.mxu1 %v5994_v29 }
 0x3c7   :  { %v3433_v24 = vpop.f32.mrf.mxu0 }
 0x3c8   :  { %v3434_v34 = vadd.f32 %v3433_v24, %v2742_v31 }
 0x3c9   :  { %v3435_v25 = vpop.f32.mrf.mxu0 }
 0x3ca   :  { %v3436_v43 = vadd.f32 %v3435_v25, %v2746_v33  ;;  %v5983_v25 = vld [vmem:[#allocation8 + $0x528] ss:$16 sps:$4 sm:$0xff]  }
 0x3cb   :  { %v3437_v27 = vpop.f32.mrf.mxu0  ;;  %v5989_v33 = vld [vmem:[#allocation8 + $0x508] ss:$16 sps:$4 sm:$0xff]  }
 0x3cd   :  { %v3438_v21 = vpop.f32.mrf.mxu0 }
 0x406   :  { %v3474_v42 = vpop.f32.mrf.mxu1 }
 0x407   :  { %v3475_v44 = vadd.f32 %v3474_v42, %v3434_v34  ;;  %v6383_v46 = vpop.f32.mrf.mxu0 }
 0x408   :  { %v3476_v47 = vpop.f32.mrf.mxu1  ;;  %v3516_v24 = vadd.f32 %v6383_v46, %v2750_v6  ;;  %v5992_v46 = vld [vmem:[#allocation8 + $0x6e8] ss:$16 sps:$4 sm:$0xff]   ;;  %v6040_v6 = vld [vmem:[%s6442_s7] sm:$0xff]  }
 0x409   :  { %v3477_v48 = vadd.f32 %v3476_v47, %v3436_v43  ;;  %v6385_v49 = vpop.f32.mrf.mxu0  ;;  %v3563_v50 = vmax.f32 %v3475_v44, 0.0 }
 0x40a   :  { %v3478_v19 = vpop.f32.mrf.mxu1  ;;  %v3518_v27 = vadd.f32 %v6385_v49, %v2754_v23  ;;  %v5995_v49 = vld [vmem:[#allocation8 + $0x6c8] ss:$16 sps:$4 sm:$0xff]  }
 0x40b   :  { %v3564_v52 = vmax.f32 %v3477_v48, 0.0  ;;  %v3519_v45 = vpop.f32.mrf.mxu0  ;;  %v6387_v0 = vpack.c.bf16 %v3563_v50, %v3563_v50  ;;  %v5997_v48 = vld [vmem:[#allocation8 + $0x6cc] ss:$16 sps:$4 sm:$0xff]   ;;  %v5998_v19 = vld [vmem:[#allocation8 + $0x6a8] ss:$16 sps:$4 sm:$0xff]  }
 0x40c   :  { %v3479_v55 = vpop.f32.mrf.mxu1  ;;  %v6000_v50 = vld [vmem:[#allocation8 + $0x6ac] ss:$16 sps:$4 sm:$0xff]   ;;  %v6001_v45 = vld [vmem:[#allocation8 + $0x688] ss:$16 sps:$4 sm:$0xff]  }
 0x40d   :  { %v3568_v37 = vpack.c.bf16 %v3564_v52, %v3564_v52  ;;  %v3520_v58 = vpop.f32.mrf.mxu0  ;;  %v6003_v52 = vld [vmem:[#allocation8 + $0x68c] ss:$16 sps:$4 sm:$0xff]  }
 0x40e   :  { %v6006_v55 = vld [vmem:[#allocation8 + $0x66c] ss:$16 sps:$4 sm:$0xff]  }
 0x40f   :  { %4395 = vmatprep.mubr.bf16.mxu0 %v3568_v37  ;;  %v6009_v58 = vld [vmem:[#allocation8 + $0x64c] ss:$16 sps:$4 sm:$0xff]  }
 0x410   :  { %4396 = vmatmul.mubr.bf16.vlgmr.msra.gmra.mxu0 %v6387_v0 }
 0x411   :  { %4446 = vmatpush1.bf16.msra.mxu0 %v5899_v59  ;;  %4477 = vmatprep.mubr.bf16.mxu0 %v3568_v37  ;;  %v6004_v37 = vld [vmem:[#allocation8 + $0x668] ss:$16 sps:$4 sm:$0xff]  }
 0x412   :  { %4447 = vmatprep.subr.bf16.mxu0 %v5907_v60  ;;  %v6007_v59 = vld [vmem:[#allocation8 + $0x648] ss:$16 sps:$4 sm:$0xff]  }
 0x413   :  { %v6010_v60 = vld [vmem:[#allocation8 + $0x628] ss:$16 sps:$4 sm:$0xff]  }
 0x415   :  { %4448 = vmatpush1.bf16.msra.mxu0 %v5905_v61  ;;  %v6015_v61 = vld [vmem:[#allocation8 + $0x60c] ss:$16 sps:$4 sm:$0xff]  }
 0x416   :  { %4449 = vmatprep.subr.bf16.mxu0 %v5913_v1  ;;  %v6013_v1 = vld [vmem:[#allocation8 + $0x608] ss:$16 sps:$4 sm:$0xff]  }
 0x419   :  { %4450 = vmatpush1.bf16.msra.mxu0 %v5911_v2  ;;  %v6018_v2 = vld [vmem:[#allocation8 + $0x7ec] ss:$16 sps:$4 sm:$0xff]  }
 0x41a   :  { %4451 = vmatprep.subr.bf16.mxu0 %v5919_v51  ;;  %v6016_v51 = vld [vmem:[#allocation8 + $0x7e8] ss:$16 sps:$4 sm:$0xff]  }
 0x41d   :  { %4452 = vmatpush1.bf16.msra.mxu0 %v5917_v28  ;;  %v6021_v28 = vld [vmem:[#allocation8 + $0x7cc] ss:$16 sps:$4 sm:$0xff]  }
 0x41e   :  { %4453 = vmatprep.subr.bf16.mxu0 %v5925_v3  ;;  %v6019_v3 = vld [vmem:[#allocation8 + $0x7c8] ss:$16 sps:$4 sm:$0xff]  }
 0x421   :  { %4454 = vmatpush1.bf16.msra.mxu0 %v5923_v56  ;;  %v6024_v56 = vld [vmem:[#allocation8 + $0x7ac] ss:$16 sps:$4 sm:$0xff]  }
 0x422   :  { %4455 = vmatprep.subr.bf16.mxu0 %v5931_v4  ;;  %v6022_v4 = vld [vmem:[#allocation8 + $0x7a8] ss:$16 sps:$4 sm:$0xff]  }
 0x425   :  { %4456 = vmatpush1.bf16.msra.mxu0 %v5929_v7  ;;  %v6027_v7 = vld [vmem:[#allocation8 + $0x78c] ss:$16 sps:$4 sm:$0xff]  }
 0x426   :  { %4457 = vmatprep.subr.bf16.mxu0 %v5937_v8  ;;  %v6025_v8 = vld [vmem:[#allocation8 + $0x788] ss:$16 sps:$4 sm:$0xff]  }
 0x429   :  { %4458 = vmatpush1.bf16.msra.mxu0 %v5935_v9  ;;  %v6030_v9 = vld [vmem:[#allocation8 + $0x76c] ss:$16 sps:$4 sm:$0xff]  }
 0x42a   :  { %4459 = vmatprep.subr.bf16.mxu0 %v5943_v10  ;;  %v6028_v10 = vld [vmem:[#allocation8 + $0x768] ss:$16 sps:$4 sm:$0xff]  }
 0x42d   :  { %4460 = vmatpush1.bf16.msra.mxu0 %v5941_v63  ;;  %v6033_v63 = vld [vmem:[#allocation8 + $0x74c] ss:$16 sps:$4 sm:$0xff]  }
 0x42e   :  { %4461 = vmatprep.subr.bf16.mxu0 %v5949_v11  ;;  %v6031_v11 = vld [vmem:[#allocation8 + $0x748] ss:$16 sps:$4 sm:$0xff]  }
 0x431   :  { %4462 = vmatpush2.bf16.msra.mxu0 %v5947_v12  ;;  %v6036_v12 = vld [vmem:[#allocation8 + $0x72c] ss:$16 sps:$4 sm:$0xff]  }
 0x432   :  { %4463 = vmatprep.subr.bf16.mxu0 %v5955_v57  ;;  %v6034_v57 = vld [vmem:[#allocation8 + $0x728] ss:$16 sps:$4 sm:$0xff]  }
 0x435   :  { %4464 = vmatpush2.bf16.msra.mxu0 %v5953_v13  ;;  %v6039_v13 = vld [vmem:[#allocation8 + $0x70c] ss:$16 sps:$4 sm:$0xff]  }
 0x436   :  { %4465 = vmatprep.subr.bf16.mxu0 %v5961_v14  ;;  %v6037_v14 = vld [vmem:[#allocation8 + $0x708] ss:$16 sps:$4 sm:$0xff]  }
 0x439   :  { %4466 = vmatpush2.bf16.msra.mxu0 %v5959_v15 }
 0x43a   :  { %4467 = vmatprep.subr.bf16.mxu0 %v5967_v5 }
 0x43d   :  { %4468 = vmatpush2.bf16.msra.mxu0 %v5965_v16 }
 0x43e   :  { %4469 = vmatprep.subr.bf16.mxu0 %v5973_v32 }
 0x441   :  { %4470 = vmatpush2.bf16.msra.mxu0 %v5971_v17  ;;  %v4581_v17 = vld [vmem:[%s6443_s8 + $0x1] sm:$0x1] }
 0x442   :  { %4471 = vmatprep.subr.bf16.mxu0 %v5979_v20  ;;  %4584 = vperm.xlu1 %5202, %v4581_v17   ;;  %v5061_v20 = vld [vmem:[%s6441_s6 + $0x4] sm:$0xf]  ;;  %s6156_s6 = smov [#allocation10]  }
 0x443   :  { %v3710_v23 = vrot.slane %v5061_v20, %v6255_v40  ;;  %s4608_s7 = sshll.u32 %s6156_s6, 4  ;;  %s4609_s7 = int_to_ptr.vmem [resolvable:$true] %s4608_s7 }
 0x444   :  { %s6121_s8 = scalar_lea.vmem %s4609_s7, 32  ;;  %p6126_p7 = scmp.lt.s32.totalorder %s4609_s7, %s4609_s7 }
 0x445   :  { %4472 = vmatpush2.bf16.msra.mxu0 %v5977_v22  ;;  %v5193_v22 = vunpack.c.h.bf16 %v6040_v6  ;;  %p6122_p6 = scmp.ne.s32.totalorder %s4609_s7, %s6121_s8  ;;  %p6127_p8 = scmp.lt.s32.totalorder %s6121_s8, %s6121_s8 }
 0x446   :  { %v3556_v18 = vpop.f32.mrf.mxu1  ;;  %4473 = vmatprep.subr.bf16.mxu0 %v5985_v62  ;;  %v3706_v62 = vrot.slane %v5061_v20, %v6249_v38 }
 0x447   :  { %v3557_v21 = vadd.f32 %v3556_v18, %v3516_v24  ;;  %v4535_v24 = vrot.slane %v5193_v22, %v6249_v38  ;;  %v4539_v18 = vrot.slane %v5193_v22, %v6252_v39  ;;  %p6128_p9 = por %p6127_p8, %p6126_p7 }
 0x448   :  { %v3558_v29 = vpop.f32.mrf.mxu1 }
 0x449   :  { %v3559_v31 = vadd.f32 %v3558_v29, %v3518_v27  ;;  %4474 = vmatpush2.bf16.msra.mxu0 %v5983_v25  ;;  %v3565_v34 = vmax.f32 %v3557_v21, 0.0  ;;  %p6129_p10 = pnand %p6128_p9, %p6122_p6 }
 0x44a   :  { %v3560_v42 = vpop.f32.mrf.mxu1  ;;  %4475 = vmatprep.subr.bf16.mxu0 %v5991_v26 }
 0x44b   :  { %v3566_v43 = vmax.f32 %v3559_v31, 0.0  ;;  %v6396_v47 = vpack.c.bf16 %v3565_v34, %v3565_v34  ;;  %v4555_v31 = vrot.slane %v4535_v24, %v6249_v38 }
 0x44c   :  { %v3561_v44 = vpop.f32.mrf.mxu1 }
 0x44d   :  { %v3570_v30 = vpack.c.bf16 %v3566_v43, %v3566_v43  ;;  %4476 = vmatpush2.bf16.msra.mxu0 %v5989_v33  ;;  %v4559_v44 = vrot.slane %v4539_v18, %v6249_v38 }
 0x44f   :  { %4436 = vmatprep.mubr.bf16.mxu1 %v3570_v30 }
 0x450   :  { %4437 = vmatmul.mubr.bf16.vlgmr.msra.gmra.mxu1 %v6396_v47  ;;  %4478 = vmatmul.mubr.bf16.vlgmr.msra.gmra.mxu0 %v6387_v0  ;;  %v6012_v0 = vld [vmem:[#allocation8 + $0x62c] ss:$16 sps:$4 sm:$0xff]  }
 0x451   :  { %4487 = vmatpush1.bf16.msra.mxu1 %v5992_v46  ;;  %4518 = vmatprep.mubr.bf16.mxu1 %v3570_v30 }
 0x452   :  { %4488 = vmatprep.subr.bf16.mxu1 %v5997_v48 }
 0x455   :  { %4489 = vmatpush1.bf16.msra.mxu1 %v5995_v49 }
 0x456   :  { %4490 = vmatprep.subr.bf16.mxu1 %v6000_v50 }
 0x459   :  { %4491 = vmatpush1.bf16.msra.mxu1 %v5998_v19 }
 0x45a   :  { %4492 = vmatprep.subr.bf16.mxu1 %v6003_v52 }
 0x45d   :  { %4493 = vmatpush1.bf16.msra.mxu1 %v6001_v45 }
 0x45e   :  { %4494 = vmatprep.subr.bf16.mxu1 %v6006_v55  ;;  %v3714_v55 = vrot.slane %v5061_v20, %v6252_v39 }
 0x461   :  { %4495 = vmatpush1.bf16.msra.mxu1 %v6004_v37  ;;  %v3718_v37 = vrot.slane %v5061_v20, %v6258_v41 }
 0x462   :  { %4496 = vmatprep.subr.bf16.mxu1 %v6009_v58  ;;  %v4543_v58 = vrot.slane %v5193_v22, %v2285_v53 }
 0x465   :  { %4497 = vmatpush1.bf16.msra.mxu1 %v6007_v59 }
 0x466   :  { %4498 = vmatprep.subr.bf16.mxu1 %v6012_v0  ;;  %v4547_v0 = vrot.slane %v5193_v22, %v2289_v54 }
 0x469   :  { %4499 = vmatpush1.bf16.msra.mxu1 %v6010_v60 }
 0x46a   :  { %4500 = vmatprep.subr.bf16.mxu1 %v6015_v61 }
 0x46d   :  { %4501 = vmatpush1.bf16.msra.mxu1 %v6013_v1 }
 0x46e   :  { %4502 = vmatprep.subr.bf16.mxu1 %v6018_v2  ;;  %v4563_v2 = vrot.slane %v4543_v58, %v6249_v38 }
 0x471   :  { %4503 = vmatpush2.bf16.msra.mxu1 %v6016_v51 }
 0x472   :  { %4504 = vmatprep.subr.bf16.mxu1 %v6021_v28 }
 0x475   :  { %4505 = vmatpush2.bf16.msra.mxu1 %v6019_v3 }
 0x476   :  { %4506 = vmatprep.subr.bf16.mxu1 %v6024_v56  ;;  %v4567_v56 = vrot.slane %v4547_v0, %v6249_v38 }
 0x479   :  { %4507 = vmatpush2.bf16.msra.mxu1 %v6022_v4 }
 0x47a   :  { %4508 = vmatprep.subr.bf16.mxu1 %v6027_v7 }
 0x47d   :  { %4509 = vmatpush2.bf16.msra.mxu1 %v6025_v8 }
 0x47e   :  { %4510 = vmatprep.subr.bf16.mxu1 %v6030_v9 }
 0x481   :  { %4511 = vmatpush2.bf16.msra.mxu1 %v6028_v10 }
 0x482   :  { %4512 = vmatprep.subr.bf16.mxu1 %v6033_v63  ;;  %v2329_v63 = vpop.permute.xlu1 %2328 }
 0x485   :  { %4513 = vmatpush2.bf16.msra.mxu1 %v6031_v11  ;;  %v2333_v11 = vrot.slane %v2329_v63, %v6249_v38 }
 0x486   :  { %4514 = vmatprep.subr.bf16.mxu1 %v6036_v12  ;;  %v2324_v12 = vpop.xlane.xlu0 %2323 }
 0x489   :  { %4515 = vmatpush2.bf16.msra.mxu1 %v6034_v57  ;;  %v2335_v57 = vadd.f32 %v2333_v11, %v2324_v12 }
 0x48a   :  { %4516 = vmatprep.subr.bf16.mxu1 %v6039_v13 }
 0x48d   :  { %4517 = vmatpush2.bf16.msra.mxu1 %v6037_v14 }
 0x490   :  { %4519 = vmatmul.mubr.bf16.vlgmr.msra.gmra.mxu1 %v6396_v47 }
 0x4bd   :  { %v4585_v13 = vpop.permute.xlu1 %4584 }
 0x4be   :  { %v4589_v14 = vrot.slane %v4585_v13, %v6249_v38 }
 0x4d0   :  { %v4397_v15 = vpop.f32.mrf.mxu0 }
 0x4d1   :  { %v4398_v25 = vadd.f32 %v4397_v15, %v3706_v62 }
 0x4d2   :  { %v4399_v5 = vpop.f32.mrf.mxu0 }
 0x4d3   :  { %v4400_v21 = vadd.f32 %v4399_v5, %v3710_v23 }
 0x4d4   :  { %v4401_v16 = vpop.f32.mrf.mxu0 }
 0x4d5   :  { %v2341_v16 = vand.u32 127, %v117_v35 }
 0x4d6   :  { %v4402_v32 = vpop.f32.mrf.mxu0 }
 0x4d7   :  { %v2344_v32 = vsub.s32 %v2341_v16, %v6243_v36 }
 0x510   :  { %v4438_v26 = vpop.f32.mrf.mxu1  ;;  %v4479_v27 = vpop.f32.mrf.mxu0 }
 0x511   :  { %v4439_v29 = vadd.f32 %v4438_v26, %v4398_v25  ;;  %v4480_v59 = vadd.f32 %v4479_v27, %v3714_v55 }
 0x512   :  { %v4440_v33 = vpop.f32.mrf.mxu1  ;;  %v4481_v34 = vpop.f32.mrf.mxu0 }
 0x513   :  { %v4527_v42 = vmax.f32 %v4439_v29, 0.0  ;;  %v4441_v43 = vadd.f32 %v4440_v33, %v4400_v21  ;;  %v4482_v61 = vadd.f32 %v4481_v34, %v3718_v37 }
 0x514   :  { %v4442_v30 = vpop.f32.mrf.mxu1  ;;  %v4483_v46 = vpop.f32.mrf.mxu0 }
 0x515   :  { %v4568_v40 = vmul.f32 %v4555_v31, %v4527_v42  ;;  %v4528_v47 = vmax.f32 %v4441_v43, 0.0 }
 0x516   :  { %v4443_v48 = vpop.f32.mrf.mxu1  ;;  %v4484_v49 = vpop.f32.mrf.mxu0 }
 0x517   :  { %v4569_v50 = vmul.f32 %v4559_v44, %v4528_v47  ;;  %v4572_v19 = vsel %vm2315_vm2, %v4568_v40, 0.0 }
 0x519   :  { %v4573_v52 = vsel %vm2315_vm2, %v4569_v50, 0.0 }
 0x51a   :  { %v4574_v45 = vadd.f32 %v4573_v52, %v4572_v19 }
 0x550   :  { %v4520_v60 = vpop.f32.mrf.mxu1 }
 0x551   :  { %v4521_v1 = vadd.f32 %v4520_v60, %v4480_v59 }
 0x552   :  { %v4522_v51 = vpop.f32.mrf.mxu1 }
 0x553   :  { %v4529_v28 = vmax.f32 %v4521_v1, 0.0  ;;  %v4523_v3 = vadd.f32 %v4522_v51, %v4482_v61 }
 0x554   :  { %v4524_v39 = vpop.f32.mrf.mxu1 }
 0x555   :  { %v4570_v4 = vmul.f32 %v4563_v2, %v4529_v28  ;;  %v4530_v41 = vmax.f32 %v4523_v3, 0.0 }
 0x556   :  { %v4525_v7 = vpop.f32.mrf.mxu1 }
 0x557   :  { %v4571_v8 = vmul.f32 %v4567_v56, %v4530_v41  ;;  %v4575_v53 = vsel %vm2315_vm2, %v4570_v4, 0.0 }
 0x558   :  { %v4576_v9 = vadd.f32 %v4575_v53, %v4574_v45 }
 0x559   :  { %v4577_v54 = vsel %vm2315_vm2, %v4571_v8, 0.0 }
 0x55a   :  { %v4578_v10 = vadd.f32 %v4577_v54, %v4576_v9 }
 0x55c   :  { %4579 = vadd.xlane.f32.xlu0 %v4578_v10 }
 0x572   :  { %2338 = vperm.xlu0 %5203, %v2335_v57  }
 0x5e5   :  { %v4580_v15 = vpop.xlane.xlu0 %4579 }
 0x5e6   :  { %v4591_v5 = vadd.f32 %v4589_v14, %v4580_v15 }
 0x5e8   :  { %4594 = vperm.xlu1 %5202, %v4591_v5  }
 0x5ed   :  { %v2339_v17 = vpop.permute.xlu0 %2338 }
 0x5ee   :  { %v2345_v20 = vrot.slane %v2339_v17, %v2344_v32 }
 0x5f0   :  { %2348 = vst.msk [vmem:[#allocation10] sm:$0x1] %vm2347_vm3, %v2345_v20 }
 0x663   :  { %v4595_v6 = vpop.permute.xlu1 %4594 }
 0x664   :  { %v4599_v22 = vrot.slane %v4595_v6, %v2344_v32 }
 0x666   :  { %4601 = vst.msk [vmem:[#allocation10 + $0x1] sm:$0x1] %vm2347_vm3, %v4599_v22 }
 0x667   :  { %6132 = shalt.err (!%p6129_p10)
}
 0x668   :  { %4611 = dma.vmem_to_hbm [thread:$0]  %s4609_s7, 32, %s6444_s9, [#allocation4]  }
 0x669   :  { %6147 = dma.done.wait [#allocation4], 32  }
 0x66a   :  { %6148 = vsyncadd [#allocation4], 4294967264 }
 0x66b   :  { %4615 = vsyncpa [#allocation3], 1 }
 0x66c   :  { %4616 = vsyncpa [#allocation6], 1 }
 0x66d   :  { %4617 = vsyncpa [#allocation9], 1 }
 0x66e   :  { %4618 = vsyncpa [#allocation4], 1 }

// kernel: tpu_custom_call.1
= control target key start
LH: loop header
LB: loop body
LE: loop exit
PB: predicated region body
PF: predicated region fallthrough
CT: control target
= control target key end

     0   :  { %14 = vsyncpa [#allocation3], 0  ;;  %s6435_s0 = inlined_call_operand.hbm [shape: f32[2,88], index: 0, kind: input, shape index: {}]   ;;  %s6436_s1 = inlined_call_operand.hbm [shape: bf16[2,88,512], index: 1, kind: input, shape index: {}]   ;;  %s6437_s2 = inlined_call_operand.vmem [shape: f32[2,1,512], index: 2, kind: input, shape index: {}]   ;;  %s6438_s3 = inlined_call_operand.hbm [shape: bf16[2,512,512], index: 3, kind: input, shape index: {}]   ;;  %s6439_s4 = inlined_call_operand.vmem [shape: f32[2,1,512], index: 4, kind: input, shape index: {}]   ;;  %s6440_s5 = inlined_call_operand.hbm [shape: bf16[2,512,512], index: 5, kind: input, shape index: {}]   ;;  %s6441_s6 = inlined_call_operand.vmem [shape: f32[2,1,512], index: 6, kind: input, shape index: {}]   ;;  %s6442_s7 = inlined_call_operand.vmem [shape: bf16[2,1,512], index: 7, kind: input, shape index: {}]   ;;  %s6443_s8 = inlined_call_operand.vmem [shape: f32[2,1], index: 8, kind: input, shape index: {}]   ;;  %s6444_s9 = inlined_call_operand.hbm [shape: f32[2,2], index: 9, kind: output, shape index: {}]  }
   0x1   :  { %15 = vsyncpa [#allocation6], 0 }
   0x2   :  { %16 = vsyncpa [#allocation9], 0 }
   0x3   :  { %17 = vsyncpa [#allocation4], 0  ;;  %s6149_s30 = smov [#allocation5]  }
   0x4   :  { %s33_s10 = sshll.u32 %s6149_s30, 4  ;;  %s34_s10 = int_to_ptr.vmem [resolvable:$true] %s33_s10 }
   0x5   :  { %s6049_s11 = scalar_lea.vmem %s34_s10, 5632  ;;  %p6054_p1 = scmp.lt.s32.totalorder %s34_s10, %s34_s10 }
   0x6   :  { %p6050_p0 = scmp.ne.s32.totalorder %s34_s10, %s6049_s11  ;;  %p6055_p2 = scmp.lt.s32.totalorder %s6049_s11, %s6049_s11 }
   0x8   :  { %p6056_p3 = por %p6055_p2, %p6054_p1 }
   0xa   :  { %p6057_p4 = pnand %p6056_p3, %p6050_p0 }
   0xc   :  { %6060 = shalt.err (!%p6057_p4)
}
   0xd   :  { %s6150_s12 = smov 256   ;;  %s6151_s13 = smov 16  }
   0xe   :  { %39 = dma.hbm_to_vmem [thread:$0]  %s6436_s1, 5632, %s34_s10, [#allocation6], %s6150_s12, %s6150_s12, %s6151_s13  }
   0xf   :  { %s6152_s16 = smov [#allocation2]   ;;  %s6153_s18 = smov [#allocation7]  }
  0x10   :  { %s24_s17 = sshll.u32 %s6152_s16, 4  ;;  %s47_s19 = sshll.u32 %s6153_s18, 4  ;;  %s25_s17 = int_to_ptr.vmem [resolvable:$true] %s24_s17  ;;  %s48_s19 = int_to_ptr.vmem [resolvable:$true] %s47_s19 }
  0x11   :  { %s6069_s20 = scalar_lea.vmem %s25_s17, 32  ;;  %p6074_p6 = scmp.lt.s32.totalorder %s25_s17, %s25_s17 }
  0x12   :  { %p6070_p5 = scmp.ne.s32.totalorder %s25_s17, %s6069_s20  ;;  %p6075_p7 = scmp.lt.s32.totalorder %s6069_s20, %s6069_s20 }
  0x14   :  { %p6076_p8 = por %p6075_p7, %p6074_p6 }
  0x16   :  { %p6077_p9 = pnand %p6076_p8, %p6070_p5 }
  0x18   :  { %6080 = shalt.err (!%p6077_p9)
}
  0x19   :  { %27 = dma.hbm_to_vmem [thread:$0]  %s6435_s0, 32, %s25_s17, [#allocation3]  }
  0x1a   :  { %s6089_s23 = scalar_lea.vmem %s48_s19, 32768  ;;  %p6094_p11 = scmp.lt.s32.totalorder %s48_s19, %s48_s19 }
  0x1b   :  { %p6090_p10 = scmp.ne.s32.totalorder %s48_s19, %s6089_s23  ;;  %p6095_p12 = scmp.lt.s32.totalorder %s6089_s23, %s6089_s23 }
  0x1d   :  { %p6096_p13 = por %p6095_p12, %p6094_p11 }
  0x1f   :  { %p6097_p0 = pnand %p6096_p13, %p6090_p10 }
  0x21   :  { %6100 = shalt.err (!%p6097_p0)
}
  0x22   :  { %53 = dma.hbm_to_vmem [thread:$0]  %s6438_s3, 32768, %s48_s19, [#allocation6], %s6150_s12, %s6150_s12, %s6151_s13  }
  0x23   :  { %s6154_s25 = smov [#allocation8]  }
  0x24   :  { %s61_s26 = sshll.u32 %s6154_s25, 4  ;;  %s62_s26 = int_to_ptr.vmem [resolvable:$true] %s61_s26 }
  0x25   :  { %s6109_s27 = scalar_lea.vmem %s62_s26, 32768  ;;  %p6114_p2 = scmp.lt.s32.totalorder %s62_s26, %s62_s26 }
  0x26   :  { %p6110_p1 = scmp.ne.s32.totalorder %s62_s26, %s6109_s27  ;;  %p6115_p3 = scmp.lt.s32.totalorder %s6109_s27, %s6109_s27 }
  0x28   :  { %p6116_p4 = por %p6115_p3, %p6114_p2 }
  0x2a   :  { %p6117_p5 = pnand %p6116_p4, %p6110_p1 }
  0x2c   :  { %6120 = shalt.err (!%p6117_p5)
}
  0x2d   :  { %67 = dma.hbm_to_vmem [thread:$0]  %s6440_s5, 32768, %s62_s26, [#allocation9], %s6150_s12, %s6150_s12, %s6151_s13  }
  0x2e   :  { %6141 = dma.done.wait [#allocation3], 32  }
  0x2f   :  { %6142 = vsyncadd [#allocation3], 4294967264 }
  0x30   :  { %6143 = dma.done.wait [#allocation6], 38400  }
  0x31   :  { %6144 = vsyncadd [#allocation6], 4294928896 }
  0x32   :  { %6145 = dma.done.wait [#allocation9], 32768  }
  0x33   :  { %6146 = vsyncadd [#allocation9], 4294934528  ;;  %v6155_v0 = vmov 0   ;;  %v113_v1 = vld [vmem:[#allocation5 + $0xa0] sm:$0xff]  ;;  %vm251_vm0 = vcmask 1043456   ;;  %v114_v2 = vld [vmem:[#allocation5 + $0xa8] sm:$0xff] }
  0x34   :  { %296 = vmatprep.mubr.bf16.mxu0 %v6155_v0  ;;  %337 = vmatprep.mubr.bf16.mxu1 %v6155_v0  ;;  %v4640_v3 = vcombine.high %v113_v1, %v113_v1  ;;  %v4642_v4 = vcombine.high %v114_v2, %v114_v2  ;;  %v4639_v5 = vcombine.low %v113_v1, %v113_v1  ;;  %v5208_v7 = vld [vmem:[#allocation5 + $0x84] ss:$16 sps:$4 sm:$0xff]   ;;  %v5210_v8 = vld [vmem:[#allocation5 + $0x8c] ss:$16 sps:$4 sm:$0xff]   ;;  %v5212_v11 = vld [vmem:[#allocation5 + $0x80] ss:$16 sps:$4 sm:$0xff]  }
  0x35   :  { %5202 = vset.pattern.permute.xlu1 %v6155_v0  ;;  %5203 = vset.pattern.permute.xlu0 %v6155_v0  ;;  %v4641_v6 = vcombine.low %v114_v2, %v114_v2  ;;  %v5213_v12 = vld [vmem:[#allocation5 + $0x88] ss:$16 sps:$4 sm:$0xff]   ;;  %v5214_v13 = vld [vmem:[#allocation5 + $0x64] ss:$16 sps:$4 sm:$0xff]   ;;  %v5216_v14 = vld [vmem:[#allocation5 + $0x6c] ss:$16 sps:$4 sm:$0xff]  }
  0x36   :  { %4643 = vmatprep.subr.msk.bf16.mxu0 %vm251_vm0, %v4640_v3  ;;  %4645 = vmatprep.subr.msk.bf16.mxu1 %vm251_vm0, %v4642_v4  ;;  %v253_v9 = vsel %vm251_vm0, %v4639_v5, 0  ;;  %v5218_v15 = vld [vmem:[#allocation5 + $0x60] ss:$16 sps:$4 sm:$0xff]   ;;  %v5219_v16 = vld [vmem:[#allocation5 + $0x68] ss:$16 sps:$4 sm:$0xff]   ;;  %vm247_vm1 = vcmask 719872  }
  0x37   :  { %v259_v10 = vsel %vm251_vm0, %v4641_v6, 0  ;;  %269 = vmatpush1.bf16.msra.mxu0 %v253_v9  ;;  %v5220_v17 = vld [vmem:[#allocation5 + $0x44] ss:$16 sps:$4 sm:$0xff]   ;;  %v5222_v18 = vld [vmem:[#allocation5 + $0x4c] ss:$16 sps:$4 sm:$0xff]   ;;  %vm2315_vm2 = vcmask 1041408  }
  0x38   :  { %310 = vmatpush1.bf16.msra.mxu1 %v259_v10  ;;  %270 = vmatprep.subr.bf16.mxu0 %v5208_v7  ;;  %v5224_v19 = vld [vmem:[#allocation5 + $0x40] ss:$16 sps:$4 sm:$0xff]   ;;  %v5225_v20 = vld [vmem:[#allocation5 + $0x48] ss:$16 sps:$4 sm:$0xff]   ;;  %v5226_v21 = vld [vmem:[#allocation5 + $0x24] ss:$16 sps:$4 sm:$0xff]  }
  0x39   :  { %311 = vmatprep.subr.bf16.mxu1 %v5210_v8  ;;  %v5228_v22 = vld [vmem:[#allocation5 + $0x2c] ss:$16 sps:$4 sm:$0xff]   ;;  %v5230_v23 = vld [vmem:[#allocation5 + $0x20] ss:$16 sps:$4 sm:$0xff]   ;;  %v5231_v24 = vld [vmem:[#allocation5 + $0x28] ss:$16 sps:$4 sm:$0xff]  }
  0x3a   :  { %v5232_v25 = vld [vmem:[#allocation5 + $0x4] ss:$16 sps:$4 sm:$0xff]   ;;  %v5234_v26 = vld [vmem:[#allocation5 + $0xc] ss:$16 sps:$4 sm:$0xff]   ;;  %v5236_v27 = vld [vmem:[#allocation5] ss:$16 sps:$4 sm:$0xff]  }
  0x3b   :  { %271 = vmatpush1.bf16.msra.mxu0 %v5212_v11  ;;  %v5237_v28 = vld [vmem:[#allocation5 + $0x8] ss:$16 sps:$4 sm:$0xff]   ;;  %v87_v29 = vld [vmem:[#allocation2] sm:$0x3]  ;;  %v5240_v30 = vld [vmem:[#allocation7 + $0xe4] ss:$16 sps:$4 sm:$0xff]  }
  0x3c   :  { %312 = vmatpush1.bf16.msra.mxu1 %v5213_v12  ;;  %272 = vmatprep.subr.bf16.mxu0 %v5214_v13  ;;  %v5243_v31 = vld [vmem:[#allocation7 + $0x2e4] ss:$16 sps:$4 sm:$0xff]   ;;  %v6236_v32 = vpack.c.bf16 %v87_v29, %v87_v29  ;;  %v5238_v33 = vld [vmem:[#allocation7 + $0xe0] ss:$16 sps:$4 sm:$0xff]   ;;  %vm2347_vm3 = vcmask 8192  }
  0x3d   :  { %313 = vmatprep.subr.bf16.mxu1 %v5216_v14  ;;  %v5241_v34 = vld [vmem:[#allocation7 + $0x2e0] ss:$16 sps:$4 sm:$0xff]   ;;  %v5246_v35 = vld [vmem:[#allocation7 + $0xc4] ss:$16 sps:$4 sm:$0xff]  }
  0x3e   :  { %v5249_v36 = vld [vmem:[#allocation7 + $0x2c4] ss:$16 sps:$4 sm:$0xff]   ;;  %v5244_v37 = vld [vmem:[#allocation7 + $0xc0] ss:$16 sps:$4 sm:$0xff]  }
  0x3f   :  { %273 = vmatpush1.bf16.msra.mxu0 %v5218_v15  ;;  %v5247_v38 = vld [vmem:[#allocation7 + $0x2c0] ss:$16 sps:$4 sm:$0xff]   ;;  %v5252_v39 = vld [vmem:[#allocation7 + $0xa4] ss:$16 sps:$4 sm:$0xff]  }
  0x40   :  { %314 = vmatpush1.bf16.msra.mxu1 %v5219_v16  ;;  %274 = vmatprep.subr.bf16.mxu0 %v5220_v17  ;;  %v5255_v40 = vld [vmem:[#allocation7 + $0x2a4] ss:$16 sps:$4 sm:$0xff]   ;;  %v5250_v41 = vld [vmem:[#allocation7 + $0xa0] ss:$16 sps:$4 sm:$0xff]  }
  0x41   :  { %315 = vmatprep.subr.bf16.mxu1 %v5222_v18  ;;  %v5253_v42 = vld [vmem:[#allocation7 + $0x2a0] ss:$16 sps:$4 sm:$0xff]   ;;  %v5258_v43 = vld [vmem:[#allocation7 + $0x84] ss:$16 sps:$4 sm:$0xff]  }
  0x42   :  { %v5261_v44 = vld [vmem:[#allocation7 + $0x284] ss:$16 sps:$4 sm:$0xff]   ;;  %v5256_v45 = vld [vmem:[#allocation7 + $0x80] ss:$16 sps:$4 sm:$0xff]  }
  0x43   :  { %275 = vmatpush1.bf16.msra.mxu0 %v5224_v19  ;;  %v5259_v46 = vld [vmem:[#allocation7 + $0x280] ss:$16 sps:$4 sm:$0xff]   ;;  %v5264_v47 = vld [vmem:[#allocation7 + $0x64] ss:$16 sps:$4 sm:$0xff]  }
  0x44   :  { %316 = vmatpush1.bf16.msra.mxu1 %v5225_v20  ;;  %276 = vmatprep.subr.bf16.mxu0 %v5226_v21  ;;  %v5267_v48 = vld [vmem:[#allocation7 + $0x264] ss:$16 sps:$4 sm:$0xff]   ;;  %v5262_v49 = vld [vmem:[#allocation7 + $0x60] ss:$16 sps:$4 sm:$0xff]  }
  0x45   :  { %317 = vmatprep.subr.bf16.mxu1 %v5228_v22  ;;  %v5265_v50 = vld [vmem:[#allocation7 + $0x260] ss:$16 sps:$4 sm:$0xff]   ;;  %v5270_v51 = vld [vmem:[#allocation7 + $0x44] ss:$16 sps:$4 sm:$0xff]  }
  0x46   :  { %v5273_v52 = vld [vmem:[#allocation7 + $0x244] ss:$16 sps:$4 sm:$0xff]   ;;  %v5268_v53 = vld [vmem:[#allocation7 + $0x40] ss:$16 sps:$4 sm:$0xff]  }
  0x47   :  { %277 = vmatpush1.bf16.msra.mxu0 %v5230_v23  ;;  %v5271_v54 = vld [vmem:[#allocation7 + $0x240] ss:$16 sps:$4 sm:$0xff]   ;;  %v5276_v55 = vld [vmem:[#allocation7 + $0x24] ss:$16 sps:$4 sm:$0xff]  }
  0x48   :  { %318 = vmatpush1.bf16.msra.mxu1 %v5231_v24  ;;  %278 = vmatprep.subr.bf16.mxu0 %v5232_v25  ;;  %v5279_v56 = vld [vmem:[#allocation7 + $0x224] ss:$16 sps:$4 sm:$0xff]   ;;  %v5274_v57 = vld [vmem:[#allocation7 + $0x20] ss:$16 sps:$4 sm:$0xff]  }
  0x49   :  { %319 = vmatprep.subr.bf16.mxu1 %v5234_v26  ;;  %v5277_v58 = vld [vmem:[#allocation7 + $0x220] ss:$16 sps:$4 sm:$0xff]   ;;  %v5282_v59 = vld [vmem:[#allocation7 + $0x4] ss:$16 sps:$4 sm:$0xff]  }
  0x4a   :  { %v5285_v60 = vld [vmem:[#allocation7 + $0x204] ss:$16 sps:$4 sm:$0xff]   ;;  %v5280_v61 = vld [vmem:[#allocation7] ss:$16 sps:$4 sm:$0xff]  }
  0x4b   :  { %279 = vmatpush1.bf16.msra.mxu0 %v5236_v27  ;;  %v5283_v62 = vld [vmem:[#allocation7 + $0x200] ss:$16 sps:$4 sm:$0xff]   ;;  %v5288_v63 = vld [vmem:[#allocation7 + $0x1e4] ss:$16 sps:$4 sm:$0xff]  }
  0x4c   :  { %320 = vmatpush1.bf16.msra.mxu1 %v5237_v28  ;;  %1144 = vmatprep.subr.bf16.mxu0 %v5240_v30  ;;  %v5291_v1 = vld [vmem:[#allocation7 + $0x3e4] ss:$16 sps:$4 sm:$0xff]   ;;  %v5286_v2 = vld [vmem:[#allocation7 + $0x1e0] ss:$16 sps:$4 sm:$0xff]  }
  0x4d   :  { %1185 = vmatprep.subr.bf16.mxu1 %v5243_v31  ;;  %v5289_v3 = vld [vmem:[#allocation7 + $0x3e0] ss:$16 sps:$4 sm:$0xff]   ;;  %v5294_v4 = vld [vmem:[#allocation7 + $0x1c4] ss:$16 sps:$4 sm:$0xff]  }
  0x4e   :  { %4644 = vmatmul.mubr.msk.bf16.vlgmr.msra.gmra.mxu0 %vm247_vm1, %v6236_v32  ;;  %v5297_v5 = vld [vmem:[#allocation7 + $0x3c4] ss:$16 sps:$4 sm:$0xff]   ;;  %v5292_v6 = vld [vmem:[#allocation7 + $0x1c0] ss:$16 sps:$4 sm:$0xff]  }
  0x4f   :  { %4646 = vmatmul.mubr.msk.bf16.vlgmr.msra.gmra.mxu1 %vm247_vm1, %v6236_v32  ;;  %1145 = vmatpush1.bf16.msra.mxu0 %v5238_v33  ;;  %v5295_v7 = vld [vmem:[#allocation7 + $0x3c0] ss:$16 sps:$4 sm:$0xff]   ;;  %v5300_v8 = vld [vmem:[#allocation7 + $0x1a4] ss:$16 sps:$4 sm:$0xff]   ;;  %v5336_v33 = vld [vmem:[#allocation7 + $0xec] ss:$16 sps:$4 sm:$0xff]  }
  0x50   :  { %1186 = vmatpush1.bf16.msra.mxu1 %v5241_v34  ;;  %1146 = vmatprep.subr.bf16.mxu0 %v5246_v35  ;;  %v5303_v9 = vld [vmem:[#allocation7 + $0x3a4] ss:$16 sps:$4 sm:$0xff]   ;;  %v5298_v10 = vld [vmem:[#allocation7 + $0x1a0] ss:$16 sps:$4 sm:$0xff]   ;;  %v5339_v34 = vld [vmem:[#allocation7 + $0x2ec] ss:$16 sps:$4 sm:$0xff]   ;;  %v117_v35 = vlaneseq }
  0x51   :  { %1187 = vmatprep.subr.bf16.mxu1 %v5249_v36  ;;  %v5301_v11 = vld [vmem:[#allocation7 + $0x3a0] ss:$16 sps:$4 sm:$0xff]   ;;  %v5306_v12 = vld [vmem:[#allocation7 + $0x184] ss:$16 sps:$4 sm:$0xff]  }
  0x52   :  { %v5309_v13 = vld [vmem:[#allocation7 + $0x384] ss:$16 sps:$4 sm:$0xff]   ;;  %v5304_v14 = vld [vmem:[#allocation7 + $0x180] ss:$16 sps:$4 sm:$0xff]   ;;  %v6243_v36 = vshrl.u32 %v117_v35, 7 }
  0x53   :  { %1147 = vmatpush1.bf16.msra.mxu0 %v5244_v37  ;;  %v5307_v15 = vld [vmem:[#allocation7 + $0x380] ss:$16 sps:$4 sm:$0xff]   ;;  %v5312_v16 = vld [vmem:[#allocation7 + $0x164] ss:$16 sps:$4 sm:$0xff]  }
  0x54   :  { %1188 = vmatpush1.bf16.msra.mxu1 %v5247_v38  ;;  %1148 = vmatprep.subr.bf16.mxu0 %v5252_v39  ;;  %v5315_v17 = vld [vmem:[#allocation7 + $0x364] ss:$16 sps:$4 sm:$0xff]   ;;  %v5310_v18 = vld [vmem:[#allocation7 + $0x160] ss:$16 sps:$4 sm:$0xff]   ;;  %v6249_v38 = vsub.s32 0, %v6243_v36  ;;  %v6252_v39 = vsub.s32 2, %v6243_v36 }
  0x55   :  { %1189 = vmatprep.subr.bf16.mxu1 %v5255_v40  ;;  %v5313_v19 = vld [vmem:[#allocation7 + $0x360] ss:$16 sps:$4 sm:$0xff]   ;;  %v5318_v20 = vld [vmem:[#allocation7 + $0x144] ss:$16 sps:$4 sm:$0xff]   ;;  %v6255_v40 = vsub.s32 1, %v6243_v36 }
  0x56   :  { %v5321_v21 = vld [vmem:[#allocation7 + $0x344] ss:$16 sps:$4 sm:$0xff]   ;;  %v5316_v22 = vld [vmem:[#allocation7 + $0x140] ss:$16 sps:$4 sm:$0xff]  }
  0x57   :  { %1149 = vmatpush1.bf16.msra.mxu0 %v5250_v41  ;;  %v5319_v23 = vld [vmem:[#allocation7 + $0x340] ss:$16 sps:$4 sm:$0xff]   ;;  %v5324_v24 = vld [vmem:[#allocation7 + $0x124] ss:$16 sps:$4 sm:$0xff]   ;;  %v6258_v41 = vsub.s32 3, %v6243_v36 }
  0x58   :  { %1190 = vmatpush1.bf16.msra.mxu1 %v5253_v42  ;;  %1150 = vmatprep.subr.bf16.mxu0 %v5258_v43  ;;  %v5327_v25 = vld [vmem:[#allocation7 + $0x324] ss:$16 sps:$4 sm:$0xff]   ;;  %v5322_v26 = vld [vmem:[#allocation7 + $0x120] ss:$16 sps:$4 sm:$0xff]  }
  0x59   :  { %1191 = vmatprep.subr.bf16.mxu1 %v5261_v44  ;;  %v5325_v27 = vld [vmem:[#allocation7 + $0x320] ss:$16 sps:$4 sm:$0xff]   ;;  %v5330_v28 = vld [vmem:[#allocation7 + $0x104] ss:$16 sps:$4 sm:$0xff]  }
  0x5a   :  { %v5333_v29 = vld [vmem:[#allocation7 + $0x304] ss:$16 sps:$4 sm:$0xff]   ;;  %v5328_v30 = vld [vmem:[#allocation7 + $0x100] ss:$16 sps:$4 sm:$0xff]  }
  0x5b   :  { %1151 = vmatpush1.bf16.msra.mxu0 %v5256_v45  ;;  %v5331_v31 = vld [vmem:[#allocation7 + $0x300] ss:$16 sps:$4 sm:$0xff]  }
  0x5c   :  { %1192 = vmatpush1.bf16.msra.mxu1 %v5259_v46  ;;  %1152 = vmatprep.subr.bf16.mxu0 %v5264_v47  ;;  %v115_v37 = vld [vmem:[%s6437_s2] sm:$0xf] }
  0x5d   :  { %1193 = vmatprep.subr.bf16.mxu1 %v5267_v48  ;;  %v120_v42 = vrot.slane %v115_v37, %v6249_v38  ;;  %v128_v43 = vrot.slane %v115_v37, %v6252_v39  ;;  %v124_v44 = vrot.slane %v115_v37, %v6255_v40  ;;  %v132_v45 = vrot.slane %v115_v37, %v6258_v41  ;;  %v5387_v37 = vld [vmem:[#allocation7 + $0x3ec] ss:$16 sps:$4 sm:$0xff]  }
  0x5f   :  { %1153 = vmatpush1.bf16.msra.mxu0 %v5262_v49 }
  0x60   :  { %1194 = vmatpush1.bf16.msra.mxu1 %v5265_v50  ;;  %1154 = vmatprep.subr.bf16.mxu0 %v5270_v51 }
  0x61   :  { %1195 = vmatprep.subr.bf16.mxu1 %v5273_v52 }
  0x63   :  { %1155 = vmatpush1.bf16.msra.mxu0 %v5268_v53 }
  0x64   :  { %1196 = vmatpush1.bf16.msra.mxu1 %v5271_v54  ;;  %1156 = vmatprep.subr.bf16.mxu0 %v5276_v55 }
  0x65   :  { %1197 = vmatprep.subr.bf16.mxu1 %v5279_v56 }
  0x67   :  { %1157 = vmatpush1.bf16.msra.mxu0 %v5274_v57 }
  0x68   :  { %1198 = vmatpush1.bf16.msra.mxu1 %v5277_v58  ;;  %1158 = vmatprep.subr.bf16.mxu0 %v5282_v59 }
  0x69   :  { %1199 = vmatprep.subr.bf16.mxu1 %v5285_v60  ;;  %v5334_v60 = vld [vmem:[#allocation7 + $0xe8] ss:$16 sps:$4 sm:$0xff]  }
  0x6b   :  { %1159 = vmatpush1.bf16.msra.mxu0 %v5280_v61  ;;  %v5337_v61 = vld [vmem:[#allocation7 + $0x2e8] ss:$16 sps:$4 sm:$0xff]  }
  0x6c   :  { %1200 = vmatpush1.bf16.msra.mxu1 %v5283_v62  ;;  %1160 = vmatprep.subr.bf16.mxu0 %v5288_v63 }
  0x6d   :  { %1201 = vmatprep.subr.bf16.mxu1 %v5291_v1 }
  0x6f   :  { %1161 = vmatpush2.bf16.msra.mxu0 %v5286_v2 }
  0x70   :  { %1202 = vmatpush2.bf16.msra.mxu1 %v5289_v3  ;;  %1162 = vmatprep.subr.bf16.mxu0 %v5294_v4  ;;  %v5342_v4 = vld [vmem:[#allocation7 + $0xcc] ss:$16 sps:$4 sm:$0xff]  }
  0x71   :  { %1203 = vmatprep.subr.bf16.mxu1 %v5297_v5  ;;  %v5345_v5 = vld [vmem:[#allocation7 + $0x2cc] ss:$16 sps:$4 sm:$0xff]  }
  0x73   :  { %1163 = vmatpush2.bf16.msra.mxu0 %v5292_v6 }
  0x74   :  { %1204 = vmatpush2.bf16.msra.mxu1 %v5295_v7  ;;  %1164 = vmatprep.subr.bf16.mxu0 %v5300_v8  ;;  %v5340_v7 = vld [vmem:[#allocation7 + $0xc8] ss:$16 sps:$4 sm:$0xff]  }
  0x75   :  { %1205 = vmatprep.subr.bf16.mxu1 %v5303_v9  ;;  %v5343_v8 = vld [vmem:[#allocation7 + $0x2c8] ss:$16 sps:$4 sm:$0xff]   ;;  %v5348_v9 = vld [vmem:[#allocation7 + $0xac] ss:$16 sps:$4 sm:$0xff]  }
  0x77   :  { %1165 = vmatpush2.bf16.msra.mxu0 %v5298_v10  ;;  %v5351_v10 = vld [vmem:[#allocation7 + $0x2ac] ss:$16 sps:$4 sm:$0xff]  }
  0x78   :  { %1206 = vmatpush2.bf16.msra.mxu1 %v5301_v11  ;;  %1166 = vmatprep.subr.bf16.mxu0 %v5306_v12  ;;  %v5346_v11 = vld [vmem:[#allocation7 + $0xa8] ss:$16 sps:$4 sm:$0xff]  }
  0x79   :  { %1207 = vmatprep.subr.bf16.mxu1 %v5309_v13  ;;  %v5349_v12 = vld [vmem:[#allocation7 + $0x2a8] ss:$16 sps:$4 sm:$0xff]   ;;  %v5354_v13 = vld [vmem:[#allocation7 + $0x8c] ss:$16 sps:$4 sm:$0xff]  }
  0x7b   :  { %1167 = vmatpush2.bf16.msra.mxu0 %v5304_v14  ;;  %v5357_v14 = vld [vmem:[#allocation7 + $0x28c] ss:$16 sps:$4 sm:$0xff]  }
  0x7c   :  { %1208 = vmatpush2.bf16.msra.mxu1 %v5307_v15  ;;  %1168 = vmatprep.subr.bf16.mxu0 %v5312_v16  ;;  %v5352_v15 = vld [vmem:[#allocation7 + $0x88] ss:$16 sps:$4 sm:$0xff]  }
  0x7d   :  { %1209 = vmatprep.subr.bf16.mxu1 %v5315_v17  ;;  %v5355_v16 = vld [vmem:[#allocation7 + $0x288] ss:$16 sps:$4 sm:$0xff]   ;;  %v5360_v17 = vld [vmem:[#allocation7 + $0x6c] ss:$16 sps:$4 sm:$0xff]  }
  0x7f   :  { %1169 = vmatpush2.bf16.msra.mxu0 %v5310_v18  ;;  %v5363_v18 = vld [vmem:[#allocation7 + $0x26c] ss:$16 sps:$4 sm:$0xff]  }
  0x80   :  { %1210 = vmatpush2.bf16.msra.mxu1 %v5313_v19  ;;  %1170 = vmatprep.subr.bf16.mxu0 %v5318_v20  ;;  %v5358_v19 = vld [vmem:[#allocation7 + $0x68] ss:$16 sps:$4 sm:$0xff]  }
  0x81   :  { %1211 = vmatprep.subr.bf16.mxu1 %v5321_v21  ;;  %v5361_v20 = vld [vmem:[#allocation7 + $0x268] ss:$16 sps:$4 sm:$0xff]   ;;  %v5366_v21 = vld [vmem:[#allocation7 + $0x4c] ss:$16 sps:$4 sm:$0xff]  }
  0x83   :  { %1171 = vmatpush2.bf16.msra.mxu0 %v5316_v22  ;;  %v5369_v22 = vld [vmem:[#allocation7 + $0x24c] ss:$16 sps:$4 sm:$0xff]  }
  0x84   :  { %1212 = vmatpush2.bf16.msra.mxu1 %v5319_v23  ;;  %1172 = vmatprep.subr.bf16.mxu0 %v5324_v24  ;;  %v5364_v23 = vld [vmem:[#allocation7 + $0x48] ss:$16 sps:$4 sm:$0xff]  }
  0x85   :  { %1213 = vmatprep.subr.bf16.mxu1 %v5327_v25  ;;  %v5367_v24 = vld [vmem:[#allocation7 + $0x248] ss:$16 sps:$4 sm:$0xff]   ;;  %v5372_v25 = vld [vmem:[#allocation7 + $0x2c] ss:$16 sps:$4 sm:$0xff]  }
  0x87   :  { %1173 = vmatpush2.bf16.msra.mxu0 %v5322_v26  ;;  %v5375_v26 = vld [vmem:[#allocation7 + $0x22c] ss:$16 sps:$4 sm:$0xff]  }
  0x88   :  { %1214 = vmatpush2.bf16.msra.mxu1 %v5325_v27  ;;  %1174 = vmatprep.subr.bf16.mxu0 %v5330_v28  ;;  %v5370_v27 = vld [vmem:[#allocation7 + $0x28] ss:$16 sps:$4 sm:$0xff]  }
  0x89   :  { %1215 = vmatprep.subr.bf16.mxu1 %v5333_v29  ;;  %v5373_v28 = vld [vmem:[#allocation7 + $0x228] ss:$16 sps:$4 sm:$0xff]   ;;  %v5378_v29 = vld [vmem:[#allocation7 + $0xc] ss:$16 sps:$4 sm:$0xff]  }
  0x8b   :  { %1175 = vmatpush2.bf16.msra.mxu0 %v5328_v30  ;;  %v5381_v30 = vld [vmem:[#allocation7 + $0x20c] ss:$16 sps:$4 sm:$0xff]  }
  0x8c   :  { %1216 = vmatpush2.bf16.msra.mxu1 %v5331_v31  ;;  %1226 = vmatprep.subr.bf16.mxu0 %v5336_v33  ;;  %v5376_v31 = vld [vmem:[#allocation7 + $0x8] ss:$16 sps:$4 sm:$0xff]  }
  0x8d   :  { %1267 = vmatprep.subr.bf16.mxu1 %v5339_v34  ;;  %v5379_v33 = vld [vmem:[#allocation7 + $0x208] ss:$16 sps:$4 sm:$0xff]   ;;  %v5384_v34 = vld [vmem:[#allocation7 + $0x1ec] ss:$16 sps:$4 sm:$0xff]  }
 0x10e   :  { %v298_v46 = vpop.f32.mrf.mxu0 }
 0x10f   :  { %v339_v47 = vpop.f32.mrf.mxu1  ;;  %v299_v48 = vadd.f32 %v298_v46, %v120_v42  ;;  %v5382_v42 = vld [vmem:[#allocation7 + $0x1e8] ss:$16 sps:$4 sm:$0xff]  }
 0x110   :  { %v340_v49 = vadd.f32 %v339_v47, %v128_v43  ;;  %v300_v50 = vpop.f32.mrf.mxu0  ;;  %v5385_v43 = vld [vmem:[#allocation7 + $0x3e8] ss:$16 sps:$4 sm:$0xff]  }
 0x111   :  { %v341_v51 = vpop.f32.mrf.mxu1  ;;  %v301_v53 = vadd.f32 %v300_v50, %v124_v44  ;;  %v346_v55 = vmax.f32 %v299_v48, 0.0  ;;  %v5390_v44 = vld [vmem:[#allocation7 + $0x1cc] ss:$16 sps:$4 sm:$0xff]   ;;  %v5388_v46 = vld [vmem:[#allocation7 + $0x1c8] ss:$16 sps:$4 sm:$0xff]  }
 0x112   :  { %v348_v52 = vmax.f32 %v340_v49, 0.0  ;;  %v342_v54 = vadd.f32 %v341_v51, %v132_v45  ;;  %v302_v56 = vpop.f32.mrf.mxu0  ;;  %v5393_v45 = vld [vmem:[#allocation7 + $0x3cc] ss:$16 sps:$4 sm:$0xff]   ;;  %v5391_v47 = vld [vmem:[#allocation7 + $0x3c8] ss:$16 sps:$4 sm:$0xff]  }
 0x113   :  { %v343_v57 = vpop.f32.mrf.mxu1  ;;  %v347_v58 = vmax.f32 %v301_v53, 0.0  ;;  %v6266_v6 = vpack.c.bf16 %v346_v55, %v346_v55  ;;  %v5396_v48 = vld [vmem:[#allocation7 + $0x1ac] ss:$16 sps:$4 sm:$0xff]   ;;  %v5394_v50 = vld [vmem:[#allocation7 + $0x1a8] ss:$16 sps:$4 sm:$0xff]  }
 0x114   :  { %v349_v59 = vmax.f32 %v342_v54, 0.0  ;;  %v6264_v62 = vpack.c.bf16 %v348_v52, %v348_v52  ;;  %v303_v63 = vpop.f32.mrf.mxu0  ;;  %v5399_v49 = vld [vmem:[#allocation7 + $0x3ac] ss:$16 sps:$4 sm:$0xff]   ;;  %v5397_v51 = vld [vmem:[#allocation7 + $0x3a8] ss:$16 sps:$4 sm:$0xff]  }
 0x115   :  { %v344_v1 = vpop.f32.mrf.mxu1  ;;  %v351_v2 = vpack.c.bf16 %v347_v58, %v347_v58  ;;  %v5402_v52 = vld [vmem:[#allocation7 + $0x18c] ss:$16 sps:$4 sm:$0xff]   ;;  %v5400_v54 = vld [vmem:[#allocation7 + $0x188] ss:$16 sps:$4 sm:$0xff]  }
 0x116   :  { %v353_v3 = vpack.c.bf16 %v349_v59, %v349_v59  ;;  %v5405_v53 = vld [vmem:[#allocation7 + $0x38c] ss:$16 sps:$4 sm:$0xff]   ;;  %v5403_v55 = vld [vmem:[#allocation7 + $0x388] ss:$16 sps:$4 sm:$0xff]  }
 0x117   :  { %1176 = vmatprep.mubr.bf16.mxu0 %v351_v2  ;;  %v5408_v56 = vld [vmem:[#allocation7 + $0x16c] ss:$16 sps:$4 sm:$0xff]   ;;  %v5406_v58 = vld [vmem:[#allocation7 + $0x168] ss:$16 sps:$4 sm:$0xff]  }
 0x118   :  { %1217 = vmatprep.mubr.bf16.mxu1 %v353_v3  ;;  %1177 = vmatmul.mubr.bf16.vlgmr.msra.gmra.mxu0 %v6266_v6  ;;  %v5411_v57 = vld [vmem:[#allocation7 + $0x36c] ss:$16 sps:$4 sm:$0xff]   ;;  %v5409_v59 = vld [vmem:[#allocation7 + $0x368] ss:$16 sps:$4 sm:$0xff]  }
 0x119   :  { %1218 = vmatmul.mubr.bf16.vlgmr.msra.gmra.mxu1 %v6264_v62  ;;  %1227 = vmatpush1.bf16.msra.mxu0 %v5334_v60  ;;  %v5414_v60 = vld [vmem:[#allocation7 + $0x14c] ss:$16 sps:$4 sm:$0xff]   ;;  %v5412_v63 = vld [vmem:[#allocation7 + $0x148] ss:$16 sps:$4 sm:$0xff]  }
 0x11a   :  { %1268 = vmatpush1.bf16.msra.mxu1 %v5337_v61  ;;  %1258 = vmatprep.mubr.bf16.mxu0 %v351_v2  ;;  %v5417_v61 = vld [vmem:[#allocation7 + $0x34c] ss:$16 sps:$4 sm:$0xff]   ;;  %v5415_v1 = vld [vmem:[#allocation7 + $0x348] ss:$16 sps:$4 sm:$0xff]  }
 0x11b   :  { %1299 = vmatprep.mubr.bf16.mxu1 %v353_v3  ;;  %1228 = vmatprep.subr.bf16.mxu0 %v5342_v4  ;;  %v5420_v2 = vld [vmem:[#allocation7 + $0x12c] ss:$16 sps:$4 sm:$0xff]   ;;  %v5418_v4 = vld [vmem:[#allocation7 + $0x128] ss:$16 sps:$4 sm:$0xff]  }
 0x11c   :  { %1269 = vmatprep.subr.bf16.mxu1 %v5345_v5  ;;  %v5423_v3 = vld [vmem:[#allocation7 + $0x32c] ss:$16 sps:$4 sm:$0xff]   ;;  %v5421_v5 = vld [vmem:[#allocation7 + $0x328] ss:$16 sps:$4 sm:$0xff]  }
 0x11d   :  { %1229 = vmatpush1.bf16.msra.mxu0 %v5340_v7  ;;  %v5426_v7 = vld [vmem:[#allocation7 + $0x10c] ss:$16 sps:$4 sm:$0xff]  }
 0x11e   :  { %1270 = vmatpush1.bf16.msra.mxu1 %v5343_v8  ;;  %1230 = vmatprep.subr.bf16.mxu0 %v5348_v9  ;;  %v5429_v8 = vld [vmem:[#allocation7 + $0x30c] ss:$16 sps:$4 sm:$0xff]   ;;  %v5424_v9 = vld [vmem:[#allocation7 + $0x108] ss:$16 sps:$4 sm:$0xff]  }
 0x11f   :  { %1271 = vmatprep.subr.bf16.mxu1 %v5351_v10  ;;  %v5427_v10 = vld [vmem:[#allocation7 + $0x308] ss:$16 sps:$4 sm:$0xff]  }
 0x121   :  { %1231 = vmatpush1.bf16.msra.mxu0 %v5346_v11  ;;  %v5432_v11 = vld [vmem:[#allocation8 + $0xe4] ss:$16 sps:$4 sm:$0xff]  }
 0x122   :  { %1272 = vmatpush1.bf16.msra.mxu1 %v5349_v12  ;;  %1232 = vmatprep.subr.bf16.mxu0 %v5354_v13  ;;  %v5430_v12 = vld [vmem:[#allocation8 + $0xe0] ss:$16 sps:$4 sm:$0xff]   ;;  %v5435_v13 = vld [vmem:[#allocation8 + $0xc4] ss:$16 sps:$4 sm:$0xff]  }
 0x123   :  { %1273 = vmatprep.subr.bf16.mxu1 %v5357_v14  ;;  %v5433_v14 = vld [vmem:[#allocation8 + $0xc0] ss:$16 sps:$4 sm:$0xff]  }
 0x125   :  { %1233 = vmatpush1.bf16.msra.mxu0 %v5352_v15  ;;  %v5438_v15 = vld [vmem:[#allocation8 + $0xa4] ss:$16 sps:$4 sm:$0xff]  }
 0x126   :  { %1274 = vmatpush1.bf16.msra.mxu1 %v5355_v16  ;;  %1234 = vmatprep.subr.bf16.mxu0 %v5360_v17  ;;  %v5436_v16 = vld [vmem:[#allocation8 + $0xa0] ss:$16 sps:$4 sm:$0xff]   ;;  %v5441_v17 = vld [vmem:[#allocation8 + $0x84] ss:$16 sps:$4 sm:$0xff]  }
 0x127   :  { %1275 = vmatprep.subr.bf16.mxu1 %v5363_v18  ;;  %v5439_v18 = vld [vmem:[#allocation8 + $0x80] ss:$16 sps:$4 sm:$0xff]  }
 0x129   :  { %1235 = vmatpush1.bf16.msra.mxu0 %v5358_v19  ;;  %v5478_v19 = vld [vmem:[#allocation8 + $0x2e0] ss:$16 sps:$4 sm:$0xff]  }
 0x12a   :  { %1276 = vmatpush1.bf16.msra.mxu1 %v5361_v20  ;;  %1236 = vmatprep.subr.bf16.mxu0 %v5366_v21  ;;  %v5480_v20 = vld [vmem:[#allocation8 + $0x2e4] ss:$16 sps:$4 sm:$0xff]  }
 0x12b   :  { %1277 = vmatprep.subr.bf16.mxu1 %v5369_v22  ;;  %v5444_v21 = vld [vmem:[#allocation8 + $0x64] ss:$16 sps:$4 sm:$0xff]   ;;  %v5484_v22 = vld [vmem:[#allocation8 + $0x2c0] ss:$16 sps:$4 sm:$0xff]  }
 0x12d   :  { %1237 = vmatpush1.bf16.msra.mxu0 %v5364_v23  ;;  %v5447_v23 = vld [vmem:[#allocation8 + $0x44] ss:$16 sps:$4 sm:$0xff]  }
 0x12e   :  { %1278 = vmatpush1.bf16.msra.mxu1 %v5367_v24  ;;  %1238 = vmatprep.subr.bf16.mxu0 %v5372_v25  ;;  %v5445_v24 = vld [vmem:[#allocation8 + $0x40] ss:$16 sps:$4 sm:$0xff]  }
 0x12f   :  { %1279 = vmatprep.subr.bf16.mxu1 %v5375_v26  ;;  %v5490_v25 = vld [vmem:[#allocation8 + $0x2a0] ss:$16 sps:$4 sm:$0xff]   ;;  %v5492_v26 = vld [vmem:[#allocation8 + $0x2a4] ss:$16 sps:$4 sm:$0xff]  }
 0x131   :  { %1239 = vmatpush1.bf16.msra.mxu0 %v5370_v27  ;;  %v5450_v27 = vld [vmem:[#allocation8 + $0x24] ss:$16 sps:$4 sm:$0xff]  }
 0x132   :  { %1280 = vmatpush1.bf16.msra.mxu1 %v5373_v28  ;;  %1240 = vmatprep.subr.bf16.mxu0 %v5378_v29  ;;  %v5448_v28 = vld [vmem:[#allocation8 + $0x20] ss:$16 sps:$4 sm:$0xff]  }
 0x133   :  { %1281 = vmatprep.subr.bf16.mxu1 %v5381_v30  ;;  %v5496_v29 = vld [vmem:[#allocation8 + $0x280] ss:$16 sps:$4 sm:$0xff]   ;;  %v5498_v30 = vld [vmem:[#allocation8 + $0x284] ss:$16 sps:$4 sm:$0xff]  }
 0x135   :  { %1241 = vmatpush1.bf16.msra.mxu0 %v5376_v31  ;;  %v5453_v31 = vld [vmem:[#allocation8 + $0x4] ss:$16 sps:$4 sm:$0xff]  }
 0x136   :  { %1282 = vmatpush1.bf16.msra.mxu1 %v5379_v33  ;;  %1242 = vmatprep.subr.bf16.mxu0 %v5384_v34  ;;  %v5451_v33 = vld [vmem:[#allocation8] ss:$16 sps:$4 sm:$0xff]  }
 0x137   :  { %1283 = vmatprep.subr.bf16.mxu1 %v5387_v37  ;;  %v5502_v34 = vld [vmem:[#allocation8 + $0x260] ss:$16 sps:$4 sm:$0xff]   ;;  %v5504_v37 = vld [vmem:[#allocation8 + $0x264] ss:$16 sps:$4 sm:$0xff]  }
 0x139   :  { %1243 = vmatpush2.bf16.msra.mxu0 %v5382_v42  ;;  %v5456_v42 = vld [vmem:[#allocation8 + $0x1e4] ss:$16 sps:$4 sm:$0xff]  }
 0x13a   :  { %1284 = vmatpush2.bf16.msra.mxu1 %v5385_v43  ;;  %1244 = vmatprep.subr.bf16.mxu0 %v5390_v44  ;;  %v5454_v43 = vld [vmem:[#allocation8 + $0x1e0] ss:$16 sps:$4 sm:$0xff]  }
 0x13b   :  { %1285 = vmatprep.subr.bf16.mxu1 %v5393_v45  ;;  %v5508_v44 = vld [vmem:[#allocation8 + $0x240] ss:$16 sps:$4 sm:$0xff]   ;;  %v5510_v45 = vld [vmem:[#allocation8 + $0x244] ss:$16 sps:$4 sm:$0xff]  }
 0x13d   :  { %1245 = vmatpush2.bf16.msra.mxu0 %v5388_v46  ;;  %v5459_v46 = vld [vmem:[#allocation8 + $0x1c4] ss:$16 sps:$4 sm:$0xff]  }
 0x13e   :  { %1286 = vmatpush2.bf16.msra.mxu1 %v5391_v47  ;;  %1246 = vmatprep.subr.bf16.mxu0 %v5396_v48  ;;  %v5457_v47 = vld [vmem:[#allocation8 + $0x1c0] ss:$16 sps:$4 sm:$0xff]  }
 0x13f   :  { %1287 = vmatprep.subr.bf16.mxu1 %v5399_v49  ;;  %v5514_v48 = vld [vmem:[#allocation8 + $0x220] ss:$16 sps:$4 sm:$0xff]   ;;  %v5516_v49 = vld [vmem:[#allocation8 + $0x224] ss:$16 sps:$4 sm:$0xff]  }
 0x141   :  { %1247 = vmatpush2.bf16.msra.mxu0 %v5394_v50  ;;  %v5462_v50 = vld [vmem:[#allocation8 + $0x1a4] ss:$16 sps:$4 sm:$0xff]  }
 0x142   :  { %1288 = vmatpush2.bf16.msra.mxu1 %v5397_v51  ;;  %1248 = vmatprep.subr.bf16.mxu0 %v5402_v52  ;;  %v5460_v51 = vld [vmem:[#allocation8 + $0x1a0] ss:$16 sps:$4 sm:$0xff]  }
 0x143   :  { %1289 = vmatprep.subr.bf16.mxu1 %v5405_v53  ;;  %v5520_v52 = vld [vmem:[#allocation8 + $0x200] ss:$16 sps:$4 sm:$0xff]   ;;  %v5522_v53 = vld [vmem:[#allocation8 + $0x204] ss:$16 sps:$4 sm:$0xff]  }
 0x145   :  { %1249 = vmatpush2.bf16.msra.mxu0 %v5400_v54  ;;  %v5465_v54 = vld [vmem:[#allocation8 + $0x184] ss:$16 sps:$4 sm:$0xff]  }
 0x146   :  { %1290 = vmatpush2.bf16.msra.mxu1 %v5403_v55  ;;  %1250 = vmatprep.subr.bf16.mxu0 %v5408_v56  ;;  %v5463_v55 = vld [vmem:[#allocation8 + $0x180] ss:$16 sps:$4 sm:$0xff]  }
 0x147   :  { %1291 = vmatprep.subr.bf16.mxu1 %v5411_v57  ;;  %v5526_v56 = vld [vmem:[#allocation8 + $0x3e0] ss:$16 sps:$4 sm:$0xff]   ;;  %v5528_v57 = vld [vmem:[#allocation8 + $0x3e4] ss:$16 sps:$4 sm:$0xff]  }
 0x149   :  { %1251 = vmatpush2.bf16.msra.mxu0 %v5406_v58  ;;  %v5468_v58 = vld [vmem:[#allocation8 + $0x164] ss:$16 sps:$4 sm:$0xff]  }
 0x14a   :  { %1292 = vmatpush2.bf16.msra.mxu1 %v5409_v59  ;;  %1252 = vmatprep.subr.bf16.mxu0 %v5414_v60  ;;  %v5466_v59 = vld [vmem:[#allocation8 + $0x160] ss:$16 sps:$4 sm:$0xff]  }
 0x14b   :  { %1293 = vmatprep.subr.bf16.mxu1 %v5417_v61  ;;  %v5532_v60 = vld [vmem:[#allocation8 + $0x3c0] ss:$16 sps:$4 sm:$0xff]   ;;  %v5534_v61 = vld [vmem:[#allocation8 + $0x3c4] ss:$16 sps:$4 sm:$0xff]  }
 0x14d   :  { %1253 = vmatpush2.bf16.msra.mxu0 %v5412_v63  ;;  %v5471_v63 = vld [vmem:[#allocation8 + $0x144] ss:$16 sps:$4 sm:$0xff]  }
 0x14e   :  { %1294 = vmatpush2.bf16.msra.mxu1 %v5415_v1  ;;  %1254 = vmatprep.subr.bf16.mxu0 %v5420_v2  ;;  %v5469_v1 = vld [vmem:[#allocation8 + $0x140] ss:$16 sps:$4 sm:$0xff]  }
 0x14f   :  { %1295 = vmatprep.subr.bf16.mxu1 %v5423_v3  ;;  %v5538_v2 = vld [vmem:[#allocation8 + $0x3a0] ss:$16 sps:$4 sm:$0xff]   ;;  %v5540_v3 = vld [vmem:[#allocation8 + $0x3a4] ss:$16 sps:$4 sm:$0xff]  }
 0x151   :  { %1255 = vmatpush2.bf16.msra.mxu0 %v5418_v4  ;;  %v5474_v4 = vld [vmem:[#allocation8 + $0x124] ss:$16 sps:$4 sm:$0xff]  }
 0x152   :  { %1296 = vmatpush2.bf16.msra.mxu1 %v5421_v5  ;;  %1256 = vmatprep.subr.bf16.mxu0 %v5426_v7  ;;  %v5472_v5 = vld [vmem:[#allocation8 + $0x120] ss:$16 sps:$4 sm:$0xff]  }
 0x153   :  { %1297 = vmatprep.subr.bf16.mxu1 %v5429_v8  ;;  %v5544_v7 = vld [vmem:[#allocation8 + $0x380] ss:$16 sps:$4 sm:$0xff]   ;;  %v5546_v8 = vld [vmem:[#allocation8 + $0x384] ss:$16 sps:$4 sm:$0xff]  }
 0x155   :  { %1257 = vmatpush2.bf16.msra.mxu0 %v5424_v9  ;;  %v5477_v9 = vld [vmem:[#allocation8 + $0x104] ss:$16 sps:$4 sm:$0xff]  }
 0x156   :  { %1298 = vmatpush2.bf16.msra.mxu1 %v5427_v10  ;;  %2106 = vmatprep.subr.bf16.mxu0 %v5432_v11  ;;  %v5475_v10 = vld [vmem:[#allocation8 + $0x100] ss:$16 sps:$4 sm:$0xff]  }
 0x157   :  { %2147 = vmatprep.subr.bf16.mxu1 %v5480_v20  ;;  %v5550_v11 = vld [vmem:[#allocation8 + $0x360] ss:$16 sps:$4 sm:$0xff]   ;;  %v5576_v20 = vld [vmem:[#allocation8 + $0x2ec] ss:$16 sps:$4 sm:$0xff]  }
 0x158   :  { %1259 = vmatmul.mubr.bf16.vlgmr.msra.gmra.mxu0 %v6266_v6  ;;  %v5442_v6 = vld [vmem:[#allocation8 + $0x60] ss:$16 sps:$4 sm:$0xff]  }
 0x159   :  { %1300 = vmatmul.mubr.bf16.vlgmr.msra.gmra.mxu1 %v6264_v62  ;;  %2107 = vmatpush1.bf16.msra.mxu0 %v5430_v12  ;;  %v5486_v62 = vld [vmem:[#allocation8 + $0x2c4] ss:$16 sps:$4 sm:$0xff]  }
 0x15a   :  { %2108 = vmatprep.subr.bf16.mxu0 %v5435_v13  ;;  %2148 = vmatpush1.bf16.msra.mxu1 %v5478_v19  ;;  %v5552_v12 = vld [vmem:[#allocation8 + $0x364] ss:$16 sps:$4 sm:$0xff]   ;;  %v5483_v13 = vld [vmem:[#allocation8 + $0xec] ss:$16 sps:$4 sm:$0xff]   ;;  %v5568_v19 = vld [vmem:[#allocation8 + $0x300] ss:$16 sps:$4 sm:$0xff]  }
 0x15b   :  { %2149 = vmatprep.subr.bf16.mxu1 %v5486_v62 }
 0x15d   :  { %2109 = vmatpush1.bf16.msra.mxu0 %v5433_v14  ;;  %v5556_v14 = vld [vmem:[#allocation8 + $0x340] ss:$16 sps:$4 sm:$0xff]  }
 0x15e   :  { %2110 = vmatprep.subr.bf16.mxu0 %v5438_v15  ;;  %2150 = vmatpush1.bf16.msra.mxu1 %v5484_v22  ;;  %v5558_v15 = vld [vmem:[#allocation8 + $0x344] ss:$16 sps:$4 sm:$0xff]  }
 0x15f   :  { %2151 = vmatprep.subr.bf16.mxu1 %v5492_v26 }
 0x161   :  { %2111 = vmatpush1.bf16.msra.mxu0 %v5436_v16  ;;  %v5564_v16 = vld [vmem:[#allocation8 + $0x324] ss:$16 sps:$4 sm:$0xff]  }
 0x162   :  { %2112 = vmatprep.subr.bf16.mxu0 %v5441_v17  ;;  %2152 = vmatpush1.bf16.msra.mxu1 %v5490_v25  ;;  %v5562_v17 = vld [vmem:[#allocation8 + $0x320] ss:$16 sps:$4 sm:$0xff]  }
 0x163   :  { %2153 = vmatprep.subr.bf16.mxu1 %v5498_v30 }
 0x165   :  { %2113 = vmatpush1.bf16.msra.mxu0 %v5439_v18  ;;  %v5570_v18 = vld [vmem:[#allocation8 + $0x304] ss:$16 sps:$4 sm:$0xff]  }
 0x166   :  { %2114 = vmatprep.subr.bf16.mxu0 %v5444_v21  ;;  %2154 = vmatpush1.bf16.msra.mxu1 %v5496_v29  ;;  %v6275_v21 = vld [vmem:[%s6439_s4] sm:$0xf] }
 0x167   :  { %2155 = vmatprep.subr.bf16.mxu1 %v5504_v37  ;;  %v491_v22 = vrot.slane %v6275_v21, %v6255_v40 }
 0x169   :  { %2115 = vmatpush1.bf16.msra.mxu0 %v5442_v6  ;;  %v487_v6 = vrot.slane %v6275_v21, %v6249_v38 }
 0x16a   :  { %2116 = vmatprep.subr.bf16.mxu0 %v5447_v23  ;;  %2156 = vmatpush1.bf16.msra.mxu1 %v5502_v34 }
 0x16b   :  { %2157 = vmatprep.subr.bf16.mxu1 %v5510_v45 }
 0x16d   :  { %2117 = vmatpush1.bf16.msra.mxu0 %v5445_v24 }
 0x16e   :  { %2118 = vmatprep.subr.bf16.mxu0 %v5450_v27  ;;  %2158 = vmatpush1.bf16.msra.mxu1 %v5508_v44  ;;  %v5481_v44 = vld [vmem:[#allocation8 + $0xe8] ss:$16 sps:$4 sm:$0xff]  }
 0x16f   :  { %2159 = vmatprep.subr.bf16.mxu1 %v5516_v49  ;;  %v5493_v49 = vld [vmem:[#allocation8 + $0xa8] ss:$16 sps:$4 sm:$0xff]  }
 0x171   :  { %2119 = vmatpush1.bf16.msra.mxu0 %v5448_v28 }
 0x172   :  { %2120 = vmatprep.subr.bf16.mxu0 %v5453_v31  ;;  %2160 = vmatpush1.bf16.msra.mxu1 %v5514_v48  ;;  %v5495_v48 = vld [vmem:[#allocation8 + $0xac] ss:$16 sps:$4 sm:$0xff]  }
 0x173   :  { %2161 = vmatprep.subr.bf16.mxu1 %v5522_v53  ;;  %v5505_v53 = vld [vmem:[#allocation8 + $0x68] ss:$16 sps:$4 sm:$0xff]  }
 0x175   :  { %2121 = vmatpush1.bf16.msra.mxu0 %v5451_v33 }
 0x176   :  { %2122 = vmatprep.subr.bf16.mxu0 %v5456_v42  ;;  %2162 = vmatpush1.bf16.msra.mxu1 %v5520_v52  ;;  %v5507_v52 = vld [vmem:[#allocation8 + $0x6c] ss:$16 sps:$4 sm:$0xff]  }
 0x177   :  { %2163 = vmatprep.subr.bf16.mxu1 %v5528_v57  ;;  %v5517_v57 = vld [vmem:[#allocation8 + $0x28] ss:$16 sps:$4 sm:$0xff]  }
 0x179   :  { %2123 = vmatpush2.bf16.msra.mxu0 %v5454_v43 }
 0x17a   :  { %2124 = vmatprep.subr.bf16.mxu0 %v5459_v46  ;;  %2164 = vmatpush2.bf16.msra.mxu1 %v5526_v56  ;;  %v5489_v46 = vld [vmem:[#allocation8 + $0xcc] ss:$16 sps:$4 sm:$0xff]  }
 0x17b   :  { %2165 = vmatprep.subr.bf16.mxu1 %v5534_v61  ;;  %v5519_v56 = vld [vmem:[#allocation8 + $0x2c] ss:$16 sps:$4 sm:$0xff]   ;;  %v5529_v61 = vld [vmem:[#allocation8 + $0x1e8] ss:$16 sps:$4 sm:$0xff]  }
 0x17d   :  { %2125 = vmatpush2.bf16.msra.mxu0 %v5457_v47  ;;  %v5487_v47 = vld [vmem:[#allocation8 + $0xc8] ss:$16 sps:$4 sm:$0xff]  }
 0x17e   :  { %2126 = vmatprep.subr.bf16.mxu0 %v5462_v50  ;;  %2166 = vmatpush2.bf16.msra.mxu1 %v5532_v60  ;;  %v5501_v50 = vld [vmem:[#allocation8 + $0x8c] ss:$16 sps:$4 sm:$0xff]  }
 0x17f   :  { %2167 = vmatprep.subr.bf16.mxu1 %v5540_v3  ;;  %v5531_v60 = vld [vmem:[#allocation8 + $0x1ec] ss:$16 sps:$4 sm:$0xff]   ;;  %v5541_v3 = vld [vmem:[#allocation8 + $0x1a8] ss:$16 sps:$4 sm:$0xff]  }
 0x181   :  { %2127 = vmatpush2.bf16.msra.mxu0 %v5460_v51  ;;  %v5499_v51 = vld [vmem:[#allocation8 + $0x88] ss:$16 sps:$4 sm:$0xff]  }
 0x182   :  { %2128 = vmatprep.subr.bf16.mxu0 %v5465_v54  ;;  %2168 = vmatpush2.bf16.msra.mxu1 %v5538_v2  ;;  %v5513_v54 = vld [vmem:[#allocation8 + $0x4c] ss:$16 sps:$4 sm:$0xff]  }
 0x183   :  { %2169 = vmatprep.subr.bf16.mxu1 %v5546_v8  ;;  %v5543_v2 = vld [vmem:[#allocation8 + $0x1ac] ss:$16 sps:$4 sm:$0xff]   ;;  %v5553_v8 = vld [vmem:[#allocation8 + $0x168] ss:$16 sps:$4 sm:$0xff]  }
 0x185   :  { %2129 = vmatpush2.bf16.msra.mxu0 %v5463_v55  ;;  %v5511_v55 = vld [vmem:[#allocation8 + $0x48] ss:$16 sps:$4 sm:$0xff]  }
 0x186   :  { %2130 = vmatprep.subr.bf16.mxu0 %v5468_v58  ;;  %2170 = vmatpush2.bf16.msra.mxu1 %v5544_v7  ;;  %v5525_v58 = vld [vmem:[#allocation8 + $0xc] ss:$16 sps:$4 sm:$0xff]  }
 0x187   :  { %2171 = vmatprep.subr.bf16.mxu1 %v5552_v12  ;;  %v5555_v7 = vld [vmem:[#allocation8 + $0x16c] ss:$16 sps:$4 sm:$0xff]  }
 0x188   :  { %v5567_v12 = vld [vmem:[#allocation8 + $0x12c] ss:$16 sps:$4 sm:$0xff]  }
 0x189   :  { %2131 = vmatpush2.bf16.msra.mxu0 %v5466_v59  ;;  %v5523_v59 = vld [vmem:[#allocation8 + $0x8] ss:$16 sps:$4 sm:$0xff]  }
 0x18a   :  { %2132 = vmatprep.subr.bf16.mxu0 %v5471_v63  ;;  %2172 = vmatpush2.bf16.msra.mxu1 %v5550_v11  ;;  %v5537_v63 = vld [vmem:[#allocation8 + $0x1cc] ss:$16 sps:$4 sm:$0xff]   ;;  %v5559_v11 = vld [vmem:[#allocation8 + $0x148] ss:$16 sps:$4 sm:$0xff]  }
 0x18b   :  { %2173 = vmatprep.subr.bf16.mxu1 %v5558_v15 }
 0x18d   :  { %2133 = vmatpush2.bf16.msra.mxu0 %v5469_v1  ;;  %v5535_v1 = vld [vmem:[#allocation8 + $0x1c8] ss:$16 sps:$4 sm:$0xff]  }
 0x18e   :  { %2134 = vmatprep.subr.bf16.mxu0 %v5474_v4  ;;  %2174 = vmatpush2.bf16.msra.mxu1 %v5556_v14  ;;  %v5549_v4 = vld [vmem:[#allocation8 + $0x18c] ss:$16 sps:$4 sm:$0xff]  }
 0x18f   :  { %2175 = vmatprep.subr.bf16.mxu1 %v5564_v16 }
 0x191   :  { %2135 = vmatpush2.bf16.msra.mxu0 %v5472_v5  ;;  %v5547_v5 = vld [vmem:[#allocation8 + $0x188] ss:$16 sps:$4 sm:$0xff]  }
 0x192   :  { %2136 = vmatprep.subr.bf16.mxu0 %v5477_v9  ;;  %2176 = vmatpush2.bf16.msra.mxu1 %v5562_v17  ;;  %v5561_v9 = vld [vmem:[#allocation8 + $0x14c] ss:$16 sps:$4 sm:$0xff]   ;;  %v5565_v17 = vld [vmem:[#allocation8 + $0x128] ss:$16 sps:$4 sm:$0xff]  }
 0x193   :  { %2177 = vmatprep.subr.bf16.mxu1 %v5570_v18 }
 0x195   :  { %2137 = vmatpush2.bf16.msra.mxu0 %v5475_v10  ;;  %v495_v10 = vrot.slane %v6275_v21, %v6252_v39 }
 0x196   :  { %2188 = vmatprep.subr.bf16.mxu0 %v5483_v13  ;;  %2178 = vmatpush2.bf16.msra.mxu1 %v5568_v19  ;;  %v499_v13 = vrot.slane %v6275_v21, %v6258_v41 }
 0x197   :  { %2229 = vmatprep.subr.bf16.mxu1 %v5576_v20  ;;  %v5573_v20 = vld [vmem:[#allocation8 + $0x10c] ss:$16 sps:$4 sm:$0xff]  }
 0x1d8   :  { %v1178_v62 = vpop.f32.mrf.mxu0 }
 0x1d9   :  { %v1219_v23 = vpop.f32.mrf.mxu1  ;;  %v1179_v24 = vadd.f32 %v1178_v62, %v487_v6  ;;  %v2370_v62 = vld [vmem:[#allocation5 + $0x150] sm:$0xff] }
 0x1da   :  { %v1180_v25 = vpop.f32.mrf.mxu0 }
 0x1db   :  { %v1221_v26 = vpop.f32.mrf.mxu1  ;;  %v1220_v27 = vadd.f32 %v1219_v23, %v1179_v24  ;;  %v1181_v28 = vadd.f32 %v1180_v25, %v491_v22 }
 0x1dc   :  { %v1182_v29 = vpop.f32.mrf.mxu0 }
 0x1dd   :  { %v1223_v30 = vpop.f32.mrf.mxu1  ;;  %v1222_v31 = vadd.f32 %v1221_v26, %v1181_v28  ;;  %v1308_v33 = vmax.f32 %v1220_v27, 0.0  ;;  %v5571_v26 = vld [vmem:[#allocation8 + $0x108] ss:$16 sps:$4 sm:$0xff]   ;;  %v4925_v29 = vcombine.high %v2370_v62, %v2370_v62 }
 0x1de   :  { %v1183_v34 = vpop.f32.mrf.mxu0 }
 0x1df   :  { %v1224_v37 = vpop.f32.mrf.mxu1  ;;  %v1309_v42 = vmax.f32 %v1222_v31, 0.0  ;;  %v6281_v45 = vpack.c.bf16 %v1308_v33, %v1308_v33  ;;  %v4924_v31 = vcombine.low %v2370_v62, %v2370_v62  ;;  %v5574_v34 = vld [vmem:[#allocation8 + $0x2e8] ss:$16 sps:$4 sm:$0xff]   ;;  %v5673_v62 = vld [vmem:[#allocation7 + $0x444] ss:$16 sps:$4 sm:$0xff]  }
 0x1e1   :  { %v1313_v43 = vpack.c.bf16 %v1309_v42, %v1309_v42  ;;  %v5581_v42 = vld [vmem:[#allocation8 + $0x2cc] ss:$16 sps:$4 sm:$0xff]  }
 0x1e3   :  { %2138 = vmatprep.mubr.bf16.mxu0 %v1313_v43 }
 0x1e4   :  { %2139 = vmatmul.mubr.bf16.vlgmr.msra.gmra.mxu0 %v6281_v45 }
 0x1e5   :  { %2189 = vmatpush1.bf16.msra.mxu0 %v5481_v44  ;;  %2220 = vmatprep.mubr.bf16.mxu0 %v1313_v43  ;;  %v2506_v43 = vsel %vm251_vm0, %v4924_v31, 0  ;;  %v5584_v44 = vld [vmem:[#allocation5 + $0x134] ss:$16 sps:$4 sm:$0xff]   ;;  %v5635_v31 = vld [vmem:[#allocation8 + $0x32c] ss:$16 sps:$4 sm:$0xff]  }
 0x1e6   :  { %2190 = vmatprep.subr.bf16.mxu0 %v5489_v46  ;;  %v5579_v46 = vld [vmem:[#allocation8 + $0x2c8] ss:$16 sps:$4 sm:$0xff]  }
 0x1e9   :  { %2191 = vmatpush1.bf16.msra.mxu0 %v5487_v47  ;;  %v5582_v47 = vld [vmem:[#allocation5 + $0x130] ss:$16 sps:$4 sm:$0xff]  }
 0x1ea   :  { %2192 = vmatprep.subr.bf16.mxu0 %v5495_v48  ;;  %v5587_v48 = vld [vmem:[#allocation8 + $0x2ac] ss:$16 sps:$4 sm:$0xff]  }
 0x1ed   :  { %2193 = vmatpush1.bf16.msra.mxu0 %v5493_v49  ;;  %v5590_v49 = vld [vmem:[#allocation5 + $0x114] ss:$16 sps:$4 sm:$0xff]  }
 0x1ee   :  { %2194 = vmatprep.subr.bf16.mxu0 %v5501_v50  ;;  %v5585_v50 = vld [vmem:[#allocation8 + $0x2a8] ss:$16 sps:$4 sm:$0xff]  }
 0x1f1   :  { %2195 = vmatpush1.bf16.msra.mxu0 %v5499_v51  ;;  %v5588_v51 = vld [vmem:[#allocation5 + $0x110] ss:$16 sps:$4 sm:$0xff]  }
 0x1f2   :  { %2196 = vmatprep.subr.bf16.mxu0 %v5507_v52  ;;  %v5593_v52 = vld [vmem:[#allocation8 + $0x28c] ss:$16 sps:$4 sm:$0xff]  }
 0x1f5   :  { %2197 = vmatpush1.bf16.msra.mxu0 %v5505_v53  ;;  %v5596_v53 = vld [vmem:[#allocation5 + $0xf4] ss:$16 sps:$4 sm:$0xff]  }
 0x1f6   :  { %2198 = vmatprep.subr.bf16.mxu0 %v5513_v54  ;;  %v5594_v54 = vld [vmem:[#allocation5 + $0xf0] ss:$16 sps:$4 sm:$0xff]  }
 0x1f9   :  { %2199 = vmatpush1.bf16.msra.mxu0 %v5511_v55  ;;  %v5599_v55 = vld [vmem:[#allocation8 + $0x26c] ss:$16 sps:$4 sm:$0xff]  }
 0x1fa   :  { %2200 = vmatprep.subr.bf16.mxu0 %v5519_v56  ;;  %v5602_v56 = vld [vmem:[#allocation5 + $0xd4] ss:$16 sps:$4 sm:$0xff]  }
 0x1fd   :  { %2201 = vmatpush1.bf16.msra.mxu0 %v5517_v57  ;;  %v5597_v57 = vld [vmem:[#allocation8 + $0x268] ss:$16 sps:$4 sm:$0xff]  }
 0x1fe   :  { %2202 = vmatprep.subr.bf16.mxu0 %v5525_v58  ;;  %v5600_v58 = vld [vmem:[#allocation5 + $0xd0] ss:$16 sps:$4 sm:$0xff]  }
 0x201   :  { %2203 = vmatpush1.bf16.msra.mxu0 %v5523_v59  ;;  %v5605_v59 = vld [vmem:[#allocation8 + $0x24c] ss:$16 sps:$4 sm:$0xff]  }
 0x202   :  { %2204 = vmatprep.subr.bf16.mxu0 %v5531_v60  ;;  %v5608_v60 = vld [vmem:[#allocation5 + $0xb4] ss:$16 sps:$4 sm:$0xff]  }
 0x205   :  { %2205 = vmatpush2.bf16.msra.mxu0 %v5529_v61  ;;  %v5603_v61 = vld [vmem:[#allocation8 + $0x248] ss:$16 sps:$4 sm:$0xff]  }
 0x206   :  { %2206 = vmatprep.subr.bf16.mxu0 %v5537_v63  ;;  %v5606_v63 = vld [vmem:[#allocation5 + $0xb0] ss:$16 sps:$4 sm:$0xff]  }
 0x209   :  { %2207 = vmatpush2.bf16.msra.mxu0 %v5535_v1  ;;  %v5611_v1 = vld [vmem:[#allocation8 + $0x22c] ss:$16 sps:$4 sm:$0xff]  }
 0x20a   :  { %2208 = vmatprep.subr.bf16.mxu0 %v5543_v2  ;;  %v5658_v2 = vld [vmem:[#allocation7 + $0x4e4] ss:$16 sps:$4 sm:$0xff]  }
 0x20d   :  { %2209 = vmatpush2.bf16.msra.mxu0 %v5541_v3  ;;  %v5609_v3 = vld [vmem:[#allocation8 + $0x228] ss:$16 sps:$4 sm:$0xff]  }
 0x20e   :  { %2210 = vmatprep.subr.bf16.mxu0 %v5549_v4  ;;  %v5614_v4 = vld [vmem:[#allocation8 + $0x20c] ss:$16 sps:$4 sm:$0xff]  }
 0x211   :  { %2211 = vmatpush2.bf16.msra.mxu0 %v5547_v5  ;;  %v5656_v5 = vld [vmem:[#allocation7 + $0x4e0] ss:$16 sps:$4 sm:$0xff]  }
 0x212   :  { %2212 = vmatprep.subr.bf16.mxu0 %v5555_v7  ;;  %v5661_v7 = vld [vmem:[#allocation7 + $0x4c4] ss:$16 sps:$4 sm:$0xff]  }
 0x215   :  { %2213 = vmatpush2.bf16.msra.mxu0 %v5553_v8  ;;  %v5612_v8 = vld [vmem:[#allocation8 + $0x208] ss:$16 sps:$4 sm:$0xff]  }
 0x216   :  { %2214 = vmatprep.subr.bf16.mxu0 %v5561_v9  ;;  %v5617_v9 = vld [vmem:[#allocation8 + $0x3ec] ss:$16 sps:$4 sm:$0xff]  }
 0x218   :  { %v1260_v14 = vpop.f32.mrf.mxu0 }
 0x219   :  { %v1301_v15 = vpop.f32.mrf.mxu1  ;;  %v1261_v16 = vadd.f32 %v1260_v14, %v495_v10  ;;  %2215 = vmatpush2.bf16.msra.mxu0 %v5559_v11  ;;  %v5659_v10 = vld [vmem:[#allocation7 + $0x4c0] ss:$16 sps:$4 sm:$0xff]   ;;  %v5664_v11 = vld [vmem:[#allocation7 + $0x4a4] ss:$16 sps:$4 sm:$0xff]  }
 0x21a   :  { %v1262_v18 = vpop.f32.mrf.mxu0  ;;  %2216 = vmatprep.subr.bf16.mxu0 %v5567_v12  ;;  %v5615_v12 = vld [vmem:[#allocation8 + $0x3e8] ss:$16 sps:$4 sm:$0xff]   ;;  %v5662_v14 = vld [vmem:[#allocation7 + $0x4a0] ss:$16 sps:$4 sm:$0xff]  }
 0x21b   :  { %v1303_v19 = vpop.f32.mrf.mxu1  ;;  %v1302_v6 = vadd.f32 %v1301_v15, %v1261_v16  ;;  %v1263_v22 = vadd.f32 %v1262_v18, %v499_v13  ;;  %v5620_v13 = vld [vmem:[#allocation8 + $0x3cc] ss:$16 sps:$4 sm:$0xff]   ;;  %v5667_v15 = vld [vmem:[#allocation7 + $0x484] ss:$16 sps:$4 sm:$0xff]   ;;  %v5618_v16 = vld [vmem:[#allocation8 + $0x3c8] ss:$16 sps:$4 sm:$0xff]  }
 0x21c   :  { %v1264_v23 = vpop.f32.mrf.mxu0  ;;  %v5665_v18 = vld [vmem:[#allocation7 + $0x480] ss:$16 sps:$4 sm:$0xff]  }
 0x21d   :  { %v1305_v24 = vpop.f32.mrf.mxu1  ;;  %v1304_v25 = vadd.f32 %v1303_v19, %v1263_v22  ;;  %2217 = vmatpush2.bf16.msra.mxu0 %v5565_v17  ;;  %v1310_v27 = vmax.f32 %v1302_v6, 0.0  ;;  %v5623_v17 = vld [vmem:[#allocation8 + $0x3ac] ss:$16 sps:$4 sm:$0xff]   ;;  %v5670_v19 = vld [vmem:[#allocation7 + $0x464] ss:$16 sps:$4 sm:$0xff]  }
 0x21e   :  { %v1265_v28 = vpop.f32.mrf.mxu0  ;;  %2218 = vmatprep.subr.bf16.mxu0 %v5573_v20  ;;  %v5621_v20 = vld [vmem:[#allocation8 + $0x3a8] ss:$16 sps:$4 sm:$0xff]   ;;  %v5626_v6 = vld [vmem:[#allocation8 + $0x38c] ss:$16 sps:$4 sm:$0xff]   ;;  %v5668_v22 = vld [vmem:[#allocation7 + $0x460] ss:$16 sps:$4 sm:$0xff]  }
 0x21f   :  { %v1306_v21 = vpop.f32.mrf.mxu1  ;;  %v1311_v30 = vmax.f32 %v1304_v25, 0.0  ;;  %v6288_v37 = vpack.c.bf16 %v1310_v27, %v1310_v27  ;;  %v5624_v23 = vld [vmem:[#allocation8 + $0x388] ss:$16 sps:$4 sm:$0xff]   ;;  %v5629_v24 = vld [vmem:[#allocation8 + $0x36c] ss:$16 sps:$4 sm:$0xff]  }
 0x220   :  { %v5671_v25 = vld [vmem:[#allocation7 + $0x440] ss:$16 sps:$4 sm:$0xff]   ;;  %v5627_v27 = vld [vmem:[#allocation8 + $0x368] ss:$16 sps:$4 sm:$0xff]   ;;  %v5632_v28 = vld [vmem:[#allocation8 + $0x34c] ss:$16 sps:$4 sm:$0xff]  }
 0x221   :  { %v1315_v33 = vpack.c.bf16 %v1311_v30, %v1311_v30  ;;  %2219 = vmatpush2.bf16.msra.mxu0 %v5571_v26  ;;  %v5676_v26 = vld [vmem:[#allocation7 + $0x424] ss:$16 sps:$4 sm:$0xff]   ;;  %v5674_v21 = vld [vmem:[#allocation7 + $0x420] ss:$16 sps:$4 sm:$0xff]   ;;  %v5630_v30 = vld [vmem:[#allocation8 + $0x348] ss:$16 sps:$4 sm:$0xff]  }
 0x222   :  { %4928 = vmatprep.subr.msk.bf16.mxu0 %vm251_vm0, %v4925_v29  ;;  %v5679_v29 = vld [vmem:[#allocation7 + $0x404] ss:$16 sps:$4 sm:$0xff]  }
 0x223   :  { %2179 = vmatprep.mubr.bf16.mxu1 %v1315_v33 }
 0x224   :  { %2180 = vmatmul.mubr.bf16.vlgmr.msra.gmra.mxu1 %v6288_v37  ;;  %2221 = vmatmul.mubr.bf16.vlgmr.msra.gmra.mxu0 %v6281_v45  ;;  %v5591_v45 = vld [vmem:[#allocation8 + $0x288] ss:$16 sps:$4 sm:$0xff]  }
 0x225   :  { %2230 = vmatpush1.bf16.msra.mxu1 %v5574_v34  ;;  %2261 = vmatprep.mubr.bf16.mxu1 %v1315_v33  ;;  %v5677_v33 = vld [vmem:[#allocation7 + $0x400] ss:$16 sps:$4 sm:$0xff]   ;;  %v5633_v34 = vld [vmem:[#allocation8 + $0x328] ss:$16 sps:$4 sm:$0xff]  }
 0x226   :  { %2522 = vmatpush1.bf16.msra.mxu0 %v2506_v43  ;;  %2231 = vmatprep.subr.bf16.mxu1 %v5581_v42  ;;  %v5638_v42 = vld [vmem:[#allocation8 + $0x30c] ss:$16 sps:$4 sm:$0xff]  }
 0x227   :  { %2523 = vmatprep.subr.bf16.mxu0 %v5584_v44  ;;  %2549 = vmatprep.mubr.bf16.mxu0 %v6155_v0  ;;  %v2371_v43 = vld [vmem:[#allocation5 + $0x158] sm:$0xff] }
 0x228   :  { %v5636_v44 = vld [vmem:[#allocation8 + $0x308] ss:$16 sps:$4 sm:$0xff]  }
 0x229   :  { %2232 = vmatpush1.bf16.msra.mxu1 %v5579_v46  ;;  %v4927_v46 = vcombine.high %v2371_v43, %v2371_v43 }
 0x22a   :  { %2524 = vmatpush1.bf16.msra.mxu0 %v5582_v47  ;;  %2233 = vmatprep.subr.bf16.mxu1 %v5587_v48  ;;  %v4926_v47 = vcombine.low %v2371_v43, %v2371_v43  ;;  %v5770_v43 = vld [vmem:[#allocation7 + $0x780] ss:$16 sps:$4 sm:$0xff]  }
 0x22b   :  { %2525 = vmatprep.subr.bf16.mxu0 %v5590_v49  ;;  %v5643_v49 = vld [vmem:[#allocation5 + $0x13c] ss:$16 sps:$4 sm:$0xff]  }
 0x22c   :  { %v2512_v48 = vsel %vm251_vm0, %v4926_v47, 0  ;;  %v5778_v47 = vld [vmem:[#allocation7 + $0x764] ss:$16 sps:$4 sm:$0xff]  }
 0x22d   :  { %2234 = vmatpush1.bf16.msra.mxu1 %v5585_v50  ;;  %v5682_v50 = vld [vmem:[#allocation7 + $0x5e4] ss:$16 sps:$4 sm:$0xff]  }
 0x22e   :  { %2526 = vmatpush1.bf16.msra.mxu0 %v5588_v51  ;;  %2235 = vmatprep.subr.bf16.mxu1 %v5593_v52  ;;  %v5641_v51 = vld [vmem:[#allocation5 + $0x138] ss:$16 sps:$4 sm:$0xff]   ;;  %v5680_v52 = vld [vmem:[#allocation7 + $0x5e0] ss:$16 sps:$4 sm:$0xff]  }
 0x22f   :  { %2527 = vmatprep.subr.bf16.mxu0 %v5596_v53  ;;  %v5646_v53 = vld [vmem:[#allocation5 + $0x11c] ss:$16 sps:$4 sm:$0xff]  }
 0x231   :  { %2236 = vmatpush1.bf16.msra.mxu1 %v5591_v45  ;;  %v5685_v45 = vld [vmem:[#allocation7 + $0x5c4] ss:$16 sps:$4 sm:$0xff]  }
 0x232   :  { %2528 = vmatpush1.bf16.msra.mxu0 %v5594_v54  ;;  %2237 = vmatprep.subr.bf16.mxu1 %v5599_v55  ;;  %v5644_v54 = vld [vmem:[#allocation5 + $0x118] ss:$16 sps:$4 sm:$0xff]   ;;  %v5683_v55 = vld [vmem:[#allocation7 + $0x5c0] ss:$16 sps:$4 sm:$0xff]  }
 0x233   :  { %2529 = vmatprep.subr.bf16.mxu0 %v5602_v56  ;;  %v5649_v56 = vld [vmem:[#allocation5 + $0xfc] ss:$16 sps:$4 sm:$0xff]  }
 0x235   :  { %2238 = vmatpush1.bf16.msra.mxu1 %v5597_v57  ;;  %v5686_v57 = vld [vmem:[#allocation7 + $0x5a0] ss:$16 sps:$4 sm:$0xff]  }
 0x236   :  { %2530 = vmatpush1.bf16.msra.mxu0 %v5600_v58  ;;  %2239 = vmatprep.subr.bf16.mxu1 %v5605_v59  ;;  %v5691_v58 = vld [vmem:[#allocation7 + $0x584] ss:$16 sps:$4 sm:$0xff]   ;;  %v5647_v59 = vld [vmem:[#allocation5 + $0xf8] ss:$16 sps:$4 sm:$0xff]  }
 0x237   :  { %2531 = vmatprep.subr.bf16.mxu0 %v5608_v60  ;;  %v5689_v60 = vld [vmem:[#allocation7 + $0x580] ss:$16 sps:$4 sm:$0xff]  }
 0x239   :  { %2240 = vmatpush1.bf16.msra.mxu1 %v5603_v61  ;;  %v5694_v61 = vld [vmem:[#allocation7 + $0x564] ss:$16 sps:$4 sm:$0xff]  }
 0x23a   :  { %2532 = vmatpush1.bf16.msra.mxu0 %v5606_v63  ;;  %2241 = vmatprep.subr.bf16.mxu1 %v5611_v1  ;;  %v5650_v63 = vld [vmem:[#allocation5 + $0xd8] ss:$16 sps:$4 sm:$0xff]   ;;  %v5655_v1 = vld [vmem:[#allocation5 + $0xbc] ss:$16 sps:$4 sm:$0xff]  }
 0x23b   :  { %3399 = vmatprep.subr.bf16.mxu0 %v5658_v2  ;;  %v5692_v2 = vld [vmem:[#allocation7 + $0x560] ss:$16 sps:$4 sm:$0xff]  }
 0x23d   :  { %2242 = vmatpush1.bf16.msra.mxu1 %v5609_v3  ;;  %4929 = vmatmul.mubr.msk.bf16.vlgmr.msra.gmra.mxu0 %vm247_vm1, %v6236_v32  ;;  %v5697_v3 = vld [vmem:[#allocation7 + $0x544] ss:$16 sps:$4 sm:$0xff]  }
 0x23e   :  { %2243 = vmatprep.subr.bf16.mxu1 %v5614_v4  ;;  %3400 = vmatpush1.bf16.msra.mxu0 %v5656_v5  ;;  %v5653_v4 = vld [vmem:[#allocation5 + $0xb8] ss:$16 sps:$4 sm:$0xff]   ;;  %v5695_v5 = vld [vmem:[#allocation7 + $0x540] ss:$16 sps:$4 sm:$0xff]  }
 0x23f   :  { %3401 = vmatprep.subr.bf16.mxu0 %v5661_v7  ;;  %v5700_v7 = vld [vmem:[#allocation7 + $0x524] ss:$16 sps:$4 sm:$0xff]  }
 0x241   :  { %2244 = vmatpush1.bf16.msra.mxu1 %v5612_v8  ;;  %v5698_v8 = vld [vmem:[#allocation7 + $0x520] ss:$16 sps:$4 sm:$0xff]  }
 0x242   :  { %2245 = vmatprep.subr.bf16.mxu1 %v5617_v9  ;;  %3402 = vmatpush1.bf16.msra.mxu0 %v5659_v10  ;;  %v5703_v9 = vld [vmem:[#allocation7 + $0x504] ss:$16 sps:$4 sm:$0xff]   ;;  %v5701_v10 = vld [vmem:[#allocation7 + $0x500] ss:$16 sps:$4 sm:$0xff]  }
 0x243   :  { %3403 = vmatprep.subr.bf16.mxu0 %v5664_v11  ;;  %v5706_v11 = vld [vmem:[#allocation7 + $0x6e4] ss:$16 sps:$4 sm:$0xff]  }
 0x245   :  { %2246 = vmatpush2.bf16.msra.mxu1 %v5615_v12  ;;  %v5704_v12 = vld [vmem:[#allocation7 + $0x6e0] ss:$16 sps:$4 sm:$0xff]  }
 0x246   :  { %2247 = vmatprep.subr.bf16.mxu1 %v5620_v13  ;;  %3404 = vmatpush1.bf16.msra.mxu0 %v5662_v14  ;;  %v5709_v13 = vld [vmem:[#allocation7 + $0x4ec] ss:$16 sps:$4 sm:$0xff]   ;;  %v5710_v14 = vld [vmem:[#allocation7 + $0x6c0] ss:$16 sps:$4 sm:$0xff]  }
 0x247   :  { %3405 = vmatprep.subr.bf16.mxu0 %v5667_v15  ;;  %v5712_v15 = vld [vmem:[#allocation7 + $0x6c4] ss:$16 sps:$4 sm:$0xff]  }
 0x249   :  { %2248 = vmatpush2.bf16.msra.mxu1 %v5618_v16  ;;  %v5716_v16 = vld [vmem:[#allocation7 + $0x6a0] ss:$16 sps:$4 sm:$0xff]  }
 0x24a   :  { %2249 = vmatprep.subr.bf16.mxu1 %v5623_v17  ;;  %3406 = vmatpush1.bf16.msra.mxu0 %v5665_v18  ;;  %v5722_v17 = vld [vmem:[#allocation7 + $0x680] ss:$16 sps:$4 sm:$0xff]   ;;  %v5724_v18 = vld [vmem:[#allocation7 + $0x684] ss:$16 sps:$4 sm:$0xff]  }
 0x24b   :  { %3407 = vmatprep.subr.bf16.mxu0 %v5670_v19  ;;  %v5728_v19 = vld [vmem:[#allocation7 + $0x660] ss:$16 sps:$4 sm:$0xff]  }
 0x24d   :  { %2250 = vmatpush2.bf16.msra.mxu1 %v5621_v20  ;;  %v5730_v20 = vld [vmem:[#allocation7 + $0x664] ss:$16 sps:$4 sm:$0xff]  }
 0x24e   :  { %2251 = vmatprep.subr.bf16.mxu1 %v5626_v6  ;;  %3408 = vmatpush1.bf16.msra.mxu0 %v5668_v22  ;;  %v5734_v6 = vld [vmem:[#allocation7 + $0x640] ss:$16 sps:$4 sm:$0xff]   ;;  %v5736_v22 = vld [vmem:[#allocation7 + $0x644] ss:$16 sps:$4 sm:$0xff]  }
 0x24f   :  { %3409 = vmatprep.subr.bf16.mxu0 %v5673_v62  ;;  %v5740_v62 = vld [vmem:[#allocation7 + $0x620] ss:$16 sps:$4 sm:$0xff]  }
 0x251   :  { %2252 = vmatpush2.bf16.msra.mxu1 %v5624_v23  ;;  %v5742_v23 = vld [vmem:[#allocation7 + $0x624] ss:$16 sps:$4 sm:$0xff]  }
 0x252   :  { %2253 = vmatprep.subr.bf16.mxu1 %v5629_v24  ;;  %3410 = vmatpush1.bf16.msra.mxu0 %v5671_v25  ;;  %v5746_v24 = vld [vmem:[#allocation7 + $0x600] ss:$16 sps:$4 sm:$0xff]   ;;  %v5748_v25 = vld [vmem:[#allocation7 + $0x604] ss:$16 sps:$4 sm:$0xff]  }
 0x253   :  { %3411 = vmatprep.subr.bf16.mxu0 %v5676_v26 }
 0x255   :  { %2254 = vmatpush2.bf16.msra.mxu1 %v5627_v27  ;;  %v5754_v27 = vld [vmem:[#allocation7 + $0x7e4] ss:$16 sps:$4 sm:$0xff]  }
 0x256   :  { %2255 = vmatprep.subr.bf16.mxu1 %v5632_v28  ;;  %3412 = vmatpush1.bf16.msra.mxu0 %v5674_v21  ;;  %v5752_v28 = vld [vmem:[#allocation7 + $0x7e0] ss:$16 sps:$4 sm:$0xff]  }
 0x257   :  { %3413 = vmatprep.subr.bf16.mxu0 %v5679_v29 }
 0x259   :  { %2256 = vmatpush2.bf16.msra.mxu1 %v5630_v30  ;;  %v5760_v30 = vld [vmem:[#allocation7 + $0x7c4] ss:$16 sps:$4 sm:$0xff]  }
 0x25a   :  { %2257 = vmatprep.subr.bf16.mxu1 %v5635_v31  ;;  %3414 = vmatpush1.bf16.msra.mxu0 %v5677_v33  ;;  %v5758_v31 = vld [vmem:[#allocation7 + $0x7c0] ss:$16 sps:$4 sm:$0xff]  }
 0x25b   :  { %3415 = vmatprep.subr.bf16.mxu0 %v5682_v50  ;;  %v2325_v50 = vld [vmem:[%s6443_s8] sm:$0x1] }
 0x25c   :  { %2328 = vperm.xlu1 %5202, %v2325_v50   ;;  %v5745_v50 = vld [vmem:[#allocation7 + $0x42c] ss:$16 sps:$4 sm:$0xff]  }
 0x25d   :  { %2258 = vmatpush2.bf16.msra.mxu1 %v5633_v34  ;;  %v5764_v34 = vld [vmem:[#allocation7 + $0x7a0] ss:$16 sps:$4 sm:$0xff]  }
 0x25e   :  { %2259 = vmatprep.subr.bf16.mxu1 %v5638_v42  ;;  %3416 = vmatpush2.bf16.msra.mxu0 %v5680_v52  ;;  %v5766_v42 = vld [vmem:[#allocation7 + $0x7a4] ss:$16 sps:$4 sm:$0xff]   ;;  %v5788_v52 = vld [vmem:[#allocation7 + $0x720] ss:$16 sps:$4 sm:$0xff]  }
 0x25f   :  { %3417 = vmatprep.subr.bf16.mxu0 %v5685_v45  ;;  %v5794_v45 = vld [vmem:[#allocation7 + $0x700] ss:$16 sps:$4 sm:$0xff]  }
 0x261   :  { %2260 = vmatpush2.bf16.msra.mxu1 %v5636_v44  ;;  %v5772_v44 = vld [vmem:[#allocation7 + $0x784] ss:$16 sps:$4 sm:$0xff]  }
 0x262   :  { %4930 = vmatprep.subr.msk.bf16.mxu1 %vm251_vm0, %v4927_v46  ;;  %3418 = vmatpush2.bf16.msra.mxu0 %v5683_v55  ;;  %v5776_v46 = vld [vmem:[#allocation7 + $0x760] ss:$16 sps:$4 sm:$0xff]  }
 0x263   :  { %v5191_v55 = vld [vmem:[%s6442_s7] sm:$0xff]  }
 0x264   :  { %2262 = vmatmul.mubr.bf16.vlgmr.msra.gmra.mxu1 %v6288_v37  ;;  %v5688_v37 = vld [vmem:[#allocation7 + $0x5a4] ss:$16 sps:$4 sm:$0xff]  }
 0x265   :  { %2563 = vmatpush1.bf16.msra.mxu1 %v2512_v48  ;;  %2590 = vmatprep.mubr.bf16.mxu1 %v6155_v0  ;;  %v5652_v0 = vld [vmem:[#allocation5 + $0xdc] ss:$16 sps:$4 sm:$0xff]   ;;  %v5782_v48 = vld [vmem:[#allocation7 + $0x740] ss:$16 sps:$4 sm:$0xff]  }
 0x266   :  { %2564 = vmatprep.subr.bf16.mxu1 %v5643_v49  ;;  %3419 = vmatprep.subr.bf16.mxu0 %v5688_v37  ;;  %v5784_v49 = vld [vmem:[#allocation7 + $0x744] ss:$16 sps:$4 sm:$0xff]  }
 0x267   :  { %3420 = vmatpush2.bf16.msra.mxu0 %v5686_v57  ;;  %v6314_v57 = vunpack.c.l.bf16 %v5191_v55  ;;  %v5749_v55 = vld [vmem:[#allocation7 + $0x408] ss:$16 sps:$4 sm:$0xff]  }
 0x268   :  { %3421 = vmatprep.subr.bf16.mxu0 %v5691_v58 }
 0x269   :  { %2565 = vmatpush1.bf16.msra.mxu1 %v5641_v51  ;;  %v5790_v51 = vld [vmem:[#allocation7 + $0x724] ss:$16 sps:$4 sm:$0xff]  }
 0x26a   :  { %2566 = vmatprep.subr.bf16.mxu1 %v5646_v53  ;;  %v5796_v53 = vld [vmem:[#allocation7 + $0x704] ss:$16 sps:$4 sm:$0xff]  }
 0x26b   :  { %3422 = vmatpush2.bf16.msra.mxu0 %v5689_v60  ;;  %v2282_v60 = vrot.slane %v6314_v57, %v6252_v39 }
 0x26c   :  { %3423 = vmatprep.subr.bf16.mxu0 %v5694_v61 }
 0x26d   :  { %2567 = vmatpush1.bf16.msra.mxu1 %v5644_v54  ;;  %v5802_v54 = vld [vmem:[#allocation7 + $0x6ec] ss:$16 sps:$4 sm:$0xff]  }
 0x26e   :  { %2568 = vmatprep.subr.bf16.mxu1 %v5649_v56  ;;  %v6312_v56 = vld [vmem:[%s6441_s6] sm:$0xf] }
 0x26f   :  { %3424 = vmatpush2.bf16.msra.mxu0 %v5692_v2  ;;  %v1449_v37 = vrot.slane %v6312_v56, %v6249_v38  ;;  %v1453_v58 = vrot.slane %v6312_v56, %v6255_v40 }
 0x270   :  { %3425 = vmatprep.subr.bf16.mxu0 %v5697_v3 }
 0x271   :  { %2569 = vmatpush1.bf16.msra.mxu1 %v5647_v59  ;;  %v2278_v59 = vrot.slane %v6314_v57, %v6249_v38 }
 0x272   :  { %2570 = vmatprep.subr.bf16.mxu1 %v5652_v0 }
 0x273   :  { %3426 = vmatpush2.bf16.msra.mxu0 %v5695_v5  ;;  %v2298_v3 = vrot.slane %v2278_v59, %v6249_v38  ;;  %v5757_v59 = vld [vmem:[#allocation7 + $0x5ec] ss:$16 sps:$4 sm:$0xff]  }
 0x274   :  { %3427 = vmatprep.subr.bf16.mxu0 %v5700_v7 }
 0x275   :  { %2571 = vmatpush1.bf16.msra.mxu1 %v5650_v63 }
 0x276   :  { %2572 = vmatprep.subr.bf16.mxu1 %v5655_v1 }
 0x277   :  { %3428 = vmatpush2.bf16.msra.mxu0 %v5698_v8 }
 0x278   :  { %3429 = vmatprep.subr.bf16.mxu0 %v5703_v9  ;;  %v2302_v9 = vrot.slane %v2282_v60, %v6249_v38 }
 0x279   :  { %2573 = vmatpush1.bf16.msra.mxu1 %v5653_v4 }
 0x27a   :  { %3440 = vmatprep.subr.bf16.mxu1 %v5706_v11 }
 0x27b   :  { %3430 = vmatpush2.bf16.msra.mxu0 %v5701_v10 }
 0x27c   :  { %4931 = vmatmul.mubr.msk.bf16.vlgmr.msra.gmra.mxu1 %vm247_vm1, %v6236_v32  ;;  %3481 = vmatprep.subr.bf16.mxu0 %v5709_v13  ;;  %v5718_v32 = vld [vmem:[#allocation7 + $0x6a4] ss:$16 sps:$4 sm:$0xff]  }
 0x27d   :  { %3441 = vmatpush1.bf16.msra.mxu1 %v5704_v12 }
 0x27e   :  { %3442 = vmatprep.subr.bf16.mxu1 %v5712_v15 }
 0x281   :  { %3443 = vmatpush1.bf16.msra.mxu1 %v5710_v14 }
 0x282   :  { %3444 = vmatprep.subr.bf16.mxu1 %v5718_v32 }
 0x285   :  { %3445 = vmatpush1.bf16.msra.mxu1 %v5716_v16 }
 0x286   :  { %3446 = vmatprep.subr.bf16.mxu1 %v5724_v18 }
 0x289   :  { %3447 = vmatpush1.bf16.msra.mxu1 %v5722_v17 }
 0x28a   :  { %3448 = vmatprep.subr.bf16.mxu1 %v5730_v20 }
 0x28d   :  { %3449 = vmatpush1.bf16.msra.mxu1 %v5728_v19  ;;  %v6337_v19 = vld [vmem:[%s6437_s2 + $0x4] sm:$0xf] }
 0x28e   :  { %3450 = vmatprep.subr.bf16.mxu1 %v5736_v22  ;;  %v2378_v20 = vrot.slane %v6337_v19, %v6249_v38 }
 0x291   :  { %3451 = vmatpush1.bf16.msra.mxu1 %v5734_v6  ;;  %v2382_v6 = vrot.slane %v6337_v19, %v6255_v40 }
 0x292   :  { %3452 = vmatprep.subr.bf16.mxu1 %v5742_v23 }
 0x295   :  { %3453 = vmatpush1.bf16.msra.mxu1 %v5740_v62 }
 0x296   :  { %3454 = vmatprep.subr.bf16.mxu1 %v5748_v25 }
 0x299   :  { %3455 = vmatpush1.bf16.msra.mxu1 %v5746_v24 }
 0x29a   :  { %3456 = vmatprep.subr.bf16.mxu1 %v5754_v27 }
 0x29d   :  { %3457 = vmatpush2.bf16.msra.mxu1 %v5752_v28 }
 0x29e   :  { %3458 = vmatprep.subr.bf16.mxu1 %v5760_v30  ;;  %v5707_v30 = vld [vmem:[#allocation7 + $0x4e8] ss:$16 sps:$4 sm:$0xff]  }
 0x2a1   :  { %3459 = vmatpush2.bf16.msra.mxu1 %v5758_v31  ;;  %v5715_v31 = vld [vmem:[#allocation7 + $0x4cc] ss:$16 sps:$4 sm:$0xff]  }
 0x2a2   :  { %3460 = vmatprep.subr.bf16.mxu1 %v5766_v42  ;;  %v5719_v42 = vld [vmem:[#allocation7 + $0x4a8] ss:$16 sps:$4 sm:$0xff]  }
 0x2a4   :  { %v2140_v26 = vpop.f32.mrf.mxu0 }
 0x2a5   :  { %3461 = vmatpush2.bf16.msra.mxu1 %v5764_v34  ;;  %v2141_v0 = vadd.f32 %v2140_v26, %v1449_v37  ;;  %v5721_v34 = vld [vmem:[#allocation7 + $0x4ac] ss:$16 sps:$4 sm:$0xff]   ;;  %v1461_v37 = vrot.slane %v6312_v56, %v6258_v41 }
 0x2a6   :  { %v2142_v21 = vpop.f32.mrf.mxu0  ;;  %3462 = vmatprep.subr.bf16.mxu1 %v5772_v44  ;;  %v5725_v44 = vld [vmem:[#allocation7 + $0x488] ss:$16 sps:$4 sm:$0xff]  }
 0x2a7   :  { %v2143_v1 = vadd.f32 %v2142_v21, %v1453_v58 }
 0x2a8   :  { %v2144_v29 = vpop.f32.mrf.mxu0 }
 0x2a9   :  { %3463 = vmatpush2.bf16.msra.mxu1 %v5770_v43  ;;  %v5727_v43 = vld [vmem:[#allocation7 + $0x48c] ss:$16 sps:$4 sm:$0xff]  }
 0x2aa   :  { %v2145_v33 = vpop.f32.mrf.mxu0  ;;  %3464 = vmatprep.subr.bf16.mxu1 %v5778_v47  ;;  %v5731_v47 = vld [vmem:[#allocation7 + $0x468] ss:$16 sps:$4 sm:$0xff]  }
 0x2ab   :  { %v5713_v33 = vld [vmem:[#allocation7 + $0x4c8] ss:$16 sps:$4 sm:$0xff]  }
 0x2ad   :  { %3465 = vmatpush2.bf16.msra.mxu1 %v5776_v46  ;;  %v5733_v46 = vld [vmem:[#allocation7 + $0x46c] ss:$16 sps:$4 sm:$0xff]  }
 0x2ae   :  { %3466 = vmatprep.subr.bf16.mxu1 %v5784_v49  ;;  %v5737_v49 = vld [vmem:[#allocation7 + $0x448] ss:$16 sps:$4 sm:$0xff]  }
 0x2b1   :  { %3467 = vmatpush2.bf16.msra.mxu1 %v5782_v48  ;;  %v5739_v48 = vld [vmem:[#allocation7 + $0x44c] ss:$16 sps:$4 sm:$0xff]  }
 0x2b2   :  { %3468 = vmatprep.subr.bf16.mxu1 %v5790_v51  ;;  %v5743_v51 = vld [vmem:[#allocation7 + $0x428] ss:$16 sps:$4 sm:$0xff]  }
 0x2b5   :  { %3469 = vmatpush2.bf16.msra.mxu1 %v5788_v52  ;;  %v5751_v52 = vld [vmem:[#allocation7 + $0x40c] ss:$16 sps:$4 sm:$0xff]  }
 0x2b6   :  { %3470 = vmatprep.subr.bf16.mxu1 %v5796_v53  ;;  %v2285_v53 = vsub.s32 4, %v6243_v36 }
 0x2b8   :  { %v2286_v58 = vrot.slane %v6314_v57, %v2285_v53 }
 0x2b9   :  { %3471 = vmatpush2.bf16.msra.mxu1 %v5794_v45  ;;  %v1457_v45 = vrot.slane %v6312_v56, %v6252_v39 }
 0x2ba   :  { %3522 = vmatprep.subr.bf16.mxu1 %v5802_v54  ;;  %v2289_v54 = vsub.s32 6, %v6243_v36  ;;  %v2306_v56 = vrot.slane %v2286_v58, %v6249_v38  ;;  %v5851_v58 = vld [vmem:[#allocation8 + $0x4c0] ss:$16 sps:$4 sm:$0xff]  }
 0x2bc   :  { %v2290_v60 = vrot.slane %v6314_v57, %v2289_v54 }
 0x2e4   :  { %v2181_v61 = vpop.f32.mrf.mxu1  ;;  %v6324_v63 = vpop.f32.mrf.mxu0 }
 0x2e5   :  { %v2182_v2 = vadd.f32 %v2181_v61, %v2141_v0  ;;  %v2223_v0 = vadd.f32 %v6324_v63, %v1457_v45  ;;  %v5853_v45 = vld [vmem:[#allocation8 + $0x4c4] ss:$16 sps:$4 sm:$0xff]  }
 0x2e6   :  { %v2183_v4 = vpop.f32.mrf.mxu1  ;;  %v6327_v5 = vpop.f32.mrf.mxu0 }
 0x2e7   :  { %v2270_v7 = vmax.f32 %v2182_v2, 0.0  ;;  %v2184_v8 = vadd.f32 %v2183_v4, %v2143_v1  ;;  %v5755_v1 = vld [vmem:[#allocation7 + $0x5e8] ss:$16 sps:$4 sm:$0xff]   ;;  %v2225_v2 = vadd.f32 %v6327_v5, %v1461_v37  ;;  %v5763_v4 = vld [vmem:[#allocation7 + $0x5cc] ss:$16 sps:$4 sm:$0xff]  }
 0x2e8   :  { %v2185_v10 = vpop.f32.mrf.mxu1  ;;  %v2226_v11 = vpop.f32.mrf.mxu0  ;;  %v5808_v37 = vld [vmem:[#allocation7 + $0x6ac] ss:$16 sps:$4 sm:$0xff]  }
 0x2e9   :  { %v2311_v12 = vmul.f32 %v2298_v3, %v2270_v7  ;;  %v2271_v13 = vmax.f32 %v2184_v8, 0.0  ;;  %v2310_v10 = vrot.slane %v2290_v60, %v6249_v38  ;;  %v5761_v11 = vld [vmem:[#allocation7 + $0x5c8] ss:$16 sps:$4 sm:$0xff]   ;;  %v5811_v60 = vld [vmem:[#allocation7 + $0x68c] ss:$16 sps:$4 sm:$0xff]  }
 0x2ea   :  { %v2186_v14 = vpop.f32.mrf.mxu1  ;;  %v2227_v15 = vpop.f32.mrf.mxu0 }
 0x2eb   :  { %v2312_v16 = vmul.f32 %v2302_v9, %v2271_v13  ;;  %v2316_v32 = vsel %vm2315_vm2, %v2311_v12, 0.0  ;;  %v5769_v13 = vld [vmem:[#allocation7 + $0x5ac] ss:$16 sps:$4 sm:$0xff]  }
 0x2ed   :  { %v2317_v17 = vsel %vm2315_vm2, %v2312_v16, 0.0  ;;  %v5767_v16 = vld [vmem:[#allocation7 + $0x5a8] ss:$16 sps:$4 sm:$0xff]  }
 0x2ee   :  { %v6332_v18 = vadd.f32 %v2317_v17, %v2316_v32 }
 0x2fd   :  { %v2551_v22 = vpop.f32.mrf.mxu0 }
 0x2fe   :  { %v2552_v62 = vadd.f32 %v2551_v22, %v2378_v20  ;;  %v5775_v20 = vld [vmem:[#allocation7 + $0x58c] ss:$16 sps:$4 sm:$0xff]   ;;  %v5773_v22 = vld [vmem:[#allocation7 + $0x588] ss:$16 sps:$4 sm:$0xff]  }
 0x2ff   :  { %v2553_v23 = vpop.f32.mrf.mxu0 }
 0x300   :  { %v2599_v24 = vmax.f32 %v2552_v62, 0.0  ;;  %v2554_v25 = vadd.f32 %v2553_v23, %v2382_v6  ;;  %v5781_v62 = vld [vmem:[#allocation7 + $0x56c] ss:$16 sps:$4 sm:$0xff]   ;;  %v5779_v23 = vld [vmem:[#allocation7 + $0x568] ss:$16 sps:$4 sm:$0xff]  }
 0x301   :  { %v2555_v26 = vpop.f32.mrf.mxu0 }
 0x302   :  { %v2600_v27 = vmax.f32 %v2554_v25, 0.0  ;;  %v6343_v28 = vpack.c.bf16 %v2599_v24, %v2599_v24  ;;  %v5787_v24 = vld [vmem:[#allocation7 + $0x54c] ss:$16 sps:$4 sm:$0xff]   ;;  %v5785_v25 = vld [vmem:[#allocation7 + $0x548] ss:$16 sps:$4 sm:$0xff]  }
 0x303   :  { %v2556_v21 = vpop.f32.mrf.mxu0  ;;  %v5793_v26 = vld [vmem:[#allocation7 + $0x52c] ss:$16 sps:$4 sm:$0xff]  }
 0x304   :  { %v2604_v29 = vpack.c.bf16 %v2600_v27, %v2600_v27  ;;  %v2390_v27 = vrot.slane %v6337_v19, %v6258_v41 }
 0x306   :  { %3431 = vmatprep.mubr.bf16.mxu0 %v2604_v29 }
 0x307   :  { %3432 = vmatmul.mubr.bf16.vlgmr.msra.gmra.mxu0 %v6343_v28 }
 0x308   :  { %3482 = vmatpush1.bf16.msra.mxu0 %v5707_v30  ;;  %3513 = vmatprep.mubr.bf16.mxu0 %v2604_v29  ;;  %v5791_v29 = vld [vmem:[#allocation7 + $0x528] ss:$16 sps:$4 sm:$0xff]  }
 0x309   :  { %3483 = vmatprep.subr.bf16.mxu0 %v5715_v31  ;;  %v5799_v31 = vld [vmem:[#allocation7 + $0x50c] ss:$16 sps:$4 sm:$0xff]  }
 0x30c   :  { %3484 = vmatpush1.bf16.msra.mxu0 %v5713_v33 }
 0x30d   :  { %3485 = vmatprep.subr.bf16.mxu0 %v5721_v34 }
 0x310   :  { %3486 = vmatpush1.bf16.msra.mxu0 %v5719_v42 }
 0x311   :  { %3487 = vmatprep.subr.bf16.mxu0 %v5727_v43 }
 0x314   :  { %3488 = vmatpush1.bf16.msra.mxu0 %v5725_v44  ;;  %v5797_v44 = vld [vmem:[#allocation7 + $0x508] ss:$16 sps:$4 sm:$0xff]  }
 0x315   :  { %3489 = vmatprep.subr.bf16.mxu0 %v5733_v46 }
 0x318   :  { %3490 = vmatpush1.bf16.msra.mxu0 %v5731_v47  ;;  %v5850_v47 = vld [vmem:[#allocation8 + $0x4e4] ss:$16 sps:$4 sm:$0xff]  }
 0x319   :  { %3491 = vmatprep.subr.bf16.mxu0 %v5739_v48 }
 0x31c   :  { %3492 = vmatpush1.bf16.msra.mxu0 %v5737_v49 }
 0x31d   :  { %3493 = vmatprep.subr.bf16.mxu0 %v5745_v50  ;;  %v5800_v50 = vld [vmem:[#allocation7 + $0x6e8] ss:$16 sps:$4 sm:$0xff]  }
 0x320   :  { %3494 = vmatpush1.bf16.msra.mxu0 %v5743_v51 }
 0x321   :  { %3495 = vmatprep.subr.bf16.mxu0 %v5751_v52  ;;  %v5848_v52 = vld [vmem:[#allocation8 + $0x4e0] ss:$16 sps:$4 sm:$0xff]  }
 0x324   :  { %3496 = vmatpush1.bf16.msra.mxu0 %v5749_v55  ;;  %v2263_v61 = vpop.f32.mrf.mxu1  ;;  %v5803_v55 = vld [vmem:[#allocation7 + $0x6c8] ss:$16 sps:$4 sm:$0xff]  }
 0x325   :  { %v2264_v3 = vadd.f32 %v2263_v61, %v2223_v0  ;;  %3497 = vmatprep.subr.bf16.mxu0 %v5757_v59  ;;  %v5856_v59 = vld [vmem:[#allocation8 + $0x4a4] ss:$16 sps:$4 sm:$0xff]   ;;  %v5806_v0 = vld [vmem:[#allocation7 + $0x6a8] ss:$16 sps:$4 sm:$0xff]   ;;  %v5854_v61 = vld [vmem:[#allocation8 + $0x4a0] ss:$16 sps:$4 sm:$0xff]  }
 0x326   :  { %v2265_v7 = vpop.f32.mrf.mxu1 }
 0x327   :  { %v2272_v8 = vmax.f32 %v2264_v3, 0.0  ;;  %v2266_v9 = vadd.f32 %v2265_v7, %v2225_v2  ;;  %v5809_v2 = vld [vmem:[#allocation7 + $0x688] ss:$16 sps:$4 sm:$0xff]   ;;  %v5857_v3 = vld [vmem:[#allocation8 + $0x480] ss:$16 sps:$4 sm:$0xff]  }
 0x328   :  { %3498 = vmatpush2.bf16.msra.mxu0 %v5755_v1  ;;  %v2267_v63 = vpop.f32.mrf.mxu1  ;;  %v5859_v1 = vld [vmem:[#allocation8 + $0x484] ss:$16 sps:$4 sm:$0xff]   ;;  %v5817_v7 = vld [vmem:[#allocation7 + $0x64c] ss:$16 sps:$4 sm:$0xff]  }
 0x329   :  { %v2313_v12 = vmul.f32 %v2306_v56, %v2272_v8  ;;  %v2273_v57 = vmax.f32 %v2266_v9, 0.0  ;;  %3499 = vmatprep.subr.bf16.mxu0 %v5763_v4  ;;  %v5862_v56 = vld [vmem:[#allocation8 + $0x464] ss:$16 sps:$4 sm:$0xff]   ;;  %v5812_v4 = vld [vmem:[#allocation7 + $0x668] ss:$16 sps:$4 sm:$0xff]  }
 0x32a   :  { %v2268_v14 = vpop.f32.mrf.mxu1  ;;  %v5860_v8 = vld [vmem:[#allocation8 + $0x460] ss:$16 sps:$4 sm:$0xff]   ;;  %v5865_v9 = vld [vmem:[#allocation8 + $0x444] ss:$16 sps:$4 sm:$0xff]   ;;  %v5820_v63 = vld [vmem:[#allocation7 + $0x62c] ss:$16 sps:$4 sm:$0xff]  }
 0x32b   :  { %v2314_v15 = vmul.f32 %v2310_v10, %v2273_v57  ;;  %v2319_v5 = vsel %vm2315_vm2, %v2313_v12, 0.0  ;;  %v5815_v10 = vld [vmem:[#allocation7 + $0x648] ss:$16 sps:$4 sm:$0xff]   ;;  %v5868_v12 = vld [vmem:[#allocation8 + $0x424] ss:$16 sps:$4 sm:$0xff]  }
 0x32c   :  { %3500 = vmatpush2.bf16.msra.mxu0 %v5761_v11  ;;  %v2320_v32 = vadd.f32 %v2319_v5, %v6332_v18  ;;  %v2386_v18 = vrot.slane %v6337_v19, %v6252_v39  ;;  %v5805_v19 = vld [vmem:[#allocation7 + $0x6cc] ss:$16 sps:$4 sm:$0xff]   ;;  %v5863_v11 = vld [vmem:[#allocation8 + $0x440] ss:$16 sps:$4 sm:$0xff]   ;;  %v5818_v57 = vld [vmem:[#allocation7 + $0x628] ss:$16 sps:$4 sm:$0xff]  }
 0x32d   :  { %3501 = vmatprep.subr.bf16.mxu0 %v5769_v13  ;;  %v2321_v17 = vsel %vm2315_vm2, %v2314_v15, 0.0  ;;  %v5823_v13 = vld [vmem:[#allocation7 + $0x60c] ss:$16 sps:$4 sm:$0xff]   ;;  %v5866_v14 = vld [vmem:[#allocation8 + $0x420] ss:$16 sps:$4 sm:$0xff]  }
 0x32e   :  { %v2322_v6 = vadd.f32 %v2321_v17, %v2320_v32  ;;  %v5871_v15 = vld [vmem:[#allocation8 + $0x404] ss:$16 sps:$4 sm:$0xff]   ;;  %v5821_v5 = vld [vmem:[#allocation7 + $0x608] ss:$16 sps:$4 sm:$0xff]   ;;  %v5869_v32 = vld [vmem:[#allocation8 + $0x400] ss:$16 sps:$4 sm:$0xff]  }
 0x32f   :  { %v5874_v17 = vld [vmem:[#allocation8 + $0x5e4] ss:$16 sps:$4 sm:$0xff]  }
 0x330   :  { %3502 = vmatpush2.bf16.msra.mxu0 %v5767_v16  ;;  %2323 = vadd.xlane.f32.xlu0 %v2322_v6  ;;  %v5826_v16 = vld [vmem:[#allocation7 + $0x7ec] ss:$16 sps:$4 sm:$0xff]  }
 0x331   :  { %3503 = vmatprep.subr.bf16.mxu0 %v5775_v20  ;;  %v5824_v20 = vld [vmem:[#allocation7 + $0x7e8] ss:$16 sps:$4 sm:$0xff]   ;;  %v5829_v6 = vld [vmem:[#allocation7 + $0x7cc] ss:$16 sps:$4 sm:$0xff]  }
 0x334   :  { %3504 = vmatpush2.bf16.msra.mxu0 %v5773_v22  ;;  %v5872_v22 = vld [vmem:[#allocation8 + $0x5e0] ss:$16 sps:$4 sm:$0xff]  }
 0x335   :  { %3505 = vmatprep.subr.bf16.mxu0 %v5781_v62  ;;  %v5877_v62 = vld [vmem:[#allocation8 + $0x5c4] ss:$16 sps:$4 sm:$0xff]  }
 0x338   :  { %3506 = vmatpush2.bf16.msra.mxu0 %v5779_v23  ;;  %v5827_v23 = vld [vmem:[#allocation7 + $0x7c8] ss:$16 sps:$4 sm:$0xff]  }
 0x339   :  { %3507 = vmatprep.subr.bf16.mxu0 %v5787_v24  ;;  %v5832_v24 = vld [vmem:[#allocation7 + $0x7ac] ss:$16 sps:$4 sm:$0xff]  }
 0x33c   :  { %3508 = vmatpush2.bf16.msra.mxu0 %v5785_v25  ;;  %v2592_v21 = vpop.f32.mrf.mxu1  ;;  %v5875_v25 = vld [vmem:[#allocation8 + $0x5c0] ss:$16 sps:$4 sm:$0xff]  }
 0x33d   :  { %v2593_v30 = vadd.f32 %v2592_v21, %v2386_v18  ;;  %3509 = vmatprep.subr.bf16.mxu0 %v5793_v26  ;;  %v5880_v18 = vld [vmem:[#allocation8 + $0x5a4] ss:$16 sps:$4 sm:$0xff]   ;;  %v5830_v26 = vld [vmem:[#allocation7 + $0x7a8] ss:$16 sps:$4 sm:$0xff]   ;;  %v5878_v21 = vld [vmem:[#allocation8 + $0x5a0] ss:$16 sps:$4 sm:$0xff]  }
 0x33e   :  { %v2594_v33 = vpop.f32.mrf.mxu1 }
 0x33f   :  { %v2595_v34 = vadd.f32 %v2594_v33, %v2390_v27  ;;  %v2601_v42 = vmax.f32 %v2593_v30, 0.0  ;;  %v5835_v27 = vld [vmem:[#allocation7 + $0x78c] ss:$16 sps:$4 sm:$0xff]   ;;  %v5833_v30 = vld [vmem:[#allocation7 + $0x788] ss:$16 sps:$4 sm:$0xff]  }
 0x340   :  { %3510 = vmatpush2.bf16.msra.mxu0 %v5791_v29  ;;  %v2596_v43 = vpop.f32.mrf.mxu1  ;;  %v5883_v29 = vld [vmem:[#allocation8 + $0x584] ss:$16 sps:$4 sm:$0xff]   ;;  %v5881_v33 = vld [vmem:[#allocation8 + $0x580] ss:$16 sps:$4 sm:$0xff]  }
 0x341   :  { %v2602_v46 = vmax.f32 %v2595_v34, 0.0  ;;  %3511 = vmatprep.subr.bf16.mxu0 %v5799_v31  ;;  %v6369_v51 = vpack.c.bf16 %v2601_v42, %v2601_v42  ;;  %v5838_v31 = vld [vmem:[#allocation7 + $0x76c] ss:$16 sps:$4 sm:$0xff]   ;;  %v5886_v34 = vld [vmem:[#allocation8 + $0x564] ss:$16 sps:$4 sm:$0xff]  }
 0x342   :  { %v2597_v48 = vpop.f32.mrf.mxu1  ;;  %v5836_v42 = vld [vmem:[#allocation7 + $0x768] ss:$16 sps:$4 sm:$0xff]   ;;  %v5841_v43 = vld [vmem:[#allocation7 + $0x74c] ss:$16 sps:$4 sm:$0xff]  }
 0x343   :  { %v2606_v49 = vpack.c.bf16 %v2602_v46, %v2602_v46  ;;  %v5889_v46 = vld [vmem:[#allocation8 + $0x544] ss:$16 sps:$4 sm:$0xff]   ;;  %v5844_v48 = vld [vmem:[#allocation7 + $0x72c] ss:$16 sps:$4 sm:$0xff]  }
 0x344   :  { %3512 = vmatpush2.bf16.msra.mxu0 %v5797_v44  ;;  %v5884_v44 = vld [vmem:[#allocation8 + $0x560] ss:$16 sps:$4 sm:$0xff]  }
 0x345   :  { %3472 = vmatprep.mubr.bf16.mxu1 %v2606_v49  ;;  %4363 = vmatprep.subr.bf16.mxu0 %v5850_v47  ;;  %v5839_v47 = vld [vmem:[#allocation7 + $0x748] ss:$16 sps:$4 sm:$0xff]  }
 0x346   :  { %3473 = vmatmul.mubr.bf16.vlgmr.msra.gmra.mxu1 %v6369_v51 }
 0x347   :  { %3514 = vmatmul.mubr.bf16.vlgmr.msra.gmra.mxu0 %v6343_v28  ;;  %3523 = vmatpush1.bf16.msra.mxu1 %v5800_v50  ;;  %v5814_v28 = vld [vmem:[#allocation7 + $0x66c] ss:$16 sps:$4 sm:$0xff]   ;;  %v5842_v50 = vld [vmem:[#allocation7 + $0x728] ss:$16 sps:$4 sm:$0xff]  }
 0x348   :  { %3554 = vmatprep.mubr.bf16.mxu1 %v2606_v49  ;;  %3524 = vmatprep.subr.bf16.mxu1 %v5805_v19  ;;  %v5887_v49 = vld [vmem:[#allocation8 + $0x540] ss:$16 sps:$4 sm:$0xff]   ;;  %v5847_v19 = vld [vmem:[#allocation7 + $0x70c] ss:$16 sps:$4 sm:$0xff]  }
 0x349   :  { %4364 = vmatpush1.bf16.msra.mxu0 %v5848_v52  ;;  %v5845_v52 = vld [vmem:[#allocation7 + $0x708] ss:$16 sps:$4 sm:$0xff]  }
 0x34a   :  { %4365 = vmatprep.subr.bf16.mxu0 %v5853_v45  ;;  %v5892_v45 = vld [vmem:[#allocation8 + $0x524] ss:$16 sps:$4 sm:$0xff]  }
 0x34b   :  { %3525 = vmatpush1.bf16.msra.mxu1 %v5803_v55  ;;  %v5890_v55 = vld [vmem:[#allocation8 + $0x520] ss:$16 sps:$4 sm:$0xff]  }
 0x34c   :  { %3526 = vmatprep.subr.bf16.mxu1 %v5808_v37  ;;  %v5895_v37 = vld [vmem:[#allocation8 + $0x504] ss:$16 sps:$4 sm:$0xff]  }
 0x34d   :  { %4366 = vmatpush1.bf16.msra.mxu0 %v5851_v58  ;;  %v5893_v58 = vld [vmem:[#allocation8 + $0x500] ss:$16 sps:$4 sm:$0xff]  }
 0x34e   :  { %4367 = vmatprep.subr.bf16.mxu0 %v5856_v59  ;;  %v5896_v59 = vld [vmem:[#allocation8 + $0x6e0] ss:$16 sps:$4 sm:$0xff]  }
 0x34f   :  { %3527 = vmatpush1.bf16.msra.mxu1 %v5806_v0  ;;  %v5898_v0 = vld [vmem:[#allocation8 + $0x6e4] ss:$16 sps:$4 sm:$0xff]  }
 0x350   :  { %3528 = vmatprep.subr.bf16.mxu1 %v5811_v60  ;;  %v5901_v60 = vld [vmem:[#allocation8 + $0x4ec] ss:$16 sps:$4 sm:$0xff]  }
 0x351   :  { %4368 = vmatpush1.bf16.msra.mxu0 %v5854_v61  ;;  %v5902_v61 = vld [vmem:[#allocation8 + $0x6c0] ss:$16 sps:$4 sm:$0xff]  }
 0x352   :  { %4369 = vmatprep.subr.bf16.mxu0 %v5859_v1  ;;  %v5904_v1 = vld [vmem:[#allocation8 + $0x6c4] ss:$16 sps:$4 sm:$0xff]  }
 0x353   :  { %3529 = vmatpush1.bf16.msra.mxu1 %v5809_v2  ;;  %v5908_v2 = vld [vmem:[#allocation8 + $0x6a0] ss:$16 sps:$4 sm:$0xff]  }
 0x354   :  { %3530 = vmatprep.subr.bf16.mxu1 %v5814_v28  ;;  %v5914_v28 = vld [vmem:[#allocation8 + $0x680] ss:$16 sps:$4 sm:$0xff]  }
 0x355   :  { %4370 = vmatpush1.bf16.msra.mxu0 %v5857_v3  ;;  %v5916_v3 = vld [vmem:[#allocation8 + $0x684] ss:$16 sps:$4 sm:$0xff]  }
 0x356   :  { %4371 = vmatprep.subr.bf16.mxu0 %v5862_v56  ;;  %v5920_v56 = vld [vmem:[#allocation8 + $0x660] ss:$16 sps:$4 sm:$0xff]  }
 0x357   :  { %3531 = vmatpush1.bf16.msra.mxu1 %v5812_v4  ;;  %v5922_v4 = vld [vmem:[#allocation8 + $0x664] ss:$16 sps:$4 sm:$0xff]  }
 0x358   :  { %3532 = vmatprep.subr.bf16.mxu1 %v5817_v7  ;;  %v5926_v7 = vld [vmem:[#allocation8 + $0x640] ss:$16 sps:$4 sm:$0xff]  }
 0x359   :  { %4372 = vmatpush1.bf16.msra.mxu0 %v5860_v8  ;;  %v5928_v8 = vld [vmem:[#allocation8 + $0x644] ss:$16 sps:$4 sm:$0xff]  }
 0x35a   :  { %4373 = vmatprep.subr.bf16.mxu0 %v5865_v9  ;;  %v5932_v9 = vld [vmem:[#allocation8 + $0x620] ss:$16 sps:$4 sm:$0xff]  }
 0x35b   :  { %3533 = vmatpush1.bf16.msra.mxu1 %v5815_v10  ;;  %v5934_v10 = vld [vmem:[#allocation8 + $0x624] ss:$16 sps:$4 sm:$0xff]  }
 0x35c   :  { %3534 = vmatprep.subr.bf16.mxu1 %v5820_v63  ;;  %v5938_v63 = vld [vmem:[#allocation8 + $0x600] ss:$16 sps:$4 sm:$0xff]  }
 0x35d   :  { %4374 = vmatpush1.bf16.msra.mxu0 %v5863_v11  ;;  %v5940_v11 = vld [vmem:[#allocation8 + $0x604] ss:$16 sps:$4 sm:$0xff]  }
 0x35e   :  { %4375 = vmatprep.subr.bf16.mxu0 %v5868_v12  ;;  %v5944_v12 = vld [vmem:[#allocation8 + $0x7e0] ss:$16 sps:$4 sm:$0xff]  }
 0x35f   :  { %3535 = vmatpush1.bf16.msra.mxu1 %v5818_v57  ;;  %v5946_v57 = vld [vmem:[#allocation8 + $0x7e4] ss:$16 sps:$4 sm:$0xff]  }
 0x360   :  { %3536 = vmatprep.subr.bf16.mxu1 %v5823_v13  ;;  %v5950_v13 = vld [vmem:[#allocation8 + $0x7c0] ss:$16 sps:$4 sm:$0xff]  }
 0x361   :  { %4376 = vmatpush1.bf16.msra.mxu0 %v5866_v14  ;;  %v5952_v14 = vld [vmem:[#allocation8 + $0x7c4] ss:$16 sps:$4 sm:$0xff]  }
 0x362   :  { %4377 = vmatprep.subr.bf16.mxu0 %v5871_v15  ;;  %v5956_v15 = vld [vmem:[#allocation8 + $0x7a0] ss:$16 sps:$4 sm:$0xff]  }
 0x363   :  { %3537 = vmatpush1.bf16.msra.mxu1 %v5821_v5  ;;  %v5958_v5 = vld [vmem:[#allocation8 + $0x7a4] ss:$16 sps:$4 sm:$0xff]  }
 0x364   :  { %3538 = vmatprep.subr.bf16.mxu1 %v5826_v16  ;;  %v5962_v16 = vld [vmem:[#allocation8 + $0x780] ss:$16 sps:$4 sm:$0xff]  }
 0x365   :  { %4378 = vmatpush1.bf16.msra.mxu0 %v5869_v32  ;;  %v5964_v32 = vld [vmem:[#allocation8 + $0x784] ss:$16 sps:$4 sm:$0xff]  }
 0x366   :  { %4379 = vmatprep.subr.bf16.mxu0 %v5874_v17  ;;  %v5968_v17 = vld [vmem:[#allocation8 + $0x760] ss:$16 sps:$4 sm:$0xff]  }
 0x367   :  { %3539 = vmatpush2.bf16.msra.mxu1 %v5824_v20  ;;  %v5970_v20 = vld [vmem:[#allocation8 + $0x764] ss:$16 sps:$4 sm:$0xff]  }
 0x368   :  { %3540 = vmatprep.subr.bf16.mxu1 %v5829_v6  ;;  %v5974_v6 = vld [vmem:[#allocation8 + $0x740] ss:$16 sps:$4 sm:$0xff]  }
 0x369   :  { %4380 = vmatpush2.bf16.msra.mxu0 %v5872_v22  ;;  %v5976_v22 = vld [vmem:[#allocation8 + $0x744] ss:$16 sps:$4 sm:$0xff]  }
 0x36a   :  { %4381 = vmatprep.subr.bf16.mxu0 %v5877_v62  ;;  %v5982_v62 = vld [vmem:[#allocation8 + $0x724] ss:$16 sps:$4 sm:$0xff]  }
 0x36b   :  { %3541 = vmatpush2.bf16.msra.mxu1 %v5827_v23  ;;  %v5980_v23 = vld [vmem:[#allocation8 + $0x720] ss:$16 sps:$4 sm:$0xff]  }
 0x36c   :  { %3542 = vmatprep.subr.bf16.mxu1 %v5832_v24 }
 0x36d   :  { %4382 = vmatpush2.bf16.msra.mxu0 %v5875_v25 }
 0x36e   :  { %4383 = vmatprep.subr.bf16.mxu0 %v5880_v18  ;;  %v5988_v18 = vld [vmem:[#allocation8 + $0x704] ss:$16 sps:$4 sm:$0xff]  }
 0x36f   :  { %3543 = vmatpush2.bf16.msra.mxu1 %v5830_v26  ;;  %v5986_v26 = vld [vmem:[#allocation8 + $0x700] ss:$16 sps:$4 sm:$0xff]  }
 0x370   :  { %3544 = vmatprep.subr.bf16.mxu1 %v5835_v27 }
 0x371   :  { %4384 = vmatpush2.bf16.msra.mxu0 %v5878_v21 }
 0x372   :  { %4385 = vmatprep.subr.bf16.mxu0 %v5883_v29  ;;  %v5994_v29 = vld [vmem:[#allocation8 + $0x6ec] ss:$16 sps:$4 sm:$0xff]  }
 0x373   :  { %3545 = vmatpush2.bf16.msra.mxu1 %v5833_v30  ;;  %v6377_v30 = vld [vmem:[%s6439_s4 + $0x4] sm:$0xf] }
 0x374   :  { %3546 = vmatprep.subr.bf16.mxu1 %v5838_v31  ;;  %v2742_v31 = vrot.slane %v6377_v30, %v6249_v38 }
 0x375   :  { %4386 = vmatpush2.bf16.msra.mxu0 %v5881_v33  ;;  %v2746_v33 = vrot.slane %v6377_v30, %v6255_v40 }
 0x376   :  { %4387 = vmatprep.subr.bf16.mxu0 %v5886_v34 }
 0x377   :  { %3547 = vmatpush2.bf16.msra.mxu1 %v5836_v42 }
 0x378   :  { %3548 = vmatprep.subr.bf16.mxu1 %v5841_v43 }
 0x379   :  { %4388 = vmatpush2.bf16.msra.mxu0 %v5884_v44 }
 0x37a   :  { %4389 = vmatprep.subr.bf16.mxu0 %v5889_v46 }
 0x37b   :  { %3549 = vmatpush2.bf16.msra.mxu1 %v5839_v47 }
 0x37c   :  { %3550 = vmatprep.subr.bf16.mxu1 %v5844_v48 }
 0x37d   :  { %4390 = vmatpush2.bf16.msra.mxu0 %v5887_v49 }
 0x37e   :  { %4391 = vmatprep.subr.bf16.mxu0 %v5892_v45 }
 0x37f   :  { %3551 = vmatpush2.bf16.msra.mxu1 %v5842_v50 }
 0x380   :  { %3552 = vmatprep.subr.bf16.mxu1 %v5847_v19 }
 0x381   :  { %4392 = vmatpush2.bf16.msra.mxu0 %v5890_v55 }
 0x382   :  { %4393 = vmatprep.subr.bf16.mxu0 %v5895_v37 }
 0x383   :  { %3553 = vmatpush2.bf16.msra.mxu1 %v5845_v52 }
 0x384   :  { %4404 = vmatprep.subr.bf16.mxu1 %v5898_v0 }
 0x385   :  { %4394 = vmatpush2.bf16.msra.mxu0 %v5893_v58 }
 0x386   :  { %3555 = vmatmul.mubr.bf16.vlgmr.msra.gmra.mxu1 %v6369_v51  ;;  %4445 = vmatprep.subr.bf16.mxu0 %v5901_v60  ;;  %v5910_v51 = vld [vmem:[#allocation8 + $0x6a4] ss:$16 sps:$4 sm:$0xff]   ;;  %v5907_v60 = vld [vmem:[#allocation8 + $0x4cc] ss:$16 sps:$4 sm:$0xff]  }
 0x387   :  { %4405 = vmatpush1.bf16.msra.mxu1 %v5896_v59  ;;  %v5899_v59 = vld [vmem:[#allocation8 + $0x4e8] ss:$16 sps:$4 sm:$0xff]  }
 0x388   :  { %4406 = vmatprep.subr.bf16.mxu1 %v5904_v1  ;;  %v5913_v1 = vld [vmem:[#allocation8 + $0x4ac] ss:$16 sps:$4 sm:$0xff]  }
 0x38b   :  { %4407 = vmatpush1.bf16.msra.mxu1 %v5902_v61  ;;  %v5905_v61 = vld [vmem:[#allocation8 + $0x4c8] ss:$16 sps:$4 sm:$0xff]  }
 0x38c   :  { %4408 = vmatprep.subr.bf16.mxu1 %v5910_v51  ;;  %v5919_v51 = vld [vmem:[#allocation8 + $0x48c] ss:$16 sps:$4 sm:$0xff]  }
 0x38f   :  { %4409 = vmatpush1.bf16.msra.mxu1 %v5908_v2  ;;  %v5911_v2 = vld [vmem:[#allocation8 + $0x4a8] ss:$16 sps:$4 sm:$0xff]  }
 0x390   :  { %4410 = vmatprep.subr.bf16.mxu1 %v5916_v3  ;;  %v5925_v3 = vld [vmem:[#allocation8 + $0x46c] ss:$16 sps:$4 sm:$0xff]  }
 0x393   :  { %4411 = vmatpush1.bf16.msra.mxu1 %v5914_v28  ;;  %v5917_v28 = vld [vmem:[#allocation8 + $0x488] ss:$16 sps:$4 sm:$0xff]  }
 0x394   :  { %4412 = vmatprep.subr.bf16.mxu1 %v5922_v4  ;;  %v5931_v4 = vld [vmem:[#allocation8 + $0x44c] ss:$16 sps:$4 sm:$0xff]  }
 0x397   :  { %4413 = vmatpush1.bf16.msra.mxu1 %v5920_v56  ;;  %v5923_v56 = vld [vmem:[#allocation8 + $0x468] ss:$16 sps:$4 sm:$0xff]  }
 0x398   :  { %4414 = vmatprep.subr.bf16.mxu1 %v5928_v8  ;;  %v5937_v8 = vld [vmem:[#allocation8 + $0x42c] ss:$16 sps:$4 sm:$0xff]  }
 0x39b   :  { %4415 = vmatpush1.bf16.msra.mxu1 %v5926_v7  ;;  %v5929_v7 = vld [vmem:[#allocation8 + $0x448] ss:$16 sps:$4 sm:$0xff]  }
 0x39c   :  { %4416 = vmatprep.subr.bf16.mxu1 %v5934_v10  ;;  %v5943_v10 = vld [vmem:[#allocation8 + $0x40c] ss:$16 sps:$4 sm:$0xff]  }
 0x39f   :  { %4417 = vmatpush1.bf16.msra.mxu1 %v5932_v9  ;;  %v5935_v9 = vld [vmem:[#allocation8 + $0x428] ss:$16 sps:$4 sm:$0xff]  }
 0x3a0   :  { %4418 = vmatprep.subr.bf16.mxu1 %v5940_v11  ;;  %v5949_v11 = vld [vmem:[#allocation8 + $0x5ec] ss:$16 sps:$4 sm:$0xff]  }
 0x3a3   :  { %4419 = vmatpush1.bf16.msra.mxu1 %v5938_v63  ;;  %v5941_v63 = vld [vmem:[#allocation8 + $0x408] ss:$16 sps:$4 sm:$0xff]  }
 0x3a4   :  { %4420 = vmatprep.subr.bf16.mxu1 %v5946_v57  ;;  %v5955_v57 = vld [vmem:[#allocation8 + $0x5cc] ss:$16 sps:$4 sm:$0xff]  }
 0x3a7   :  { %4421 = vmatpush2.bf16.msra.mxu1 %v5944_v12  ;;  %v5947_v12 = vld [vmem:[#allocation8 + $0x5e8] ss:$16 sps:$4 sm:$0xff]  }
 0x3a8   :  { %4422 = vmatprep.subr.bf16.mxu1 %v5952_v14  ;;  %v5961_v14 = vld [vmem:[#allocation8 + $0x5ac] ss:$16 sps:$4 sm:$0xff]  }
 0x3ab   :  { %4423 = vmatpush2.bf16.msra.mxu1 %v5950_v13  ;;  %v5953_v13 = vld [vmem:[#allocation8 + $0x5c8] ss:$16 sps:$4 sm:$0xff]  }
 0x3ac   :  { %4424 = vmatprep.subr.bf16.mxu1 %v5958_v5  ;;  %v5967_v5 = vld [vmem:[#allocation8 + $0x58c] ss:$16 sps:$4 sm:$0xff]  }
 0x3af   :  { %4425 = vmatpush2.bf16.msra.mxu1 %v5956_v15  ;;  %v5959_v15 = vld [vmem:[#allocation8 + $0x5a8] ss:$16 sps:$4 sm:$0xff]  }
 0x3b0   :  { %4426 = vmatprep.subr.bf16.mxu1 %v5964_v32  ;;  %v5973_v32 = vld [vmem:[#allocation8 + $0x56c] ss:$16 sps:$4 sm:$0xff]  }
 0x3b3   :  { %4427 = vmatpush2.bf16.msra.mxu1 %v5962_v16  ;;  %v5965_v16 = vld [vmem:[#allocation8 + $0x588] ss:$16 sps:$4 sm:$0xff]  }
 0x3b4   :  { %4428 = vmatprep.subr.bf16.mxu1 %v5970_v20  ;;  %v5979_v20 = vld [vmem:[#allocation8 + $0x54c] ss:$16 sps:$4 sm:$0xff]  }
 0x3b7   :  { %4429 = vmatpush2.bf16.msra.mxu1 %v5968_v17  ;;  %v5971_v17 = vld [vmem:[#allocation8 + $0x568] ss:$16 sps:$4 sm:$0xff]  }
 0x3b8   :  { %4430 = vmatprep.subr.bf16.mxu1 %v5976_v22  ;;  %v5977_v22 = vld [vmem:[#allocation8 + $0x548] ss:$16 sps:$4 sm:$0xff]  }
 0x3bb   :  { %4431 = vmatpush2.bf16.msra.mxu1 %v5974_v6  ;;  %v2750_v6 = vrot.slane %v6377_v30, %v6252_v39 }
 0x3bc   :  { %4432 = vmatprep.subr.bf16.mxu1 %v5982_v62  ;;  %v5985_v62 = vld [vmem:[#allocation8 + $0x52c] ss:$16 sps:$4 sm:$0xff]  }
 0x3bf   :  { %4433 = vmatpush2.bf16.msra.mxu1 %v5980_v23  ;;  %v2754_v23 = vrot.slane %v6377_v30, %v6258_v41 }
 0x3c0   :  { %4434 = vmatprep.subr.bf16.mxu1 %v5988_v18 }
 0x3c3   :  { %4435 = vmatpush2.bf16.msra.mxu1 %v5986_v26  ;;  %v5991_v26 = vld [vmem:[#allocation8 + $0x50c] ss:$16 sps:$4 sm:$0xff]  }
 0x3c4   :  { %4486 = vmatprep.subr.bf16.mxu1 %v5994_v29 }
 0x3c7   :  { %v3433_v24 = vpop.f32.mrf.mxu0 }
 0x3c8   :  { %v3434_v34 = vadd.f32 %v3433_v24, %v2742_v31 }
 0x3c9   :  { %v3435_v25 = vpop.f32.mrf.mxu0 }
 0x3ca   :  { %v3436_v43 = vadd.f32 %v3435_v25, %v2746_v33  ;;  %v5983_v25 = vld [vmem:[#allocation8 + $0x528] ss:$16 sps:$4 sm:$0xff]  }
 0x3cb   :  { %v3437_v27 = vpop.f32.mrf.mxu0  ;;  %v5989_v33 = vld [vmem:[#allocation8 + $0x508] ss:$16 sps:$4 sm:$0xff]  }
 0x3cd   :  { %v3438_v21 = vpop.f32.mrf.mxu0 }
 0x406   :  { %v3474_v42 = vpop.f32.mrf.mxu1 }
 0x407   :  { %v3475_v44 = vadd.f32 %v3474_v42, %v3434_v34  ;;  %v6383_v46 = vpop.f32.mrf.mxu0 }
 0x408   :  { %v3476_v47 = vpop.f32.mrf.mxu1  ;;  %v3516_v24 = vadd.f32 %v6383_v46, %v2750_v6  ;;  %v5992_v46 = vld [vmem:[#allocation8 + $0x6e8] ss:$16 sps:$4 sm:$0xff]   ;;  %v6040_v6 = vld [vmem:[%s6442_s7] sm:$0xff]  }
 0x409   :  { %v3477_v48 = vadd.f32 %v3476_v47, %v3436_v43  ;;  %v6385_v49 = vpop.f32.mrf.mxu0  ;;  %v3563_v50 = vmax.f32 %v3475_v44, 0.0 }
 0x40a   :  { %v3478_v19 = vpop.f32.mrf.mxu1  ;;  %v3518_v27 = vadd.f32 %v6385_v49, %v2754_v23  ;;  %v5995_v49 = vld [vmem:[#allocation8 + $0x6c8] ss:$16 sps:$4 sm:$0xff]  }
 0x40b   :  { %v3564_v52 = vmax.f32 %v3477_v48, 0.0  ;;  %v3519_v45 = vpop.f32.mrf.mxu0  ;;  %v6387_v0 = vpack.c.bf16 %v3563_v50, %v3563_v50  ;;  %v5997_v48 = vld [vmem:[#allocation8 + $0x6cc] ss:$16 sps:$4 sm:$0xff]   ;;  %v5998_v19 = vld [vmem:[#allocation8 + $0x6a8] ss:$16 sps:$4 sm:$0xff]  }
 0x40c   :  { %v3479_v55 = vpop.f32.mrf.mxu1  ;;  %v6000_v50 = vld [vmem:[#allocation8 + $0x6ac] ss:$16 sps:$4 sm:$0xff]   ;;  %v6001_v45 = vld [vmem:[#allocation8 + $0x688] ss:$16 sps:$4 sm:$0xff]  }
 0x40d   :  { %v3568_v37 = vpack.c.bf16 %v3564_v52, %v3564_v52  ;;  %v3520_v58 = vpop.f32.mrf.mxu0  ;;  %v6003_v52 = vld [vmem:[#allocation8 + $0x68c] ss:$16 sps:$4 sm:$0xff]  }
 0x40e   :  { %v6006_v55 = vld [vmem:[#allocation8 + $0x66c] ss:$16 sps:$4 sm:$0xff]  }
 0x40f   :  { %4395 = vmatprep.mubr.bf16.mxu0 %v3568_v37  ;;  %v6009_v58 = vld [vmem:[#allocation8 + $0x64c] ss:$16 sps:$4 sm:$0xff]  }
 0x410   :  { %4396 = vmatmul.mubr.bf16.vlgmr.msra.gmra.mxu0 %v6387_v0 }
 0x411   :  { %4446 = vmatpush1.bf16.msra.mxu0 %v5899_v59  ;;  %4477 = vmatprep.mubr.bf16.mxu0 %v3568_v37  ;;  %v6004_v37 = vld [vmem:[#allocation8 + $0x668] ss:$16 sps:$4 sm:$0xff]  }
 0x412   :  { %4447 = vmatprep.subr.bf16.mxu0 %v5907_v60  ;;  %v6007_v59 = vld [vmem:[#allocation8 + $0x648] ss:$16 sps:$4 sm:$0xff]  }
 0x413   :  { %v6010_v60 = vld [vmem:[#allocation8 + $0x628] ss:$16 sps:$4 sm:$0xff]  }
 0x415   :  { %4448 = vmatpush1.bf16.msra.mxu0 %v5905_v61  ;;  %v6015_v61 = vld [vmem:[#allocation8 + $0x60c] ss:$16 sps:$4 sm:$0xff]  }
 0x416   :  { %4449 = vmatprep.subr.bf16.mxu0 %v5913_v1  ;;  %v6013_v1 = vld [vmem:[#allocation8 + $0x608] ss:$16 sps:$4 sm:$0xff]  }
 0x419   :  { %4450 = vmatpush1.bf16.msra.mxu0 %v5911_v2  ;;  %v6018_v2 = vld [vmem:[#allocation8 + $0x7ec] ss:$16 sps:$4 sm:$0xff]  }
 0x41a   :  { %4451 = vmatprep.subr.bf16.mxu0 %v5919_v51  ;;  %v6016_v51 = vld [vmem:[#allocation8 + $0x7e8] ss:$16 sps:$4 sm:$0xff]  }
 0x41d   :  { %4452 = vmatpush1.bf16.msra.mxu0 %v5917_v28  ;;  %v6021_v28 = vld [vmem:[#allocation8 + $0x7cc] ss:$16 sps:$4 sm:$0xff]  }
 0x41e   :  { %4453 = vmatprep.subr.bf16.mxu0 %v5925_v3  ;;  %v6019_v3 = vld [vmem:[#allocation8 + $0x7c8] ss:$16 sps:$4 sm:$0xff]  }
 0x421   :  { %4454 = vmatpush1.bf16.msra.mxu0 %v5923_v56  ;;  %v6024_v56 = vld [vmem:[#allocation8 + $0x7ac] ss:$16 sps:$4 sm:$0xff]  }
 0x422   :  { %4455 = vmatprep.subr.bf16.mxu0 %v5931_v4  ;;  %v6022_v4 = vld [vmem:[#allocation8 + $0x7a8] ss:$16 sps:$4 sm:$0xff]  }
 0x425   :  { %4456 = vmatpush1.bf16.msra.mxu0 %v5929_v7  ;;  %v6027_v7 = vld [vmem:[#allocation8 + $0x78c] ss:$16 sps:$4 sm:$0xff]  }
 0x426   :  { %4457 = vmatprep.subr.bf16.mxu0 %v5937_v8  ;;  %v6025_v8 = vld [vmem:[#allocation8 + $0x788] ss:$16 sps:$4 sm:$0xff]  }
 0x429   :  { %4458 = vmatpush1.bf16.msra.mxu0 %v5935_v9  ;;  %v6030_v9 = vld [vmem:[#allocation8 + $0x76c] ss:$16 sps:$4 sm:$0xff]  }
 0x42a   :  { %4459 = vmatprep.subr.bf16.mxu0 %v5943_v10  ;;  %v6028_v10 = vld [vmem:[#allocation8 + $0x768] ss:$16 sps:$4 sm:$0xff]  }
 0x42d   :  { %4460 = vmatpush1.bf16.msra.mxu0 %v5941_v63  ;;  %v6033_v63 = vld [vmem:[#allocation8 + $0x74c] ss:$16 sps:$4 sm:$0xff]  }
 0x42e   :  { %4461 = vmatprep.subr.bf16.mxu0 %v5949_v11  ;;  %v6031_v11 = vld [vmem:[#allocation8 + $0x748] ss:$16 sps:$4 sm:$0xff]  }
 0x431   :  { %4462 = vmatpush2.bf16.msra.mxu0 %v5947_v12  ;;  %v6036_v12 = vld [vmem:[#allocation8 + $0x72c] ss:$16 sps:$4 sm:$0xff]  }
 0x432   :  { %4463 = vmatprep.subr.bf16.mxu0 %v5955_v57  ;;  %v6034_v57 = vld [vmem:[#allocation8 + $0x728] ss:$16 sps:$4 sm:$0xff]  }
 0x435   :  { %4464 = vmatpush2.bf16.msra.mxu0 %v5953_v13  ;;  %v6039_v13 = vld [vmem:[#allocation8 + $0x70c] ss:$16 sps:$4 sm:$0xff]  }
 0x436   :  { %4465 = vmatprep.subr.bf16.mxu0 %v5961_v14  ;;  %v6037_v14 = vld [vmem:[#allocation8 + $0x708] ss:$16 sps:$4 sm:$0xff]  }
 0x439   :  { %4466 = vmatpush2.bf16.msra.mxu0 %v5959_v15 }
 0x43a   :  { %4467 = vmatprep.subr.bf16.mxu0 %v5967_v5 }
 0x43d   :  { %4468 = vmatpush2.bf16.msra.mxu0 %v5965_v16 }
 0x43e   :  { %4469 = vmatprep.subr.bf16.mxu0 %v5973_v32 }
 0x441   :  { %4470 = vmatpush2.bf16.msra.mxu0 %v5971_v17  ;;  %v4581_v17 = vld [vmem:[%s6443_s8 + $0x1] sm:$0x1] }
 0x442   :  { %4471 = vmatprep.subr.bf16.mxu0 %v5979_v20  ;;  %4584 = vperm.xlu1 %5202, %v4581_v17   ;;  %v5061_v20 = vld [vmem:[%s6441_s6 + $0x4] sm:$0xf]  ;;  %s6156_s6 = smov [#allocation10]  }
 0x443   :  { %v3710_v23 = vrot.slane %v5061_v20, %v6255_v40  ;;  %s4608_s7 = sshll.u32 %s6156_s6, 4  ;;  %s4609_s7 = int_to_ptr.vmem [resolvable:$true] %s4608_s7 }
 0x444   :  { %s6121_s8 = scalar_lea.vmem %s4609_s7, 32  ;;  %p6126_p7 = scmp.lt.s32.totalorder %s4609_s7, %s4609_s7 }
 0x445   :  { %4472 = vmatpush2.bf16.msra.mxu0 %v5977_v22  ;;  %v5193_v22 = vunpack.c.h.bf16 %v6040_v6  ;;  %p6122_p6 = scmp.ne.s32.totalorder %s4609_s7, %s6121_s8  ;;  %p6127_p8 = scmp.lt.s32.totalorder %s6121_s8, %s6121_s8 }
 0x446   :  { %v3556_v18 = vpop.f32.mrf.mxu1  ;;  %4473 = vmatprep.subr.bf16.mxu0 %v5985_v62  ;;  %v3706_v62 = vrot.slane %v5061_v20, %v6249_v38 }
 0x447   :  { %v3557_v21 = vadd.f32 %v3556_v18, %v3516_v24  ;;  %v4535_v24 = vrot.slane %v5193_v22, %v6249_v38  ;;  %v4539_v18 = vrot.slane %v5193_v22, %v6252_v39  ;;  %p6128_p9 = por %p6127_p8, %p6126_p7 }
 0x448   :  { %v3558_v29 = vpop.f32.mrf.mxu1 }
 0x449   :  { %v3559_v31 = vadd.f32 %v3558_v29, %v3518_v27  ;;  %4474 = vmatpush2.bf16.msra.mxu0 %v5983_v25  ;;  %v3565_v34 = vmax.f32 %v3557_v21, 0.0  ;;  %p6129_p10 = pnand %p6128_p9, %p6122_p6 }
 0x44a   :  { %v3560_v42 = vpop.f32.mrf.mxu1  ;;  %4475 = vmatprep.subr.bf16.mxu0 %v5991_v26 }
 0x44b   :  { %v3566_v43 = vmax.f32 %v3559_v31, 0.0  ;;  %v6396_v47 = vpack.c.bf16 %v3565_v34, %v3565_v34  ;;  %v4555_v31 = vrot.slane %v4535_v24, %v6249_v38 }
 0x44c   :  { %v3561_v44 = vpop.f32.mrf.mxu1 }
 0x44d   :  { %v3570_v30 = vpack.c.bf16 %v3566_v43, %v3566_v43  ;;  %4476 = vmatpush2.bf16.msra.mxu0 %v5989_v33  ;;  %v4559_v44 = vrot.slane %v4539_v18, %v6249_v38 }
 0x44f   :  { %4436 = vmatprep.mubr.bf16.mxu1 %v3570_v30 }
 0x450   :  { %4437 = vmatmul.mubr.bf16.vlgmr.msra.gmra.mxu1 %v6396_v47  ;;  %4478 = vmatmul.mubr.bf16.vlgmr.msra.gmra.mxu0 %v6387_v0  ;;  %v6012_v0 = vld [vmem:[#allocation8 + $0x62c] ss:$16 sps:$4 sm:$0xff]  }
 0x451   :  { %4487 = vmatpush1.bf16.msra.mxu1 %v5992_v46  ;;  %4518 = vmatprep.mubr.bf16.mxu1 %v3570_v30 }
 0x452   :  { %4488 = vmatprep.subr.bf16.mxu1 %v5997_v48 }
 0x455   :  { %4489 = vmatpush1.bf16.msra.mxu1 %v5995_v49 }
 0x456   :  { %4490 = vmatprep.subr.bf16.mxu1 %v6000_v50 }
 0x459   :  { %4491 = vmatpush1.bf16.msra.mxu1 %v5998_v19 }
 0x45a   :  { %4492 = vmatprep.subr.bf16.mxu1 %v6003_v52 }
 0x45d   :  { %4493 = vmatpush1.bf16.msra.mxu1 %v6001_v45 }
 0x45e   :  { %4494 = vmatprep.subr.bf16.mxu1 %v6006_v55  ;;  %v3714_v55 = vrot.slane %v5061_v20, %v6252_v39 }
 0x461   :  { %4495 = vmatpush1.bf16.msra.mxu1 %v6004_v37  ;;  %v3718_v37 = vrot.slane %v5061_v20, %v6258_v41 }
 0x462   :  { %4496 = vmatprep.subr.bf16.mxu1 %v6009_v58  ;;  %v4543_v58 = vrot.slane %v5193_v22, %v2285_v53 }
 0x465   :  { %4497 = vmatpush1.bf16.msra.mxu1 %v6007_v59 }
 0x466   :  { %4498 = vmatprep.subr.bf16.mxu1 %v6012_v0  ;;  %v4547_v0 = vrot.slane %v5193_v22, %v2289_v54 }
 0x469   :  { %4499 = vmatpush1.bf16.msra.mxu1 %v6010_v60 }
 0x46a   :  { %4500 = vmatprep.subr.bf16.mxu1 %v6015_v61 }
 0x46d   :  { %4501 = vmatpush1.bf16.msra.mxu1 %v6013_v1 }
 0x46e   :  { %4502 = vmatprep.subr.bf16.mxu1 %v6018_v2  ;;  %v4563_v2 = vrot.slane %v4543_v58, %v6249_v38 }
 0x471   :  { %4503 = vmatpush2.bf16.msra.mxu1 %v6016_v51 }
 0x472   :  { %4504 = vmatprep.subr.bf16.mxu1 %v6021_v28 }
 0x475   :  { %4505 = vmatpush2.bf16.msra.mxu1 %v6019_v3 }
 0x476   :  { %4506 = vmatprep.subr.bf16.mxu1 %v6024_v56  ;;  %v4567_v56 = vrot.slane %v4547_v0, %v6249_v38 }
 0x479   :  { %4507 = vmatpush2.bf16.msra.mxu1 %v6022_v4 }
 0x47a   :  { %4508 = vmatprep.subr.bf16.mxu1 %v6027_v7 }
 0x47d   :  { %4509 = vmatpush2.bf16.msra.mxu1 %v6025_v8 }
 0x47e   :  { %4510 = vmatprep.subr.bf16.mxu1 %v6030_v9 }
 0x481   :  { %4511 = vmatpush2.bf16.msra.mxu1 %v6028_v10 }
 0x482   :  { %4512 = vmatprep.subr.bf16.mxu1 %v6033_v63  ;;  %v2329_v63 = vpop.permute.xlu1 %2328 }
 0x485   :  { %4513 = vmatpush2.bf16.msra.mxu1 %v6031_v11  ;;  %v2333_v11 = vrot.slane %v2329_v63, %v6249_v38 }
 0x486   :  { %4514 = vmatprep.subr.bf16.mxu1 %v6036_v12  ;;  %v2324_v12 = vpop.xlane.xlu0 %2323 }
 0x489   :  { %4515 = vmatpush2.bf16.msra.mxu1 %v6034_v57  ;;  %v2335_v57 = vadd.f32 %v2333_v11, %v2324_v12 }
 0x48a   :  { %4516 = vmatprep.subr.bf16.mxu1 %v6039_v13 }
 0x48d   :  { %4517 = vmatpush2.bf16.msra.mxu1 %v6037_v14 }
 0x490   :  { %4519 = vmatmul.mubr.bf16.vlgmr.msra.gmra.mxu1 %v6396_v47 }
 0x4bd   :  { %v4585_v13 = vpop.permute.xlu1 %4584 }
 0x4be   :  { %v4589_v14 = vrot.slane %v4585_v13, %v6249_v38 }
 0x4d0   :  { %v4397_v15 = vpop.f32.mrf.mxu0 }
 0x4d1   :  { %v4398_v25 = vadd.f32 %v4397_v15, %v3706_v62 }
 0x4d2   :  { %v4399_v5 = vpop.f32.mrf.mxu0 }
 0x4d3   :  { %v4400_v21 = vadd.f32 %v4399_v5, %v3710_v23 }
 0x4d4   :  { %v4401_v16 = vpop.f32.mrf.mxu0 }
 0x4d5   :  { %v2341_v16 = vand.u32 127, %v117_v35 }
 0x4d6   :  { %v4402_v32 = vpop.f32.mrf.mxu0 }
 0x4d7   :  { %v2344_v32 = vsub.s32 %v2341_v16, %v6243_v36 }
 0x510   :  { %v4438_v26 = vpop.f32.mrf.mxu1  ;;  %v4479_v27 = vpop.f32.mrf.mxu0 }
 0x511   :  { %v4439_v29 = vadd.f32 %v4438_v26, %v4398_v25  ;;  %v4480_v59 = vadd.f32 %v4479_v27, %v3714_v55 }
 0x512   :  { %v4440_v33 = vpop.f32.mrf.mxu1  ;;  %v4481_v34 = vpop.f32.mrf.mxu0 }
 0x513   :  { %v4527_v42 = vmax.f32 %v4439_v29, 0.0  ;;  %v4441_v43 = vadd.f32 %v4440_v33, %v4400_v21  ;;  %v4482_v61 = vadd.f32 %v4481_v34, %v3718_v37 }
 0x514   :  { %v4442_v30 = vpop.f32.mrf.mxu1  ;;  %v4483_v46 = vpop.f32.mrf.mxu0 }
 0x515   :  { %v4568_v40 = vmul.f32 %v4555_v31, %v4527_v42  ;;  %v4528_v47 = vmax.f32 %v4441_v43, 0.0 }
 0x516   :  { %v4443_v48 = vpop.f32.mrf.mxu1  ;;  %v4484_v49 = vpop.f32.mrf.mxu0 }
 0x517   :  { %v4569_v50 = vmul.f32 %v4559_v44, %v4528_v47  ;;  %v4572_v19 = vsel %vm2315_vm2, %v4568_v40, 0.0 }
 0x519   :  { %v4573_v52 = vsel %vm2315_vm2, %v4569_v50, 0.0 }
 0x51a   :  { %v4574_v45 = vadd.f32 %v4573_v52, %v4572_v19 }
 0x550   :  { %v4520_v60 = vpop.f32.mrf.mxu1 }
 0x551   :  { %v4521_v1 = vadd.f32 %v4520_v60, %v4480_v59 }
 0x552   :  { %v4522_v51 = vpop.f32.mrf.mxu1 }
 0x553   :  { %v4529_v28 = vmax.f32 %v4521_v1, 0.0  ;;  %v4523_v3 = vadd.f32 %v4522_v51, %v4482_v61 }
 0x554   :  { %v4524_v39 = vpop.f32.mrf.mxu1 }
 0x555   :  { %v4570_v4 = vmul.f32 %v4563_v2, %v4529_v28  ;;  %v4530_v41 = vmax.f32 %v4523_v3, 0.0 }
 0x556   :  { %v4525_v7 = vpop.f32.mrf.mxu1 }
 0x557   :  { %v4571_v8 = vmul.f32 %v4567_v56, %v4530_v41  ;;  %v4575_v53 = vsel %vm2315_vm2, %v4570_v4, 0.0 }
 0x558   :  { %v4576_v9 = vadd.f32 %v4575_v53, %v4574_v45 }
 0x559   :  { %v4577_v54 = vsel %vm2315_vm2, %v4571_v8, 0.0 }
 0x55a   :  { %v4578_v10 = vadd.f32 %v4577_v54, %v4576_v9 }
 0x55c   :  { %4579 = vadd.xlane.f32.xlu0 %v4578_v10 }
 0x572   :  { %2338 = vperm.xlu0 %5203, %v2335_v57  }
 0x5e5   :  { %v4580_v15 = vpop.xlane.xlu0 %4579 }
 0x5e6   :  { %v4591_v5 = vadd.f32 %v4589_v14, %v4580_v15 }
 0x5e8   :  { %4594 = vperm.xlu1 %5202, %v4591_v5  }
 0x5ed   :  { %v2339_v17 = vpop.permute.xlu0 %2338 }
 0x5ee   :  { %v2345_v20 = vrot.slane %v2339_v17, %v2344_v32 }
 0x5f0   :  { %2348 = vst.msk [vmem:[#allocation10] sm:$0x1] %vm2347_vm3, %v2345_v20 }
 0x663   :  { %v4595_v6 = vpop.permute.xlu1 %4594 }
 0x664   :  { %v4599_v22 = vrot.slane %v4595_v6, %v2344_v32 }
 0x666   :  { %4601 = vst.msk [vmem:[#allocation10 + $0x1] sm:$0x1] %vm2347_vm3, %v4599_v22 }
 0x667   :  { %6132 = shalt.err (!%p6129_p10)
}
 0x668   :  { %4611 = dma.vmem_to_hbm [thread:$0]  %s4609_s7, 32, %s6444_s9, [#allocation4]  }
 0x669   :  { %6147 = dma.done.wait [#allocation4], 32  }
 0x66a   :  { %6148 = vsyncadd [#allocation4], 4294967264 }
 0x66b   :  { %4615 = vsyncpa [#allocation3], 1 }
 0x66c   :  { %4616 = vsyncpa [#allocation6], 1 }
 0x66d   :  { %4617 = vsyncpa [#allocation9], 1 }
 0x66e   :  { %4618 = vsyncpa [#allocation4], 1 }

</bundles_post_ra>
